<compile_context>
chip_gen: v7x
topology: tpu7x:2x2x1
jax: 0.10.0
libtpu: 0.0.40
codegen_flags: <defaults>
</compile_context>

<pallas_src>
import jax
import jax.numpy as jnp
from jax.experimental import pallas as pl
from jax.experimental.pallas import tpu as pltpu

LANES = 128
LAYERS_HEADS = (4, 7, 10, 12)   # hard-coded PG head layers in MST_TCN2_ISR


def _round_up(n, m):
    return ((n + m - 1) // m) * m


def _tap_offsets(dilation, window_dim, offline):
    """Time offsets t -> t + off of the 3 taps of a kernel-3 dilated conv under
    Acausal (offline) or window padding (matches Dilated_conv /
    DilatedResidualLayer padding helpers)."""
    d = dilation
    w = d if offline else min(window_dim, d)
    return tuple((k - 2) * d + w for k in range(3))


def _split_zero_tap(offs):
    """(nonzero tap indices, zero tap index).  window_dim == 0 (module default)
    and Acausal padding both give exactly one 0-offset tap."""
    assert 0 in offs, offs
    z = offs.index(0)
    return tuple(k for k in range(3) if k != z), z


def _vmem_limit_bytes():
    # ~48 MiB on v7x (64 MiB physical / TC), 96 MiB on v5e/v6e (128 MiB).
    try:
        cap = int(pltpu.get_tpu_info().vmem_capacity_bytes)
    except Exception:
        cap = 128 * 1024 * 1024
    return int(min(96 * 1024 * 1024, (cap * 3) // 4))


def _compiler_params():
    return pltpu.CompilerParams(
        dimension_semantics=("parallel",),          # batch axis -> dual TC on v7x
        vmem_limit_bytes=_vmem_limit_bytes())


def _const_spec(arr):
    nd = arr.ndim
    return pl.BlockSpec(arr.shape, lambda b, _nd=nd: (0,) * _nd)


# ---------------------------------------------------------------------------
# Kernels
# ---------------------------------------------------------------------------
def _make_pg_kernel(num_layers, head_layers, taps, n_slabs, T, F, pad_lo, pad_hi):
    """Prediction-generation stage: stem 1x1, L dual-dilated layers (1x1 fusion
    conv pre-folded, 0-offset taps deduplicated), fused head outputs.

    taps[i]: the NONZERO tap offsets of layer i in weight-slab order; slab
    n_slabs-1 of each layer is the deduplicated 0-offset tap, fed from the
    in-register bf16 copy of f."""
    n_heads = len(head_layers)

    def kernel(*refs):
        (x_ref, w_in_ref, b_in_ref, w_l_ref, b_l_ref, w_h_ref, b_h_ref) = refs[:7]
        out_refs = refs[7:7 + n_heads]
        pad_ref = refs[7 + n_heads]

        # The pad bands are the only zero source for the dilated-conv halo;
        # nothing below may write them.  Re-zeroed every grid step (cheap,
        # correct under megacore batch sharding).
        if pad_lo > 0:
            pad_ref[pl.ds(0, pad_lo), :] = jnp.zeros((pad_lo, F), pad_ref.dtype)
        if pad_hi > 0:
            pad_ref[pl.ds(pad_lo + T, pad_hi), :] = jnp.zeros((pad_hi, F), pad_ref.dtype)

        f = jnp.dot(x_ref[...], w_in_ref[...],
                    preferred_element_type=jnp.float32) + b_in_ref[...]   # (T,F) f32

        head_slot = 0
        for i in range(num_layers):
            f16 = f.astype(jnp.bfloat16)
            pad_ref[pl.ds(pad_lo, T), :] = f16          # bf16 residual/pad scratch
            h = b_l_ref[i]                              # (1, F) f32, broadcasts
            for j, o in enumerate(taps[i]):
                h = h + jnp.dot(pad_ref[pl.ds(pad_lo + o, T), :],
                                w_l_ref[i * n_slabs + j],
                                preferred_element_type=jnp.float32)
            # deduplicated 0-offset tap: reuse the in-register bf16 copy of f.
            h = h + jnp.dot(f16, w_l_ref[i * n_slabs + n_slabs - 1],
                            preferred_element_type=jnp.float32)
            f = f + jnp.maximum(h, 0.0)      # ReLU; dropout = identity; residual
            if i in head_layers:
                out_refs[head_slot][...] = (
                    jnp.dot(f.astype(jnp.bfloat16), w_h_ref[head_slot],
                            preferred_element_type=jnp.float32)
                    + b_h_ref[head_slot])    # (T, c_pad) lane-dense store
                head_slot += 1

    return kernel


def _make_refine_kernel(num_layers, taps, n_slabs, T, F, sum_c, pad_lo, pad_hi):
    """MT_Refinement stage with the inter-stage softmax fused into the prologue:
    softmax over first sum_c lanes, stem 1x1, L DilatedResidualLayers, fused head."""

    def kernel(x_ref, w_in_ref, b_in_ref, w_d_ref, b_d_ref, w_1_ref, b_1_ref,
               w_o_ref, b_o_ref, out_ref, pad_ref):
        if pad_lo > 0:
            pad_ref[pl.ds(0, pad_lo), :] = jnp.zeros((pad_lo, F), pad_ref.dtype)
        if pad_hi > 0:
            pad_ref[pl.ds(pad_lo + T, pad_hi), :] = jnp.zeros((pad_hi, F), pad_ref.dtype)

        # Fused softmax over the class lanes of the previous stage's fused
        # logits; padded lanes masked to -inf so they cannot corrupt the denom.
        logits = x_ref[...]                                        # (T, c_pad) f32
        lane = jax.lax.broadcasted_iota(jnp.int32, logits.shape, 1)
        s = jnp.where(lane < sum_c, logits, -jnp.inf)
        p = jnp.exp(s - jnp.max(s, axis=-1, keepdims=True))
        probs = (p / jnp.sum(p, axis=-1, keepdims=True)).astype(jnp.bfloat16)

        f = jnp.dot(probs, w_in_ref[...],
                    preferred_element_type=jnp.float32) + b_in_ref[...]

        for l in range(num_layers):
            f16 = f.astype(jnp.bfloat16)
            pad_ref[pl.ds(pad_lo, T), :] = f16
            h = b_d_ref[l]
            for j, o in enumerate(taps[l]):
                h = h + jnp.dot(pad_ref[pl.ds(pad_lo + o, T), :],
                                w_d_ref[l * n_slabs + j],
                                preferred_element_type=jnp.float32)
            h = h + jnp.dot(f16, w_d_ref[l * n_slabs + n_slabs - 1],
                            preferred_element_type=jnp.float32)
            h = jnp.maximum(h, 0.0)
            f = f + (jnp.dot(h.astype(jnp.bfloat16), w_1_ref[l],
                             preferred_element_type=jnp.float32) + b_1_ref[l])

        out_ref[...] = (jnp.dot(f.astype(jnp.bfloat16), w_o_ref[...],
                                preferred_element_type=jnp.float32) + b_o_ref[...])

    return kernel


# ---------------------------------------------------------------------------
# Stage wrappers (parameter packing + pallas_call)
# ---------------------------------------------------------------------------
def _run_pg_stage(x_nct, pg, num_classes_list, window_dim, offline, num_f_maps):
    N, dim, T = x_nct.shape
    F = num_f_maps
    L = len(pg["layers"])
    head_layers = tuple(i for i in LAYERS_HEADS if i < L)
    assert head_layers, "num_layers_PG must exceed the first head layer (4)"

    # ---- pack / pre-fuse parameters (f32 math, cast to bf16 once) ----------
    w_in = pg["w_in"].astype(jnp.bfloat16)                 # (dim, F) - no lane pad
    b_in = pg["b_in"]                                      # (1, F) f32

    offs1 = tuple(_tap_offsets(2 ** (L - 1 - i), window_dim, offline) for i in range(L))
    offs2 = tuple(_tap_offsets(2 ** i, window_dim, offline) for i in range(L))

    n_slabs = 5                      # 2 + 2 nonzero taps + deduplicated 0-offset tap
    w_l, b_l, taps = [], [], []
    for i, (wd1, bd1, wd2, bd2, wf, bf) in enumerate(pg["layers"]):
        wf_top, wf_bot = wf[:F], wf[F:]
        nz1, z1 = _split_zero_tap(offs1[i])
        nz2, z2 = _split_zero_tap(offs2[i])
        # conv_fusion(cat([conv_d1(f), conv_d2(f)])) folded into per-tap weights
        # (exact: no nonlinearity in between); the two 0-offset taps are summed.
        w_l.extend([wd1[k] @ wf_top for k in nz1]
                   + [wd2[k] @ wf_bot for k in nz2]
                   + [wd1[z1] @ wf_top + wd2[z2] @ wf_bot])
        b_l.append(bd1 @ wf_top + bd2 @ wf_bot + bf)
        taps.append(tuple(offs1[i][k] for k in nz1) + tuple(offs2[i][k] for k in nz2))
    w_l = jnp.stack(w_l).astype(jnp.bfloat16)              # (L*5, F, F)
    b_l = jnp.stack(b_l)                                   # (L, 1, F) f32

    sum_c = sum(num_classes_list)
    c_pad = _round_up(sum_c, LANES)
    w_h, b_h = [], []
    for head in pg["heads"]:
        w = jnp.zeros((F, c_pad), jnp.float32)
        b = jnp.zeros((1, c_pad), jnp.float32)
        off = 0
        for (wo, bo), c in zip(head, num_classes_list):
            w = w.at[:, off:off + c].set(wo)
            b = b.at[:, off:off + c].set(bo)
            off += c
        w_h.append(w)
        b_h.append(b)
    w_h = jnp.stack(w_h).astype(jnp.bfloat16)              # (H, F, c_pad)
    b_h = jnp.stack(b_h)                                   # (H, 1, c_pad) f32

    all_offs = [o for layer in taps for o in layer]
    pad_lo = max(0, -min(all_offs))
    pad_hi = max(0, max(all_offs))

    x_t = jnp.transpose(x_nct, (0, 2, 1)).astype(jnp.bfloat16)   # (N, T, dim)

    weights = (w_in, b_in, w_l, b_l, w_h, b_h)
    H = len(head_layers)
    in_specs = [pl.BlockSpec((None, T, dim), lambda b: (b, 0, 0))]
    in_specs += [_const_spec(w) for w in weights]
    out_specs = tuple(pl.BlockSpec((None, T, c_pad), lambda b: (b, 0, 0))
                      for _ in range(H))
    out_shape = tuple(jax.ShapeDtypeStruct((N, T, c_pad), jnp.float32)
                      for _ in range(H))

    kernel = _make_pg_kernel(L, head_layers, tuple(taps), n_slabs, T, F, pad_lo, pad_hi)
    return pl.pallas_call(
        kernel,
        out_shape=out_shape,
        grid_spec=pltpu.PrefetchScalarGridSpec(
            num_scalar_prefetch=0,
            grid=(N,),
            in_specs=in_specs,
            out_specs=out_specs,
            scratch_shapes=[pltpu.VMEM((pad_lo + T + pad_hi, F), jnp.bfloat16)]),
        compiler_params=_compiler_params(),
    )(x_t, *weights)


def _run_refine_stage(prev_fused_ntc, rp, num_classes_list, window_dim, offline,
                      num_f_maps):
    """prev_fused_ntc: (N, T, c_pad) f32 fused logits of the previous stage.
    The inter-stage softmax is computed inside the kernel."""
    N, T, c_pad = prev_fused_ntc.shape
    sum_c = sum(num_classes_list)
    F = num_f_maps
    L = len(rp["layers"])

    w_in = jnp.pad(rp["w_in"], ((0, c_pad - sum_c), (0, 0))).astype(jnp.bfloat16)
    b_in = rp["b_in"]

    offs = tuple(_tap_offsets(2 ** l, window_dim, offline) for l in range(L))
    n_slabs = 3
    w_d, b_d, w_1, b_1, taps = [], [], [], [], []
    for l, (wd, bd, w1, b1) in enumerate(rp["layers"]):
        nz, z = _split_zero_tap(offs[l])
        w_d.extend([wd[k] for k in nz] + [wd[z]])        # 0-offset tap last
        b_d.append(bd)
        w_1.append(w1)
        b_1.append(b1)
        taps.append(tuple(offs[l][k] for k in nz))
    w_d = jnp.stack(w_d).astype(jnp.bfloat16)            # (L*3, F, F)
    b_d = jnp.stack(b_d)                                 # (L, 1, F)
    w_1 = jnp.stack(w_1).astype(jnp.bfloat16)            # (L, F, F)
    b_1 = jnp.stack(b_1)                                 # (L, 1, F)

    w_o = jnp.zeros((F, c_pad), jnp.float32)
    b_o = jnp.zeros((1, c_pad), jnp.float32)
    off = 0
    for (wo, bo), c in zip(rp["outs"], num_classes_list):
        w_o = w_o.at[:, off:off + c].set(wo)
        b_o = b_o.at[:, off:off + c].set(bo)
        off += c
    w_o = w_o.astype(jnp.bfloat16)

    all_offs = [o for layer in taps for o in layer]
    pad_lo = max(0, -min(all_offs))
    pad_hi = max(0, max(all_offs))

    weights = (w_in, b_in, w_d, b_d, w_1, b_1, w_o, b_o)
    in_specs = [pl.BlockSpec((None, T, c_pad), lambda b: (b, 0, 0))]
    in_specs += [_const_spec(w) for w in weights]

    kernel = _make_refine_kernel(L, tuple(taps), n_slabs, T, F, sum_c, pad_lo, pad_hi)
    return pl.pallas_call(
        kernel,
        out_shape=jax.ShapeDtypeStruct((N, T, c_pad), jnp.float32),
        grid_spec=pltpu.PrefetchScalarGridSpec(
            num_scalar_prefetch=0,
            grid=(N,),
            in_specs=in_specs,
            out_specs=pl.BlockSpec((None, T, c_pad), lambda b: (b, 0, 0)),
            scratch_shapes=[pltpu.VMEM((pad_lo + T + pad_hi, F), jnp.bfloat16)]),
        compiler_params=_compiler_params(),
    )(prev_fused_ntc, *weights)


# ---------------------------------------------------------------------------
# Full MST_TCN2_ISR forward
# ---------------------------------------------------------------------------
def mst_tcn2_isr_forward(x, params, num_classes_list, offline_mode, num_f_maps):
    """x: (N, dim, T) f32.  Returns a list over tasks of (num_stages, N, C_s, T)."""
    window_dim = 0                      # MST_TCN2_ISR always uses window_dim = 0

    head_fused = _run_pg_stage(x, params["pg"], num_classes_list, window_dim,
                               offline_mode, num_f_maps)

    def split_tasks(fused_ntc):
        outs, off = [], 0
        for c in num_classes_list:
            outs.append(jnp.transpose(fused_ntc[:, :, off:off + c], (0, 2, 1)))
            off += c
        return outs

    per_stage = [split_tasks(h) for h in head_fused]
    prev = head_fused[-1]               # fused logits of cat(heads_outs[-1], 1)
    for rp in params["Rs"]:
        fused = _run_refine_stage(prev, rp, num_classes_list, window_dim,
                                  offline_mode, num_f_maps)
        per_stage.append(split_tasks(fused))
        prev = fused

    return [jnp.stack([stage[s] for stage in per_stage], axis=0)
            for s in range(len(num_classes_list))]


# ---------------------------------------------------------------------------
# Synthetic parameters + pure-JAX f32 reference
# ---------------------------------------------------------------------------
class _KeyIter:
    def __init__(self, key):
        self._key = key

    def __call__(self):
        self._key, sub = jax.random.split(self._key)
        return sub


def init_params(key, num_layers_pg, num_layers_r, num_r, num_f_maps, dim,
                num_classes_list, scale=0.1):
    """Weights stored pre-transposed as (Cin, Cout); kernel-3 convs as (3, Cin, Cout)."""
    F = num_f_maps
    kit = _KeyIter(key)

    def mat(shape):
        return scale * jax.random.normal(kit(), shape, jnp.float32)

    head_layers = [i for i in LAYERS_HEADS if i < num_layers_pg]
    pg = {
        "w_in": mat((dim, F)),
        "b_in": mat((1, F)),
        "layers": [(mat((3, F, F)), mat((1, F)),          # conv_dilated_1
                    mat((3, F, F)), mat((1, F)),          # conv_dilated_2
                    mat((2 * F, F)), mat((1, F)))         # conv_fusion
                   for _ in range(num_layers_pg)],
        "heads": [[(mat((F, c)), mat((1, c))) for c in num_classes_list]
                  for _ in head_layers],
    }
    sum_c = sum(num_classes_list)
    rs = []
    for _ in range(num_r):
        rs.append({
            "w_in": mat((sum_c, F)),
            "b_in": mat((1, F)),
            "layers": [(mat((3, F, F)), mat((1, F)), mat((F, F)), mat((1, F)))
                       for _ in range(num_layers_r)],
            "outs": [(mat((F, c)), mat((1, c))) for c in num_classes_list],
        })
    return {"pg": pg, "Rs": rs}


def _ref_dilated_conv(f_ntc, w_taps, bias, dilation, window_dim, offline):
    """Reference kernel-3 dilated Conv1d with Acausal / window zero padding."""
    N, T, _ = f_ntc.shape
    offs = _tap_offsets(dilation, window_dim, offline)
    P = 2 * dilation
    fp = jnp.pad(f_ntc, ((0, 0), (P, P), (0, 0)))
    out = jnp.zeros((N, T, w_taps.shape[-1]), jnp.float32) + bias
    for k in range(3):
        s = P + offs[k]
        out = out + fp[:, s:s + T, :] @ w_taps[k]
    return out


def ref_forward(x, params, num_classes_list, offline_mode, num_f_maps):
    """Pure-JAX f32 reference of MST_TCN2_ISR.forward (dropout = identity)."""
    window_dim = 0
    pg = params["pg"]
    L = len(pg["layers"])

    f = jnp.transpose(x, (0, 2, 1)) @ pg["w_in"] + pg["b_in"]
    heads_outs, head_idx = [], 0
    for i, (wd1, bd1, wd2, bd2, wf, bf) in enumerate(pg["layers"]):
        o1 = _ref_dilated_conv(f, wd1, bd1, 2 ** (L - 1 - i), window_dim, offline_mode)
        o2 = _ref_dilated_conv(f, wd2, bd2, 2 ** i, window_dim, offline_mode)
        h = jnp.concatenate([o1, o2], axis=-1) @ wf + bf
        f = f + jax.nn.relu(h)
        if i in LAYERS_HEADS:
            head = pg["heads"][head_idx]
            head_idx += 1
            heads_outs.append(
                [jnp.transpose(f @ wo + bo, (0, 2, 1)) for (wo, bo) in head])

    per_stage = list(heads_outs)
    out_nct = jnp.concatenate(heads_outs[-1], axis=1)
    for rp in params["Rs"]:
        probs = jax.nn.softmax(out_nct, axis=1)
        g = jnp.transpose(probs, (0, 2, 1)) @ rp["w_in"] + rp["b_in"]
        for l, (wd, bd, w1, b1) in enumerate(rp["layers"]):
            h = jax.nn.relu(_ref_dilated_conv(g, wd, bd, 2 ** l, window_dim, offline_mode))
            g = g + (h @ w1 + b1)
        outs = [jnp.transpose(g @ wo + bo, (0, 2, 1)) for (wo, bo) in rp["outs"]]
        per_stage.append(outs)
        out_nct = jnp.concatenate(outs, axis=1)

    return [jnp.stack([stage[s] for stage in per_stage], axis=0)
            for s in range(len(num_classes_list))]


if __name__ == "__main__":
    # Small shapes consistent with the module: x is (batch, dim, seq_len).
    N, dim, T = 2, 16, 64
    num_f_maps = 32
    num_layers_pg = 8             # PG head layers reached: 4 and 7
    num_layers_r = 3              # refinement dilations 1, 2, 4
    num_r = 2                     # two refinement stages
    num_classes_list = [6, 10]    # two task heads, sum = 16 classes
    offline_mode = False          # module default (window padding, window_dim = 0)

    key = jax.random.PRNGKey(0)
    kx, kp = jax.random.split(key)
    x = jax.random.normal(kx, (N, dim, T), jnp.float32)
    params = init_params(kp, num_layers_pg, num_layers_r, num_r,
                         num_f_maps, dim, num_classes_list)

    outs = mst_tcn2_isr_forward(x, params, num_classes_list, offline_mode, num_f_maps)
    outs = jax.block_until_ready(outs)

    refs = ref_forward(x, params, num_classes_list, offline_mode, num_f_maps)
    num_stages = len([i for i in LAYERS_HEADS if i < num_layers_pg]) + num_r
    for o, r, c in zip(outs, refs, num_classes_list):
        assert o.shape == (num_stages, N, c, T), o.shape
        err = float(jnp.max(jnp.abs(o - r)))
        ref_mag = float(jnp.max(jnp.abs(r)))
        tol = 2e-2 + 2e-2 * ref_mag            # bf16-matmul inference tolerance
        assert err < tol, f"max abs err {err} (tol {tol})"

    print("KERNEL_OK")
</pallas_src>

<mosaic_0001>
module attributes {stable_mosaic.version = 11 : i64} {
  func.func @kernel(%arg0: i32, %arg1: memref<1x64x16xbf16, #tpu.memory_space<vmem>>, %arg2: memref<16x32xbf16, #tpu.memory_space<vmem>>, %arg3: memref<1x32xf32, #tpu.memory_space<vmem>>, %arg4: memref<40x32x32xbf16, #tpu.memory_space<vmem>>, %arg5: memref<8x1x32xf32, #tpu.memory_space<vmem>>, %arg6: memref<2x32x128xbf16, #tpu.memory_space<vmem>>, %arg7: memref<2x1x128xf32, #tpu.memory_space<vmem>>, %arg8: memref<1x64x128xf32, #tpu.memory_space<vmem>>, %arg9: memref<1x64x128xf32, #tpu.memory_space<vmem>>, %arg10: memref<320x32xbf16, #tpu.memory_space<vmem>>) attributes {dimension_semantics = [#tpu.dimension_semantics<parallel>], iteration_bounds = array<i64: 2>, scalar_prefetch = 0 : i64, scratch_operands = 1 : i64, tpu.core_type = #tpu.core_type<tc>, window_params = [{transform_indices = @transform_0, window_bounds = array<i64: 1, 64, 16>}, {pipeline_mode = #tpu.pipeline_mode<synchronous>, transform_indices = @transform_1, window_bounds = array<i64: 16, 32>}, {pipeline_mode = #tpu.pipeline_mode<synchronous>, transform_indices = @transform_2, window_bounds = array<i64: 1, 32>}, {pipeline_mode = #tpu.pipeline_mode<synchronous>, transform_indices = @transform_3, window_bounds = array<i64: 40, 32, 32>}, {pipeline_mode = #tpu.pipeline_mode<synchronous>, transform_indices = @transform_4, window_bounds = array<i64: 8, 1, 32>}, {pipeline_mode = #tpu.pipeline_mode<synchronous>, transform_indices = @transform_5, window_bounds = array<i64: 2, 32, 128>}, {pipeline_mode = #tpu.pipeline_mode<synchronous>, transform_indices = @transform_6, window_bounds = array<i64: 2, 1, 128>}, {transform_indices = @transform_7, window_bounds = array<i64: 1, 64, 128>}, {transform_indices = @transform_8, window_bounds = array<i64: 1, 64, 128>}]} {
    %cst = arith.constant 0.000000e+00 : bf16
    %0 = vector.broadcast %cst : bf16 to vector<256x32xbf16>
    %c0 = arith.constant 0 : index
    %c0_0 = arith.constant 0 : index
    %1 = vector.load %arg10[%c0, %c0_0] : memref<320x32xbf16, #tpu.memory_space<vmem>>, vector<256x32xbf16>
    tpu.vector_store %arg10[%c0, %c0_0], %0 {strides = array<i32>} : memref<320x32xbf16, #tpu.memory_space<vmem>>, vector<256x32xbf16>,
    %c0_1 = arith.constant 0 : index
    %c0_2 = arith.constant 0 : index
    %c0_3 = arith.constant 0 : index
    %2 = vector.load %arg1[%c0_1, %c0_2, %c0_3] : memref<1x64x16xbf16, #tpu.memory_space<vmem>>, vector<1x64x16xbf16>
    %3 = vector.shape_cast %2 : vector<1x64x16xbf16> to vector<64x16xbf16>
    %c0_4 = arith.constant 0 : index
    %c0_5 = arith.constant 0 : index
    %4 = vector.load %arg2[%c0_4, %c0_5] : memref<16x32xbf16, #tpu.memory_space<vmem>>, vector<16x32xbf16>
    %cst_6 = arith.constant dense<0.000000e+00> : vector<64x32xf32>
    %5 = tpu.matmul %3, %4, %cst_6 {dimension_numbers = #tpu.dot_dimension_numbers<[1], [0], [0], [1], [0, 0, 1, 1], [], []>} : vector<64x16xbf16>, vector<16x32xbf16>, vector<64x32xf32> -> vector<64x32xf32>
    %c0_7 = arith.constant 0 : index
    %c0_8 = arith.constant 0 : index
    %6 = vector.load %arg3[%c0_7, %c0_8] : memref<1x32xf32, #tpu.memory_space<vmem>>, vector<1x32xf32>
    %7 = vector.broadcast %6 : vector<1x32xf32> to vector<64x32xf32>
    %8 = arith.addf %5, %7 : vector<64x32xf32>
    %9 = arith.truncf %8 : vector<64x32xf32> to vector<64x32xbf16>
    %c256 = arith.constant 256 : index
    %c0_9 = arith.constant 0 : index
    %10 = vector.load %arg10[%c256, %c0_9] : memref<320x32xbf16, #tpu.memory_space<vmem>>, vector<64x32xbf16>
    tpu.vector_store %arg10[%c256, %c0_9], %9 {strides = array<i32>} : memref<320x32xbf16, #tpu.memory_space<vmem>>, vector<64x32xbf16>,
    %c0_10 = arith.constant 0 : index
    %c0_11 = arith.constant 0 : index
    %c0_12 = arith.constant 0 : index
    %11 = vector.load %arg5[%c0_10, %c0_11, %c0_12] : memref<8x1x32xf32, #tpu.memory_space<vmem>>, vector<1x1x32xf32>
    %12 = vector.shape_cast %11 : vector<1x1x32xf32> to vector<1x32xf32>
    %c0_13 = arith.constant 0 : index
    %c0_14 = arith.constant 0 : index
    %13 = vector.load %arg10[%c0_13, %c0_14] : memref<320x32xbf16, #tpu.memory_space<vmem>>, vector<64x32xbf16>
    %c0_15 = arith.constant 0 : index
    %c0_16 = arith.constant 0 : index
    %c0_17 = arith.constant 0 : index
    %14 = vector.load %arg4[%c0_15, %c0_16, %c0_17] : memref<40x32x32xbf16, #tpu.memory_space<vmem>>, vector<1x32x32xbf16>
    %15 = vector.shape_cast %14 : vector<1x32x32xbf16> to vector<32x32xbf16>
    %cst_18 = arith.constant dense<0.000000e+00> : vector<64x32xf32>
    %16 = tpu.matmul %13, %15, %cst_18 {dimension_numbers = #tpu.dot_dimension_numbers<[1], [0], [0], [1], [0, 0, 1, 1], [], []>} : vector<64x32xbf16>, vector<32x32xbf16>, vector<64x32xf32> -> vector<64x32xf32>
    %17 = vector.broadcast %12 : vector<1x32xf32> to vector<64x32xf32>
    %18 = arith.addf %17, %16 : vector<64x32xf32>
    %c128 = arith.constant 128 : index
    %c0_19 = arith.constant 0 : index
    %19 = vector.load %arg10[%c128, %c0_19] : memref<320x32xbf16, #tpu.memory_space<vmem>>, vector<64x32xbf16>
    %c1 = arith.constant 1 : index
    %c0_20 = arith.constant 0 : index
    %c0_21 = arith.constant 0 : index
    %20 = vector.load %arg4[%c1, %c0_20, %c0_21] : memref<40x32x32xbf16, #tpu.memory_space<vmem>>, vector<1x32x32xbf16>
    %21 = vector.shape_cast %20 : vector<1x32x32xbf16> to vector<32x32xbf16>
    %cst_22 = arith.constant dense<0.000000e+00> : vector<64x32xf32>
    %22 = tpu.matmul %19, %21, %cst_22 {dimension_numbers = #tpu.dot_dimension_numbers<[1], [0], [0], [1], [0, 0, 1, 1], [], []>} : vector<64x32xbf16>, vector<32x32xbf16>, vector<64x32xf32> -> vector<64x32xf32>
    %23 = arith.addf %18, %22 : vector<64x32xf32>
    %c254 = arith.constant 254 : index
    %c0_23 = arith.constant 0 : index
    %24 = vector.load %arg10[%c254, %c0_23] : memref<320x32xbf16, #tpu.memory_space<vmem>>, vector<64x32xbf16>
    %c2 = arith.constant 2 : index
    %c0_24 = arith.constant 0 : index
    %c0_25 = arith.constant 0 : index
    %25 = vector.load %arg4[%c2, %c0_24, %c0_25] : memref<40x32x32xbf16, #tpu.memory_space<vmem>>, vector<1x32x32xbf16>
    %26 = vector.shape_cast %25 : vector<1x32x32xbf16> to vector<32x32xbf16>
    %cst_26 = arith.constant dense<0.000000e+00> : vector<64x32xf32>
    %27 = tpu.matmul %24, %26, %cst_26 {dimension_numbers = #tpu.dot_dimension_numbers<[1], [0], [0], [1], [0, 0, 1, 1], [], []>} : vector<64x32xbf16>, vector<32x32xbf16>, vector<64x32xf32> -> vector<64x32xf32>
    %28 = arith.addf %23, %27 : vector<64x32xf32>
    %c255 = arith.constant 255 : index
    %c0_27 = arith.constant 0 : index
    %29 = vector.load %arg10[%c255, %c0_27] : memref<320x32xbf16, #tpu.memory_space<vmem>>, vector<64x32xbf16>
    %c3 = arith.constant 3 : index
    %c0_28 = arith.constant 0 : index
    %c0_29 = arith.constant 0 : index
    %30 = vector.load %arg4[%c3, %c0_28, %c0_29] : memref<40x32x32xbf16, #tpu.memory_space<vmem>>, vector<1x32x32xbf16>
    %31 = vector.shape_cast %30 : vector<1x32x32xbf16> to vector<32x32xbf16>
    %cst_30 = arith.constant dense<0.000000e+00> : vector<64x32xf32>
    %32 = tpu.matmul %29, %31, %cst_30 {dimension_numbers = #tpu.dot_dimension_numbers<[1], [0], [0], [1], [0, 0, 1, 1], [], []>} : vector<64x32xbf16>, vector<32x32xbf16>, vector<64x32xf32> -> vector<64x32xf32>
    %33 = arith.addf %28, %32 : vector<64x32xf32>
    %c4 = arith.constant 4 : index
    %c0_31 = arith.constant 0 : index
    %c0_32 = arith.constant 0 : index
    %34 = vector.load %arg4[%c4, %c0_31, %c0_32] : memref<40x32x32xbf16, #tpu.memory_space<vmem>>, vector<1x32x32xbf16>
    %35 = vector.shape_cast %34 : vector<1x32x32xbf16> to vector<32x32xbf16>
    %cst_33 = arith.constant dense<0.000000e+00> : vector<64x32xf32>
    %36 = tpu.matmul %9, %35, %cst_33 {dimension_numbers = #tpu.dot_dimension_numbers<[1], [0], [0], [1], [0, 0, 1, 1], [], []>} : vector<64x32xbf16>, vector<32x32xbf16>, vector<64x32xf32> -> vector<64x32xf32>
    %37 = arith.addf %33, %36 : vector<64x32xf32>
    %cst_34 = arith.constant 0.000000e+00 : f32
    %38 = vector.broadcast %cst_34 : f32 to vector<64x32xf32>
    %39 = arith.maximumf %37, %38 : vector<64x32xf32>
    %40 = arith.addf %8, %39 : vector<64x32xf32>
    %41 = arith.truncf %40 : vector<64x32xf32> to vector<64x32xbf16>
    %c256_35 = arith.constant 256 : index
    %c0_36 = arith.constant 0 : index
    %42 = vector.load %arg10[%c256_35, %c0_36] : memref<320x32xbf16, #tpu.memory_space<vmem>>, vector<64x32xbf16>
    tpu.vector_store %arg10[%c256_35, %c0_36], %41 {strides = array<i32>} : memref<320x32xbf16, #tpu.memory_space<vmem>>, vector<64x32xbf16>,
    %c1_37 = arith.constant 1 : index
    %c0_38 = arith.constant 0 : index
    %c0_39 = arith.constant 0 : index
    %43 = vector.load %arg5[%c1_37, %c0_38, %c0_39] : memref<8x1x32xf32, #tpu.memory_space<vmem>>, vector<1x1x32xf32>
    %44 = vector.shape_cast %43 : vector<1x1x32xf32> to vector<1x32xf32>
    %c128_40 = arith.constant 128 : index
    %c0_41 = arith.constant 0 : index
    %45 = vector.load %arg10[%c128_40, %c0_41] : memref<320x32xbf16, #tpu.memory_space<vmem>>, vector<64x32xbf16>
    %c5 = arith.constant 5 : index
    %c0_42 = arith.constant 0 : index
    %c0_43 = arith.constant 0 : index
    %46 = vector.load %arg4[%c5, %c0_42, %c0_43] : memref<40x32x32xbf16, #tpu.memory_space<vmem>>, vector<1x32x32xbf16>
    %47 = vector.shape_cast %46 : vector<1x32x32xbf16> to vector<32x32xbf16>
    %cst_44 = arith.constant dense<0.000000e+00> : vector<64x32xf32>
    %48 = tpu.matmul %45, %47, %cst_44 {dimension_numbers = #tpu.dot_dimension_numbers<[1], [0], [0], [1], [0, 0, 1, 1], [], []>} : vector<64x32xbf16>, vector<32x32xbf16>, vector<64x32xf32> -> vector<64x32xf32>
    %49 = vector.broadcast %44 : vector<1x32xf32> to vector<64x32xf32>
    %50 = arith.addf %49, %48 : vector<64x32xf32>
    %c192 = arith.constant 192 : index
    %c0_45 = arith.constant 0 : index
    %51 = vector.load %arg10[%c192, %c0_45] : memref<320x32xbf16, #tpu.memory_space<vmem>>, vector<64x32xbf16>
    %c6 = arith.constant 6 : index
    %c0_46 = arith.constant 0 : index
    %c0_47 = arith.constant 0 : index
    %52 = vector.load %arg4[%c6, %c0_46, %c0_47] : memref<40x32x32xbf16, #tpu.memory_space<vmem>>, vector<1x32x32xbf16>
    %53 = vector.shape_cast %52 : vector<1x32x32xbf16> to vector<32x32xbf16>
    %cst_48 = arith.constant dense<0.000000e+00> : vector<64x32xf32>
    %54 = tpu.matmul %51, %53, %cst_48 {dimension_numbers = #tpu.dot_dimension_numbers<[1], [0], [0], [1], [0, 0, 1, 1], [], []>} : vector<64x32xbf16>, vector<32x32xbf16>, vector<64x32xf32> -> vector<64x32xf32>
    %55 = arith.addf %50, %54 : vector<64x32xf32>
    %c252 = arith.constant 252 : index
    %c0_49 = arith.constant 0 : index
    %56 = vector.load %arg10[%c252, %c0_49] : memref<320x32xbf16, #tpu.memory_space<vmem>>, vector<64x32xbf16>
    %c7 = arith.constant 7 : index
    %c0_50 = arith.constant 0 : index
    %c0_51 = arith.constant 0 : index
    %57 = vector.load %arg4[%c7, %c0_50, %c0_51] : memref<40x32x32xbf16, #tpu.memory_space<vmem>>, vector<1x32x32xbf16>
    %58 = vector.shape_cast %57 : vector<1x32x32xbf16> to vector<32x32xbf16>
    %cst_52 = arith.constant dense<0.000000e+00> : vector<64x32xf32>
    %59 = tpu.matmul %56, %58, %cst_52 {dimension_numbers = #tpu.dot_dimension_numbers<[1], [0], [0], [1], [0, 0, 1, 1], [], []>} : vector<64x32xbf16>, vector<32x32xbf16>, vector<64x32xf32> -> vector<64x32xf32>
    %60 = arith.addf %55, %59 : vector<64x32xf32>
    %c254_53 = arith.constant 254 : index
    %c0_54 = arith.constant 0 : index
    %61 = vector.load %arg10[%c254_53, %c0_54] : memref<320x32xbf16, #tpu.memory_space<vmem>>, vector<64x32xbf16>
    %c8 = arith.constant 8 : index
    %c0_55 = arith.constant 0 : index
    %c0_56 = arith.constant 0 : index
    %62 = vector.load %arg4[%c8, %c0_55, %c0_56] : memref<40x32x32xbf16, #tpu.memory_space<vmem>>, vector<1x32x32xbf16>
    %63 = vector.shape_cast %62 : vector<1x32x32xbf16> to vector<32x32xbf16>
    %cst_57 = arith.constant dense<0.000000e+00> : vector<64x32xf32>
    %64 = tpu.matmul %61, %63, %cst_57 {dimension_numbers = #tpu.dot_dimension_numbers<[1], [0], [0], [1], [0, 0, 1, 1], [], []>} : vector<64x32xbf16>, vector<32x32xbf16>, vector<64x32xf32> -> vector<64x32xf32>
    %65 = arith.addf %60, %64 : vector<64x32xf32>
    %c9 = arith.constant 9 : index
    %c0_58 = arith.constant 0 : index
    %c0_59 = arith.constant 0 : index
    %66 = vector.load %arg4[%c9, %c0_58, %c0_59] : memref<40x32x32xbf16, #tpu.memory_space<vmem>>, vector<1x32x32xbf16>
    %67 = vector.shape_cast %66 : vector<1x32x32xbf16> to vector<32x32xbf16>
    %cst_60 = arith.constant dense<0.000000e+00> : vector<64x32xf32>
    %68 = tpu.matmul %41, %67, %cst_60 {dimension_numbers = #tpu.dot_dimension_numbers<[1], [0], [0], [1], [0, 0, 1, 1], [], []>} : vector<64x32xbf16>, vector<32x32xbf16>, vector<64x32xf32> -> vector<64x32xf32>
    %69 = arith.addf %65, %68 : vector<64x32xf32>
    %cst_61 = arith.constant 0.000000e+00 : f32
    %70 = vector.broadcast %cst_61 : f32 to vector<64x32xf32>
    %71 = arith.maximumf %69, %70 : vector<64x32xf32>
    %72 = arith.addf %40, %71 : vector<64x32xf32>
    %73 = arith.truncf %72 : vector<64x32xf32> to vector<64x32xbf16>
    %c256_62 = arith.constant 256 : index
    %c0_63 = arith.constant 0 : index
    %74 = vector.load %arg10[%c256_62, %c0_63] : memref<320x32xbf16, #tpu.memory_space<vmem>>, vector<64x32xbf16>
    tpu.vector_store %arg10[%c256_62, %c0_63], %73 {strides = array<i32>} : memref<320x32xbf16, #tpu.memory_space<vmem>>, vector<64x32xbf16>,
    %c2_64 = arith.constant 2 : index
    %c0_65 = arith.constant 0 : index
    %c0_66 = arith.constant 0 : index
    %75 = vector.load %arg5[%c2_64, %c0_65, %c0_66] : memref<8x1x32xf32, #tpu.memory_space<vmem>>, vector<1x1x32xf32>
    %76 = vector.shape_cast %75 : vector<1x1x32xf32> to vector<1x32xf32>
    %c192_67 = arith.constant 192 : index
    %c0_68 = arith.constant 0 : index
    %77 = vector.load %arg10[%c192_67, %c0_68] : memref<320x32xbf16, #tpu.memory_space<vmem>>, vector<64x32xbf16>
    %c10 = arith.constant 10 : index
    %c0_69 = arith.constant 0 : index
    %c0_70 = arith.constant 0 : index
    %78 = vector.load %arg4[%c10, %c0_69, %c0_70] : memref<40x32x32xbf16, #tpu.memory_space<vmem>>, vector<1x32x32xbf16>
    %79 = vector.shape_cast %78 : vector<1x32x32xbf16> to vector<32x32xbf16>
    %cst_71 = arith.constant dense<0.000000e+00> : vector<64x32xf32>
    %80 = tpu.matmul %77, %79, %cst_71 {dimension_numbers = #tpu.dot_dimension_numbers<[1], [0], [0], [1], [0, 0, 1, 1], [], []>} : vector<64x32xbf16>, vector<32x32xbf16>, vector<64x32xf32> -> vector<64x32xf32>
    %81 = vector.broadcast %76 : vector<1x32xf32> to vector<64x32xf32>
    %82 = arith.addf %81, %80 : vector<64x32xf32>
    %c224 = arith.constant 224 : index
    %c0_72 = arith.constant 0 : index
    %83 = vector.load %arg10[%c224, %c0_72] : memref<320x32xbf16, #tpu.memory_space<vmem>>, vector<64x32xbf16>
    %c11 = arith.constant 11 : index
    %c0_73 = arith.constant 0 : index
    %c0_74 = arith.constant 0 : index
    %84 = vector.load %arg4[%c11, %c0_73, %c0_74] : memref<40x32x32xbf16, #tpu.memory_space<vmem>>, vector<1x32x32xbf16>
    %85 = vector.shape_cast %84 : vector<1x32x32xbf16> to vector<32x32xbf16>
    %cst_75 = arith.constant dense<0.000000e+00> : vector<64x32xf32>
    %86 = tpu.matmul %83, %85, %cst_75 {dimension_numbers = #tpu.dot_dimension_numbers<[1], [0], [0], [1], [0, 0, 1, 1], [], []>} : vector<64x32xbf16>, vector<32x32xbf16>, vector<64x32xf32> -> vector<64x32xf32>
    %87 = arith.addf %82, %86 : vector<64x32xf32>
    %c248 = arith.constant 248 : index
    %c0_76 = arith.constant 0 : index
    %88 = vector.load %arg10[%c248, %c0_76] : memref<320x32xbf16, #tpu.memory_space<vmem>>, vector<64x32xbf16>
    %c12 = arith.constant 12 : index
    %c0_77 = arith.constant 0 : index
    %c0_78 = arith.constant 0 : index
    %89 = vector.load %arg4[%c12, %c0_77, %c0_78] : memref<40x32x32xbf16, #tpu.memory_space<vmem>>, vector<1x32x32xbf16>
    %90 = vector.shape_cast %89 : vector<1x32x32xbf16> to vector<32x32xbf16>
    %cst_79 = arith.constant dense<0.000000e+00> : vector<64x32xf32>
    %91 = tpu.matmul %88, %90, %cst_79 {dimension_numbers = #tpu.dot_dimension_numbers<[1], [0], [0], [1], [0, 0, 1, 1], [], []>} : vector<64x32xbf16>, vector<32x32xbf16>, vector<64x32xf32> -> vector<64x32xf32>
    %92 = arith.addf %87, %91 : vector<64x32xf32>
    %c252_80 = arith.constant 252 : index
    %c0_81 = arith.constant 0 : index
    %93 = vector.load %arg10[%c252_80, %c0_81] : memref<320x32xbf16, #tpu.memory_space<vmem>>, vector<64x32xbf16>
    %c13 = arith.constant 13 : index
    %c0_82 = arith.constant 0 : index
    %c0_83 = arith.constant 0 : index
    %94 = vector.load %arg4[%c13, %c0_82, %c0_83] : memref<40x32x32xbf16, #tpu.memory_space<vmem>>, vector<1x32x32xbf16>
    %95 = vector.shape_cast %94 : vector<1x32x32xbf16> to vector<32x32xbf16>
    %cst_84 = arith.constant dense<0.000000e+00> : vector<64x32xf32>
    %96 = tpu.matmul %93, %95, %cst_84 {dimension_numbers = #tpu.dot_dimension_numbers<[1], [0], [0], [1], [0, 0, 1, 1], [], []>} : vector<64x32xbf16>, vector<32x32xbf16>, vector<64x32xf32> -> vector<64x32xf32>
    %97 = arith.addf %92, %96 : vector<64x32xf32>
    %c14 = arith.constant 14 : index
    %c0_85 = arith.constant 0 : index
    %c0_86 = arith.constant 0 : index
    %98 = vector.load %arg4[%c14, %c0_85, %c0_86] : memref<40x32x32xbf16, #tpu.memory_space<vmem>>, vector<1x32x32xbf16>
    %99 = vector.shape_cast %98 : vector<1x32x32xbf16> to vector<32x32xbf16>
    %cst_87 = arith.constant dense<0.000000e+00> : vector<64x32xf32>
    %100 = tpu.matmul %73, %99, %cst_87 {dimension_numbers = #tpu.dot_dimension_numbers<[1], [0], [0], [1], [0, 0, 1, 1], [], []>} : vector<64x32xbf16>, vector<32x32xbf16>, vector<64x32xf32> -> vector<64x32xf32>
    %101 = arith.addf %97, %100 : vector<64x32xf32>
    %cst_88 = arith.constant 0.000000e+00 : f32
    %102 = vector.broadcast %cst_88 : f32 to vector<64x32xf32>
    %103 = arith.maximumf %101, %102 : vector<64x32xf32>
    %104 = arith.addf %72, %103 : vector<64x32xf32>
    %105 = arith.truncf %104 : vector<64x32xf32> to vector<64x32xbf16>
    %c256_89 = arith.constant 256 : index
    %c0_90 = arith.constant 0 : index
    %106 = vector.load %arg10[%c256_89, %c0_90] : memref<320x32xbf16, #tpu.memory_space<vmem>>, vector<64x32xbf16>
    tpu.vector_store %arg10[%c256_89, %c0_90], %105 {strides = array<i32>} : memref<320x32xbf16, #tpu.memory_space<vmem>>, vector<64x32xbf16>,
    %c3_91 = arith.constant 3 : index
    %c0_92 = arith.constant 0 : index
    %c0_93 = arith.constant 0 : index
    %107 = vector.load %arg5[%c3_91, %c0_92, %c0_93] : memref<8x1x32xf32, #tpu.memory_space<vmem>>, vector<1x1x32xf32>
    %108 = vector.shape_cast %107 : vector<1x1x32xf32> to vector<1x32xf32>
    %c224_94 = arith.constant 224 : index
    %c0_95 = arith.constant 0 : index
    %109 = vector.load %arg10[%c224_94, %c0_95] : memref<320x32xbf16, #tpu.memory_space<vmem>>, vector<64x32xbf16>
    %c15 = arith.constant 15 : index
    %c0_96 = arith.constant 0 : index
    %c0_97 = arith.constant 0 : index
    %110 = vector.load %arg4[%c15, %c0_96, %c0_97] : memref<40x32x32xbf16, #tpu.memory_space<vmem>>, vector<1x32x32xbf16>
    %111 = vector.shape_cast %110 : vector<1x32x32xbf16> to vector<32x32xbf16>
    %cst_98 = arith.constant dense<0.000000e+00> : vector<64x32xf32>
    %112 = tpu.matmul %109, %111, %cst_98 {dimension_numbers = #tpu.dot_dimension_numbers<[1], [0], [0], [1], [0, 0, 1, 1], [], []>} : vector<64x32xbf16>, vector<32x32xbf16>, vector<64x32xf32> -> vector<64x32xf32>
    %113 = vector.broadcast %108 : vector<1x32xf32> to vector<64x32xf32>
    %114 = arith.addf %113, %112 : vector<64x32xf32>
    %c240 = arith.constant 240 : index
    %c0_99 = arith.constant 0 : index
    %115 = vector.load %arg10[%c240, %c0_99] : memref<320x32xbf16, #tpu.memory_space<vmem>>, vector<64x32xbf16>
    %c16 = arith.constant 16 : index
    %c0_100 = arith.constant 0 : index
    %c0_101 = arith.constant 0 : index
    %116 = vector.load %arg4[%c16, %c0_100, %c0_101] : memref<40x32x32xbf16, #tpu.memory_space<vmem>>, vector<1x32x32xbf16>
    %117 = vector.shape_cast %116 : vector<1x32x32xbf16> to vector<32x32xbf16>
    %cst_102 = arith.constant dense<0.000000e+00> : vector<64x32xf32>
    %118 = tpu.matmul %115, %117, %cst_102 {dimension_numbers = #tpu.dot_dimension_numbers<[1], [0], [0], [1], [0, 0, 1, 1], [], []>} : vector<64x32xbf16>, vector<32x32xbf16>, vector<64x32xf32> -> vector<64x32xf32>
    %119 = arith.addf %114, %118 : vector<64x32xf32>
    %c240_103 = arith.constant 240 : index
    %c0_104 = arith.constant 0 : index
    %120 = vector.load %arg10[%c240_103, %c0_104] : memref<320x32xbf16, #tpu.memory_space<vmem>>, vector<64x32xbf16>
    %c17 = arith.constant 17 : index
    %c0_105 = arith.constant 0 : index
    %c0_106 = arith.constant 0 : index
    %121 = vector.load %arg4[%c17, %c0_105, %c0_106] : memref<40x32x32xbf16, #tpu.memory_space<vmem>>, vector<1x32x32xbf16>
    %122 = vector.shape_cast %121 : vector<1x32x32xbf16> to vector<32x32xbf16>
    %cst_107 = arith.constant dense<0.000000e+00> : vector<64x32xf32>
    %123 = tpu.matmul %120, %122, %cst_107 {dimension_numbers = #tpu.dot_dimension_numbers<[1], [0], [0], [1], [0, 0, 1, 1], [], []>} : vector<64x32xbf16>, vector<32x32xbf16>, vector<64x32xf32> -> vector<64x32xf32>
    %124 = arith.addf %119, %123 : vector<64x32xf32>
    %c248_108 = arith.constant 248 : index
    %c0_109 = arith.constant 0 : index
    %125 = vector.load %arg10[%c248_108, %c0_109] : memref<320x32xbf16, #tpu.memory_space<vmem>>, vector<64x32xbf16>
    %c18 = arith.constant 18 : index
    %c0_110 = arith.constant 0 : index
    %c0_111 = arith.constant 0 : index
    %126 = vector.load %arg4[%c18, %c0_110, %c0_111] : memref<40x32x32xbf16, #tpu.memory_space<vmem>>, vector<1x32x32xbf16>
    %127 = vector.shape_cast %126 : vector<1x32x32xbf16> to vector<32x32xbf16>
    %cst_112 = arith.constant dense<0.000000e+00> : vector<64x32xf32>
    %128 = tpu.matmul %125, %127, %cst_112 {dimension_numbers = #tpu.dot_dimension_numbers<[1], [0], [0], [1], [0, 0, 1, 1], [], []>} : vector<64x32xbf16>, vector<32x32xbf16>, vector<64x32xf32> -> vector<64x32xf32>
    %129 = arith.addf %124, %128 : vector<64x32xf32>
    %c19 = arith.constant 19 : index
    %c0_113 = arith.constant 0 : index
    %c0_114 = arith.constant 0 : index
    %130 = vector.load %arg4[%c19, %c0_113, %c0_114] : memref<40x32x32xbf16, #tpu.memory_space<vmem>>, vector<1x32x32xbf16>
    %131 = vector.shape_cast %130 : vector<1x32x32xbf16> to vector<32x32xbf16>
    %cst_115 = arith.constant dense<0.000000e+00> : vector<64x32xf32>
    %132 = tpu.matmul %105, %131, %cst_115 {dimension_numbers = #tpu.dot_dimension_numbers<[1], [0], [0], [1], [0, 0, 1, 1], [], []>} : vector<64x32xbf16>, vector<32x32xbf16>, vector<64x32xf32> -> vector<64x32xf32>
    %133 = arith.addf %129, %132 : vector<64x32xf32>
    %cst_116 = arith.constant 0.000000e+00 : f32
    %134 = vector.broadcast %cst_116 : f32 to vector<64x32xf32>
    %135 = arith.maximumf %133, %134 : vector<64x32xf32>
    %136 = arith.addf %104, %135 : vector<64x32xf32>
    %137 = arith.truncf %136 : vector<64x32xf32> to vector<64x32xbf16>
    %c256_117 = arith.constant 256 : index
    %c0_118 = arith.constant 0 : index
    %138 = vector.load %arg10[%c256_117, %c0_118] : memref<320x32xbf16, #tpu.memory_space<vmem>>, vector<64x32xbf16>
    tpu.vector_store %arg10[%c256_117, %c0_118], %137 {strides = array<i32>} : memref<320x32xbf16, #tpu.memory_space<vmem>>, vector<64x32xbf16>,
    %c4_119 = arith.constant 4 : index
    %c0_120 = arith.constant 0 : index
    %c0_121 = arith.constant 0 : index
    %139 = vector.load %arg5[%c4_119, %c0_120, %c0_121] : memref<8x1x32xf32, #tpu.memory_space<vmem>>, vector<1x1x32xf32>
    %140 = vector.shape_cast %139 : vector<1x1x32xf32> to vector<1x32xf32>
    %c240_122 = arith.constant 240 : index
    %c0_123 = arith.constant 0 : index
    %141 = vector.load %arg10[%c240_122, %c0_123] : memref<320x32xbf16, #tpu.memory_space<vmem>>, vector<64x32xbf16>
    %c20 = arith.constant 20 : index
    %c0_124 = arith.constant 0 : index
    %c0_125 = arith.constant 0 : index
    %142 = vector.load %arg4[%c20, %c0_124, %c0_125] : memref<40x32x32xbf16, #tpu.memory_space<vmem>>, vector<1x32x32xbf16>
    %143 = vector.shape_cast %142 : vector<1x32x32xbf16> to vector<32x32xbf16>
    %cst_126 = arith.constant dense<0.000000e+00> : vector<64x32xf32>
    %144 = tpu.matmul %141, %143, %cst_126 {dimension_numbers = #tpu.dot_dimension_numbers<[1], [0], [0], [1], [0, 0, 1, 1], [], []>} : vector<64x32xbf16>, vector<32x32xbf16>, vector<64x32xf32> -> vector<64x32xf32>
    %145 = vector.broadcast %140 : vector<1x32xf32> to vector<64x32xf32>
    %146 = arith.addf %145, %144 : vector<64x32xf32>
    %c248_127 = arith.constant 248 : index
    %c0_128 = arith.constant 0 : index
    %147 = vector.load %arg10[%c248_127, %c0_128] : memref<320x32xbf16, #tpu.memory_space<vmem>>, vector<64x32xbf16>
    %c21 = arith.constant 21 : index
    %c0_129 = arith.constant 0 : index
    %c0_130 = arith.constant 0 : index
    %148 = vector.load %arg4[%c21, %c0_129, %c0_130] : memref<40x32x32xbf16, #tpu.memory_space<vmem>>, vector<1x32x32xbf16>
    %149 = vector.shape_cast %148 : vector<1x32x32xbf16> to vector<32x32xbf16>
    %cst_131 = arith.constant dense<0.000000e+00> : vector<64x32xf32>
    %150 = tpu.matmul %147, %149, %cst_131 {dimension_numbers = #tpu.dot_dimension_numbers<[1], [0], [0], [1], [0, 0, 1, 1], [], []>} : vector<64x32xbf16>, vector<32x32xbf16>, vector<64x32xf32> -> vector<64x32xf32>
    %151 = arith.addf %146, %150 : vector<64x32xf32>
    %c224_132 = arith.constant 224 : index
    %c0_133 = arith.constant 0 : index
    %152 = vector.load %arg10[%c224_132, %c0_133] : memref<320x32xbf16, #tpu.memory_space<vmem>>, vector<64x32xbf16>
    %c22 = arith.constant 22 : index
    %c0_134 = arith.constant 0 : index
    %c0_135 = arith.constant 0 : index
    %153 = vector.load %arg4[%c22, %c0_134, %c0_135] : memref<40x32x32xbf16, #tpu.memory_space<vmem>>, vector<1x32x32xbf16>
    %154 = vector.shape_cast %153 : vector<1x32x32xbf16> to vector<32x32xbf16>
    %cst_136 = arith.constant dense<0.000000e+00> : vector<64x32xf32>
    %155 = tpu.matmul %152, %154, %cst_136 {dimension_numbers = #tpu.dot_dimension_numbers<[1], [0], [0], [1], [0, 0, 1, 1], [], []>} : vector<64x32xbf16>, vector<32x32xbf16>, vector<64x32xf32> -> vector<64x32xf32>
    %156 = arith.addf %151, %155 : vector<64x32xf32>
    %c240_137 = arith.constant 240 : index
    %c0_138 = arith.constant 0 : index
    %157 = vector.load %arg10[%c240_137, %c0_138] : memref<320x32xbf16, #tpu.memory_space<vmem>>, vector<64x32xbf16>
    %c23 = arith.constant 23 : index
    %c0_139 = arith.constant 0 : index
    %c0_140 = arith.constant 0 : index
    %158 = vector.load %arg4[%c23, %c0_139, %c0_140] : memref<40x32x32xbf16, #tpu.memory_space<vmem>>, vector<1x32x32xbf16>
    %159 = vector.shape_cast %158 : vector<1x32x32xbf16> to vector<32x32xbf16>
    %cst_141 = arith.constant dense<0.000000e+00> : vector<64x32xf32>
    %160 = tpu.matmul %157, %159, %cst_141 {dimension_numbers = #tpu.dot_dimension_numbers<[1], [0], [0], [1], [0, 0, 1, 1], [], []>} : vector<64x32xbf16>, vector<32x32xbf16>, vector<64x32xf32> -> vector<64x32xf32>
    %161 = arith.addf %156, %160 : vector<64x32xf32>
    %c24 = arith.constant 24 : index
    %c0_142 = arith.constant 0 : index
    %c0_143 = arith.constant 0 : index
    %162 = vector.load %arg4[%c24, %c0_142, %c0_143] : memref<40x32x32xbf16, #tpu.memory_space<vmem>>, vector<1x32x32xbf16>
    %163 = vector.shape_cast %162 : vector<1x32x32xbf16> to vector<32x32xbf16>
    %cst_144 = arith.constant dense<0.000000e+00> : vector<64x32xf32>
    %164 = tpu.matmul %137, %163, %cst_144 {dimension_numbers = #tpu.dot_dimension_numbers<[1], [0], [0], [1], [0, 0, 1, 1], [], []>} : vector<64x32xbf16>, vector<32x32xbf16>, vector<64x32xf32> -> vector<64x32xf32>
    %165 = arith.addf %161, %164 : vector<64x32xf32>
    %cst_145 = arith.constant 0.000000e+00 : f32
    %166 = vector.broadcast %cst_145 : f32 to vector<64x32xf32>
    %167 = arith.maximumf %165, %166 : vector<64x32xf32>
    %168 = arith.addf %136, %167 : vector<64x32xf32>
    %169 = arith.truncf %168 : vector<64x32xf32> to vector<64x32xbf16>
    %c0_146 = arith.constant 0 : index
    %c0_147 = arith.constant 0 : index
    %c0_148 = arith.constant 0 : index
    %170 = vector.load %arg6[%c0_146, %c0_147, %c0_148] : memref<2x32x128xbf16, #tpu.memory_space<vmem>>, vector<1x32x128xbf16>
    %171 = vector.shape_cast %170 : vector<1x32x128xbf16> to vector<32x128xbf16>
    %cst_149 = arith.constant dense<0.000000e+00> : vector<64x128xf32>
    %172 = tpu.matmul %169, %171, %cst_149 {dimension_numbers = #tpu.dot_dimension_numbers<[1], [0], [0], [1], [0, 0, 1, 1], [], []>} : vector<64x32xbf16>, vector<32x128xbf16>, vector<64x128xf32> -> vector<64x128xf32>
    %c0_150 = arith.constant 0 : index
    %c0_151 = arith.constant 0 : index
    %c0_152 = arith.constant 0 : index
    %173 = vector.load %arg7[%c0_150, %c0_151, %c0_152] : memref<2x1x128xf32, #tpu.memory_space<vmem>>, vector<1x1x128xf32>
    %174 = vector.shape_cast %173 : vector<1x1x128xf32> to vector<1x128xf32>
    %175 = vector.broadcast %174 : vector<1x128xf32> to vector<64x128xf32>
    %176 = arith.addf %172, %175 : vector<64x128xf32>
    %c0_153 = arith.constant 0 : index
    %c0_154 = arith.constant 0 : index
    %c0_155 = arith.constant 0 : index
    %177 = vector.load %arg8[%c0_153, %c0_154, %c0_155] : memref<1x64x128xf32, #tpu.memory_space<vmem>>, vector<1x64x128xf32>
    %178 = vector.shape_cast %177 : vector<1x64x128xf32> to vector<64x128xf32>
    %179 = vector.shape_cast %176 : vector<64x128xf32> to vector<1x64x128xf32>
    tpu.vector_store %arg8[%c0_153, %c0_154, %c0_155], %179 {strides = array<i32>} : memref<1x64x128xf32, #tpu.memory_space<vmem>>, vector<1x64x128xf32>,
    %180 = arith.truncf %168 : vector<64x32xf32> to vector<64x32xbf16>
    %c256_156 = arith.constant 256 : index
    %c0_157 = arith.constant 0 : index
    %181 = vector.load %arg10[%c256_156, %c0_157] : memref<320x32xbf16, #tpu.memory_space<vmem>>, vector<64x32xbf16>
    tpu.vector_store %arg10[%c256_156, %c0_157], %180 {strides = array<i32>} : memref<320x32xbf16, #tpu.memory_space<vmem>>, vector<64x32xbf16>,
    %c5_158 = arith.constant 5 : index
    %c0_159 = arith.constant 0 : index
    %c0_160 = arith.constant 0 : index
    %182 = vector.load %arg5[%c5_158, %c0_159, %c0_160] : memref<8x1x32xf32, #tpu.memory_space<vmem>>, vector<1x1x32xf32>
    %183 = vector.shape_cast %182 : vector<1x1x32xf32> to vector<1x32xf32>
    %c248_161 = arith.constant 248 : index
    %c0_162 = arith.constant 0 : index
    %184 = vector.load %arg10[%c248_161, %c0_162] : memref<320x32xbf16, #tpu.memory_space<vmem>>, vector<64x32xbf16>
    %c25 = arith.constant 25 : index
    %c0_163 = arith.constant 0 : index
    %c0_164 = arith.constant 0 : index
    %185 = vector.load %arg4[%c25, %c0_163, %c0_164] : memref<40x32x32xbf16, #tpu.memory_space<vmem>>, vector<1x32x32xbf16>
    %186 = vector.shape_cast %185 : vector<1x32x32xbf16> to vector<32x32xbf16>
    %cst_165 = arith.constant dense<0.000000e+00> : vector<64x32xf32>
    %187 = tpu.matmul %184, %186, %cst_165 {dimension_numbers = #tpu.dot_dimension_numbers<[1], [0], [0], [1], [0, 0, 1, 1], [], []>} : vector<64x32xbf16>, vector<32x32xbf16>, vector<64x32xf32> -> vector<64x32xf32>
    %188 = vector.broadcast %183 : vector<1x32xf32> to vector<64x32xf32>
    %189 = arith.addf %188, %187 : vector<64x32xf32>
    %c252_166 = arith.constant 252 : index
    %c0_167 = arith.constant 0 : index
    %190 = vector.load %arg10[%c252_166, %c0_167] : memref<320x32xbf16, #tpu.memory_space<vmem>>, vector<64x32xbf16>
    %c26 = arith.constant 26 : index
    %c0_168 = arith.constant 0 : index
    %c0_169 = arith.constant 0 : index
    %191 = vector.load %arg4[%c26, %c0_168, %c0_169] : memref<40x32x32xbf16, #tpu.memory_space<vmem>>, vector<1x32x32xbf16>
    %192 = vector.shape_cast %191 : vector<1x32x32xbf16> to vector<32x32xbf16>
    %cst_170 = arith.constant dense<0.000000e+00> : vector<64x32xf32>
    %193 = tpu.matmul %190, %192, %cst_170 {dimension_numbers = #tpu.dot_dimension_numbers<[1], [0], [0], [1], [0, 0, 1, 1], [], []>} : vector<64x32xbf16>, vector<32x32xbf16>, vector<64x32xf32> -> vector<64x32xf32>
    %194 = arith.addf %189, %193 : vector<64x32xf32>
    %c192_171 = arith.constant 192 : index
    %c0_172 = arith.constant 0 : index
    %195 = vector.load %arg10[%c192_171, %c0_172] : memref<320x32xbf16, #tpu.memory_space<vmem>>, vector<64x32xbf16>
    %c27 = arith.constant 27 : index
    %c0_173 = arith.constant 0 : index
    %c0_174 = arith.constant 0 : index
    %196 = vector.load %arg4[%c27, %c0_173, %c0_174] : memref<40x32x32xbf16, #tpu.memory_space<vmem>>, vector<1x32x32xbf16>
    %197 = vector.shape_cast %196 : vector<1x32x32xbf16> to vector<32x32xbf16>
    %cst_175 = arith.constant dense<0.000000e+00> : vector<64x32xf32>
    %198 = tpu.matmul %195, %197, %cst_175 {dimension_numbers = #tpu.dot_dimension_numbers<[1], [0], [0], [1], [0, 0, 1, 1], [], []>} : vector<64x32xbf16>, vector<32x32xbf16>, vector<64x32xf32> -> vector<64x32xf32>
    %199 = arith.addf %194, %198 : vector<64x32xf32>
    %c224_176 = arith.constant 224 : index
    %c0_177 = arith.constant 0 : index
    %200 = vector.load %arg10[%c224_176, %c0_177] : memref<320x32xbf16, #tpu.memory_space<vmem>>, vector<64x32xbf16>
    %c28 = arith.constant 28 : index
    %c0_178 = arith.constant 0 : index
    %c0_179 = arith.constant 0 : index
    %201 = vector.load %arg4[%c28, %c0_178, %c0_179] : memref<40x32x32xbf16, #tpu.memory_space<vmem>>, vector<1x32x32xbf16>
    %202 = vector.shape_cast %201 : vector<1x32x32xbf16> to vector<32x32xbf16>
    %cst_180 = arith.constant dense<0.000000e+00> : vector<64x32xf32>
    %203 = tpu.matmul %200, %202, %cst_180 {dimension_numbers = #tpu.dot_dimension_numbers<[1], [0], [0], [1], [0, 0, 1, 1], [], []>} : vector<64x32xbf16>, vector<32x32xbf16>, vector<64x32xf32> -> vector<64x32xf32>
    %204 = arith.addf %199, %203 : vector<64x32xf32>
    %c29 = arith.constant 29 : index
    %c0_181 = arith.constant 0 : index
    %c0_182 = arith.constant 0 : index
    %205 = vector.load %arg4[%c29, %c0_181, %c0_182] : memref<40x32x32xbf16, #tpu.memory_space<vmem>>, vector<1x32x32xbf16>
    %206 = vector.shape_cast %205 : vector<1x32x32xbf16> to vector<32x32xbf16>
    %cst_183 = arith.constant dense<0.000000e+00> : vector<64x32xf32>
    %207 = tpu.matmul %180, %206, %cst_183 {dimension_numbers = #tpu.dot_dimension_numbers<[1], [0], [0], [1], [0, 0, 1, 1], [], []>} : vector<64x32xbf16>, vector<32x32xbf16>, vector<64x32xf32> -> vector<64x32xf32>
    %208 = arith.addf %204, %207 : vector<64x32xf32>
    %cst_184 = arith.constant 0.000000e+00 : f32
    %209 = vector.broadcast %cst_184 : f32 to vector<64x32xf32>
    %210 = arith.maximumf %208, %209 : vector<64x32xf32>
    %211 = arith.addf %168, %210 : vector<64x32xf32>
    %212 = arith.truncf %211 : vector<64x32xf32> to vector<64x32xbf16>
    %c256_185 = arith.constant 256 : index
    %c0_186 = arith.constant 0 : index
    %213 = vector.load %arg10[%c256_185, %c0_186] : memref<320x32xbf16, #tpu.memory_space<vmem>>, vector<64x32xbf16>
    tpu.vector_store %arg10[%c256_185, %c0_186], %212 {strides = array<i32>} : memref<320x32xbf16, #tpu.memory_space<vmem>>, vector<64x32xbf16>,
    %c6_187 = arith.constant 6 : index
    %c0_188 = arith.constant 0 : index
    %c0_189 = arith.constant 0 : index
    %214 = vector.load %arg5[%c6_187, %c0_188, %c0_189] : memref<8x1x32xf32, #tpu.memory_space<vmem>>, vector<1x1x32xf32>
    %215 = vector.shape_cast %214 : vector<1x1x32xf32> to vector<1x32xf32>
    %c252_190 = arith.constant 252 : index
    %c0_191 = arith.constant 0 : index
    %216 = vector.load %arg10[%c252_190, %c0_191] : memref<320x32xbf16, #tpu.memory_space<vmem>>, vector<64x32xbf16>
    %c30 = arith.constant 30 : index
    %c0_192 = arith.constant 0 : index
    %c0_193 = arith.constant 0 : index
    %217 = vector.load %arg4[%c30, %c0_192, %c0_193] : memref<40x32x32xbf16, #tpu.memory_space<vmem>>, vector<1x32x32xbf16>
    %218 = vector.shape_cast %217 : vector<1x32x32xbf16> to vector<32x32xbf16>
    %cst_194 = arith.constant dense<0.000000e+00> : vector<64x32xf32>
    %219 = tpu.matmul %216, %218, %cst_194 {dimension_numbers = #tpu.dot_dimension_numbers<[1], [0], [0], [1], [0, 0, 1, 1], [], []>} : vector<64x32xbf16>, vector<32x32xbf16>, vector<64x32xf32> -> vector<64x32xf32>
    %220 = vector.broadcast %215 : vector<1x32xf32> to vector<64x32xf32>
    %221 = arith.addf %220, %219 : vector<64x32xf32>
    %c254_195 = arith.constant 254 : index
    %c0_196 = arith.constant 0 : index
    %222 = vector.load %arg10[%c254_195, %c0_196] : memref<320x32xbf16, #tpu.memory_space<vmem>>, vector<64x32xbf16>
    %c31 = arith.constant 31 : index
    %c0_197 = arith.constant 0 : index
    %c0_198 = arith.constant 0 : index
    %223 = vector.load %arg4[%c31, %c0_197, %c0_198] : memref<40x32x32xbf16, #tpu.memory_space<vmem>>, vector<1x32x32xbf16>
    %224 = vector.shape_cast %223 : vector<1x32x32xbf16> to vector<32x32xbf16>
    %cst_199 = arith.constant dense<0.000000e+00> : vector<64x32xf32>
    %225 = tpu.matmul %222, %224, %cst_199 {dimension_numbers = #tpu.dot_dimension_numbers<[1], [0], [0], [1], [0, 0, 1, 1], [], []>} : vector<64x32xbf16>, vector<32x32xbf16>, vector<64x32xf32> -> vector<64x32xf32>
    %226 = arith.addf %221, %225 : vector<64x32xf32>
    %c128_200 = arith.constant 128 : index
    %c0_201 = arith.constant 0 : index
    %227 = vector.load %arg10[%c128_200, %c0_201] : memref<320x32xbf16, #tpu.memory_space<vmem>>, vector<64x32xbf16>
    %c32 = arith.constant 32 : index
    %c0_202 = arith.constant 0 : index
    %c0_203 = arith.constant 0 : index
    %228 = vector.load %arg4[%c32, %c0_202, %c0_203] : memref<40x32x32xbf16, #tpu.memory_space<vmem>>, vector<1x32x32xbf16>
    %229 = vector.shape_cast %228 : vector<1x32x32xbf16> to vector<32x32xbf16>
    %cst_204 = arith.constant dense<0.000000e+00> : vector<64x32xf32>
    %230 = tpu.matmul %227, %229, %cst_204 {dimension_numbers = #tpu.dot_dimension_numbers<[1], [0], [0], [1], [0, 0, 1, 1], [], []>} : vector<64x32xbf16>, vector<32x32xbf16>, vector<64x32xf32> -> vector<64x32xf32>
    %231 = arith.addf %226, %230 : vector<64x32xf32>
    %c192_205 = arith.constant 192 : index
    %c0_206 = arith.constant 0 : index
    %232 = vector.load %arg10[%c192_205, %c0_206] : memref<320x32xbf16, #tpu.memory_space<vmem>>, vector<64x32xbf16>
    %c33 = arith.constant 33 : index
    %c0_207 = arith.constant 0 : index
    %c0_208 = arith.constant 0 : index
    %233 = vector.load %arg4[%c33, %c0_207, %c0_208] : memref<40x32x32xbf16, #tpu.memory_space<vmem>>, vector<1x32x32xbf16>
    %234 = vector.shape_cast %233 : vector<1x32x32xbf16> to vector<32x32xbf16>
    %cst_209 = arith.constant dense<0.000000e+00> : vector<64x32xf32>
    %235 = tpu.matmul %232, %234, %cst_209 {dimension_numbers = #tpu.dot_dimension_numbers<[1], [0], [0], [1], [0, 0, 1, 1], [], []>} : vector<64x32xbf16>, vector<32x32xbf16>, vector<64x32xf32> -> vector<64x32xf32>
    %236 = arith.addf %231, %235 : vector<64x32xf32>
    %c34 = arith.constant 34 : index
    %c0_210 = arith.constant 0 : index
    %c0_211 = arith.constant 0 : index
    %237 = vector.load %arg4[%c34, %c0_210, %c0_211] : memref<40x32x32xbf16, #tpu.memory_space<vmem>>, vector<1x32x32xbf16>
    %238 = vector.shape_cast %237 : vector<1x32x32xbf16> to vector<32x32xbf16>
    %cst_212 = arith.constant dense<0.000000e+00> : vector<64x32xf32>
    %239 = tpu.matmul %212, %238, %cst_212 {dimension_numbers = #tpu.dot_dimension_numbers<[1], [0], [0], [1], [0, 0, 1, 1], [], []>} : vector<64x32xbf16>, vector<32x32xbf16>, vector<64x32xf32> -> vector<64x32xf32>
    %240 = arith.addf %236, %239 : vector<64x32xf32>
    %cst_213 = arith.constant 0.000000e+00 : f32
    %241 = vector.broadcast %cst_213 : f32 to vector<64x32xf32>
    %242 = arith.maximumf %240, %241 : vector<64x32xf32>
    %243 = arith.addf %211, %242 : vector<64x32xf32>
    %244 = arith.truncf %243 : vector<64x32xf32> to vector<64x32xbf16>
    %c256_214 = arith.constant 256 : index
    %c0_215 = arith.constant 0 : index
    %245 = vector.load %arg10[%c256_214, %c0_215] : memref<320x32xbf16, #tpu.memory_space<vmem>>, vector<64x32xbf16>
    tpu.vector_store %arg10[%c256_214, %c0_215], %244 {strides = array<i32>} : memref<320x32xbf16, #tpu.memory_space<vmem>>, vector<64x32xbf16>,
    %c7_216 = arith.constant 7 : index
    %c0_217 = arith.constant 0 : index
    %c0_218 = arith.constant 0 : index
    %246 = vector.load %arg5[%c7_216, %c0_217, %c0_218] : memref<8x1x32xf32, #tpu.memory_space<vmem>>, vector<1x1x32xf32>
    %247 = vector.shape_cast %246 : vector<1x1x32xf32> to vector<1x32xf32>
    %c254_219 = arith.constant 254 : index
    %c0_220 = arith.constant 0 : index
    %248 = vector.load %arg10[%c254_219, %c0_220] : memref<320x32xbf16, #tpu.memory_space<vmem>>, vector<64x32xbf16>
    %c35 = arith.constant 35 : index
    %c0_221 = arith.constant 0 : index
    %c0_222 = arith.constant 0 : index
    %249 = vector.load %arg4[%c35, %c0_221, %c0_222] : memref<40x32x32xbf16, #tpu.memory_space<vmem>>, vector<1x32x32xbf16>
    %250 = vector.shape_cast %249 : vector<1x32x32xbf16> to vector<32x32xbf16>
    %cst_223 = arith.constant dense<0.000000e+00> : vector<64x32xf32>
    %251 = tpu.matmul %248, %250, %cst_223 {dimension_numbers = #tpu.dot_dimension_numbers<[1], [0], [0], [1], [0, 0, 1, 1], [], []>} : vector<64x32xbf16>, vector<32x32xbf16>, vector<64x32xf32> -> vector<64x32xf32>
    %252 = vector.broadcast %247 : vector<1x32xf32> to vector<64x32xf32>
    %253 = arith.addf %252, %251 : vector<64x32xf32>
    %c255_224 = arith.constant 255 : index
    %c0_225 = arith.constant 0 : index
    %254 = vector.load %arg10[%c255_224, %c0_225] : memref<320x32xbf16, #tpu.memory_space<vmem>>, vector<64x32xbf16>
    %c36 = arith.constant 36 : index
    %c0_226 = arith.constant 0 : index
    %c0_227 = arith.constant 0 : index
    %255 = vector.load %arg4[%c36, %c0_226, %c0_227] : memref<40x32x32xbf16, #tpu.memory_space<vmem>>, vector<1x32x32xbf16>
    %256 = vector.shape_cast %255 : vector<1x32x32xbf16> to vector<32x32xbf16>
    %cst_228 = arith.constant dense<0.000000e+00> : vector<64x32xf32>
    %257 = tpu.matmul %254, %256, %cst_228 {dimension_numbers = #tpu.dot_dimension_numbers<[1], [0], [0], [1], [0, 0, 1, 1], [], []>} : vector<64x32xbf16>, vector<32x32xbf16>, vector<64x32xf32> -> vector<64x32xf32>
    %258 = arith.addf %253, %257 : vector<64x32xf32>
    %c0_229 = arith.constant 0 : index
    %c0_230 = arith.constant 0 : index
    %259 = vector.load %arg10[%c0_229, %c0_230] : memref<320x32xbf16, #tpu.memory_space<vmem>>, vector<64x32xbf16>
    %c37 = arith.constant 37 : index
    %c0_231 = arith.constant 0 : index
    %c0_232 = arith.constant 0 : index
    %260 = vector.load %arg4[%c37, %c0_231, %c0_232] : memref<40x32x32xbf16, #tpu.memory_space<vmem>>, vector<1x32x32xbf16>
    %261 = vector.shape_cast %260 : vector<1x32x32xbf16> to vector<32x32xbf16>
    %cst_233 = arith.constant dense<0.000000e+00> : vector<64x32xf32>
    %262 = tpu.matmul %259, %261, %cst_233 {dimension_numbers = #tpu.dot_dimension_numbers<[1], [0], [0], [1], [0, 0, 1, 1], [], []>} : vector<64x32xbf16>, vector<32x32xbf16>, vector<64x32xf32> -> vector<64x32xf32>
    %263 = arith.addf %258, %262 : vector<64x32xf32>
    %c128_234 = arith.constant 128 : index
    %c0_235 = arith.constant 0 : index
    %264 = vector.load %arg10[%c128_234, %c0_235] : memref<320x32xbf16, #tpu.memory_space<vmem>>, vector<64x32xbf16>
    %c38 = arith.constant 38 : index
    %c0_236 = arith.constant 0 : index
    %c0_237 = arith.constant 0 : index
    %265 = vector.load %arg4[%c38, %c0_236, %c0_237] : memref<40x32x32xbf16, #tpu.memory_space<vmem>>, vector<1x32x32xbf16>
    %266 = vector.shape_cast %265 : vector<1x32x32xbf16> to vector<32x32xbf16>
    %cst_238 = arith.constant dense<0.000000e+00> : vector<64x32xf32>
    %267 = tpu.matmul %264, %266, %cst_238 {dimension_numbers = #tpu.dot_dimension_numbers<[1], [0], [0], [1], [0, 0, 1, 1], [], []>} : vector<64x32xbf16>, vector<32x32xbf16>, vector<64x32xf32> -> vector<64x32xf32>
    %268 = arith.addf %263, %267 : vector<64x32xf32>
    %c39 = arith.constant 39 : index
    %c0_239 = arith.constant 0 : index
    %c0_240 = arith.constant 0 : index
    %269 = vector.load %arg4[%c39, %c0_239, %c0_240] : memref<40x32x32xbf16, #tpu.memory_space<vmem>>, vector<1x32x32xbf16>
    %270 = vector.shape_cast %269 : vector<1x32x32xbf16> to vector<32x32xbf16>
    %cst_241 = arith.constant dense<0.000000e+00> : vector<64x32xf32>
    %271 = tpu.matmul %244, %270, %cst_241 {dimension_numbers = #tpu.dot_dimension_numbers<[1], [0], [0], [1], [0, 0, 1, 1], [], []>} : vector<64x32xbf16>, vector<32x32xbf16>, vector<64x32xf32> -> vector<64x32xf32>
    %272 = arith.addf %268, %271 : vector<64x32xf32>
    %cst_242 = arith.constant 0.000000e+00 : f32
    %273 = vector.broadcast %cst_242 : f32 to vector<64x32xf32>
    %274 = arith.maximumf %272, %273 : vector<64x32xf32>
    %275 = arith.addf %243, %274 : vector<64x32xf32>
    %276 = arith.truncf %275 : vector<64x32xf32> to vector<64x32xbf16>
    %c1_243 = arith.constant 1 : index
    %c0_244 = arith.constant 0 : index
    %c0_245 = arith.constant 0 : index
    %277 = vector.load %arg6[%c1_243, %c0_244, %c0_245] : memref<2x32x128xbf16, #tpu.memory_space<vmem>>, vector<1x32x128xbf16>
    %278 = vector.shape_cast %277 : vector<1x32x128xbf16> to vector<32x128xbf16>
    %cst_246 = arith.constant dense<0.000000e+00> : vector<64x128xf32>
    %279 = tpu.matmul %276, %278, %cst_246 {dimension_numbers = #tpu.dot_dimension_numbers<[1], [0], [0], [1], [0, 0, 1, 1], [], []>} : vector<64x32xbf16>, vector<32x128xbf16>, vector<64x128xf32> -> vector<64x128xf32>
    %c1_247 = arith.constant 1 : index
    %c0_248 = arith.constant 0 : index
    %c0_249 = arith.constant 0 : index
    %280 = vector.load %arg7[%c1_247, %c0_248, %c0_249] : memref<2x1x128xf32, #tpu.memory_space<vmem>>, vector<1x1x128xf32>
    %281 = vector.shape_cast %280 : vector<1x1x128xf32> to vector<1x128xf32>
    %282 = vector.broadcast %281 : vector<1x128xf32> to vector<64x128xf32>
    %283 = arith.addf %279, %282 : vector<64x128xf32>
    %c0_250 = arith.constant 0 : index
    %c0_251 = arith.constant 0 : index
    %c0_252 = arith.constant 0 : index
    %284 = vector.load %arg9[%c0_250, %c0_251, %c0_252] : memref<1x64x128xf32, #tpu.memory_space<vmem>>, vector<1x64x128xf32>
    %285 = vector.shape_cast %284 : vector<1x64x128xf32> to vector<64x128xf32>
    %286 = vector.shape_cast %283 : vector<64x128xf32> to vector<1x64x128xf32>
    tpu.vector_store %arg9[%c0_250, %c0_251, %c0_252], %286 {strides = array<i32>} : memref<1x64x128xf32, #tpu.memory_space<vmem>>, vector<1x64x128xf32>,
    return
  }
  func.func @transform_0(%arg0: i32) -> (i32, i32, i32) {
    %c0_i32 = arith.constant 0 : i32
    %c0_i32_0 = arith.constant 0 : i32
    %c0_i32_1 = arith.constant 0 : i32
    return %arg0, %c0_i32, %c0_i32_0 : i32, i32, i32
  }
  func.func @transform_1(%arg0: i32) -> (i32, i32) {
    %c0_i32 = arith.constant 0 : i32
    %c0_i32_0 = arith.constant 0 : i32
    %c0_i32_1 = arith.constant 0 : i32
    return %c0_i32, %c0_i32_0 : i32, i32
  }
  func.func @transform_2(%arg0: i32) -> (i32, i32) {
    %c0_i32 = arith.constant 0 : i32
    %c0_i32_0 = arith.constant 0 : i32
    %c0_i32_1 = arith.constant 0 : i32
    return %c0_i32, %c0_i32_0 : i32, i32
  }
  func.func @transform_3(%arg0: i32) -> (i32, i32, i32) {
    %c0_i32 = arith.constant 0 : i32
    %c0_i32_0 = arith.constant 0 : i32
    %c0_i32_1 = arith.constant 0 : i32
    %c0_i32_2 = arith.constant 0 : i32
    return %c0_i32, %c0_i32_0, %c0_i32_1 : i32, i32, i32
  }
  func.func @transform_4(%arg0: i32) -> (i32, i32, i32) {
    %c0_i32 = arith.constant 0 : i32
    %c0_i32_0 = arith.constant 0 : i32
    %c0_i32_1 = arith.constant 0 : i32
    %c0_i32_2 = arith.constant 0 : i32
    return %c0_i32, %c0_i32_0, %c0_i32_1 : i32, i32, i32
  }
  func.func @transform_5(%arg0: i32) -> (i32, i32, i32) {
    %c0_i32 = arith.constant 0 : i32
    %c0_i32_0 = arith.constant 0 : i32
    %c0_i32_1 = arith.constant 0 : i32
    %c0_i32_2 = arith.constant 0 : i32
    return %c0_i32, %c0_i32_0, %c0_i32_1 : i32, i32, i32
  }
  func.func @transform_6(%arg0: i32) -> (i32, i32, i32) {
    %c0_i32 = arith.constant 0 : i32
    %c0_i32_0 = arith.constant 0 : i32
    %c0_i32_1 = arith.constant 0 : i32
    %c0_i32_2 = arith.constant 0 : i32
    return %c0_i32, %c0_i32_0, %c0_i32_1 : i32, i32, i32
  }
  func.func @transform_7(%arg0: i32) -> (i32, i32, i32) {
    %c0_i32 = arith.constant 0 : i32
    %c0_i32_0 = arith.constant 0 : i32
    %c0_i32_1 = arith.constant 0 : i32
    return %arg0, %c0_i32, %c0_i32_0 : i32, i32, i32
  }
  func.func @transform_8(%arg0: i32) -> (i32, i32, i32) {
    %c0_i32 = arith.constant 0 : i32
    %c0_i32_0 = arith.constant 0 : i32
    %c0_i32_1 = arith.constant 0 : i32
    return %arg0, %c0_i32, %c0_i32_0 : i32, i32, i32
  }
}

</mosaic_0001>

<bundles_post_ra>
// kernel: tpu_custom_call.1
= control target key start
LH: loop header
LB: loop body
LE: loop exit
PB: predicated region body
PF: predicated region fallthrough
CT: control target
= control target key end

     0   :  { %s8692_s0 = inlined_call_operand.hbm [shape: bf16[2,64,16], index: 0, kind: input, shape index: {}]   ;;  %s8693_s1 = inlined_call_operand.hbm [shape: bf16[16,32], index: 1, kind: input, shape index: {}]   ;;  %s8694_s2 = inlined_call_operand.hbm [shape: f32[1,32], index: 2, kind: input, shape index: {}]   ;;  %s8695_s3 = inlined_call_operand.hbm [shape: bf16[40,32,32], index: 3, kind: input, shape index: {}]   ;;  %s8696_s4 = inlined_call_operand.hbm [shape: f32[8,1,32], index: 4, kind: input, shape index: {}]   ;;  %s8697_s5 = inlined_call_operand.hbm [shape: bf16[2,32,128], index: 5, kind: input, shape index: {}]   ;;  %s8698_s6 = inlined_call_operand.hbm [shape: f32[2,1,128], index: 6, kind: input, shape index: {}]   ;;  %s8699_s7 = inlined_call_operand.hbm [shape: f32[2,64,128], index: 7, kind: output, shape index: {0}]   ;;  %s8700_s8 = inlined_call_operand.hbm [shape: f32[2,64,128], index: 8, kind: output, shape index: {1}]  }
   0x1   :  { %8705 = sst [smem:[#allocation24_spill]] %s8693_s1 }
   0x2   :  { %14 = vsyncpa [#allocation4], 0 }
   0x3   :  { %16 = vsyncpa [#allocation4 + $0x1], 0 }
   0x4   :  { %17 = vsyncpa [#allocation7], 0 }
   0x5   :  { %18 = vsyncpa [#allocation10], 0 }
   0x6   :  { %19 = vsyncpa [#allocation13], 0 }
   0x7   :  { %20 = vsyncpa [#allocation5], 0 }
   0x8   :  { %22 = vsyncpa [#allocation5 + $0x1], 0 }
   0x9   :  { %23 = vsyncpa [#allocation17], 0 }
   0xa   :  { %25 = vsyncpa [#allocation17 + $0x1], 0  ;;  %s7599_s27 = smov 0   ;;  %s7601_s28 = smov 0  }
   0xb   :  { %s7603_s29 = smov 0   ;;  %s7605_s30 = smov 0  }
   0xc LB: > { %s7538_s9 = smov [#allocation6]   ;;  %s7620_s11 = sadd.s32 4294967295, %s7536_s30   ;;  %s7536_s30 = sphi %s7605_s30, %s8730_s30   ;;  %s7532_s29 = sphi %s7603_s29, %s8729_s29   ;;  %s7528_s28 = sphi %s7601_s28, %s8728_s28   ;;  %s7524_s27 = sphi %s7599_s27, %s8727_s27  }
   0xd   : > { %s252_s10 = sshll.u32 %s7538_s9, 4  ;;  %p5623_p0 = scmp.ge.s32.totalorder %s7536_s30, 1  ;;  %s7625_s10 = int_to_ptr.vmem [resolvable:$true] %s252_s10 }
   0xe   : > { %p8701_p1 = scmp.eq.s32.totalorder %s7620_s11, 0  ;;  %p240_p2 = scmp.lt.s32.totalorder %s7536_s30, 3 }
   0xf   : > { %s7539_s13 = smov [#allocation9]   ;;  %s7540_s16 = smov [#allocation12]  }
  0x10   : > { %p7627_p3 = pnand %p5623_p0, %p240_p2  ;;  %s276_s14 = sshll.u32 %s7539_s13, 4  ;;  %s7640_s14 = int_to_ptr.vmem [resolvable:$true] %s276_s14 }
  0x11   : > { %s302_s17 = sshll.u32 %s7540_s16, 4  ;;  %s8708_s1 = sld [smem:[#allocation24_spill]]  ;;  %s7642_s17 = int_to_ptr.vmem [resolvable:$true] %s302_s17 }
  0x12   : > { %s8706_s12 = scalar_select %p7627_p3, 1, 0 }
  0x13   : > { %p7050_p5 = pneg %p7627_p3 }
  0x15   : > { %p7636_p6 = pnand %p7050_p5, %p8701_p1 }
  0x17   : > { %s7228_s20 = scalar_lea.hbm %s8708_s1, 128  ;;  %p7652_p8 = pneg %p7636_p6 }
  0x18   : > { %p7229_p7 = scmp.ne.s32.totalorder %s8708_s1, %s7228_s20  ;;  %p7235_p11 = scmp.lt.u32.totalorder %s7228_s20, %s8708_s1 }
  0x1a   : > { %p7231_p9 = pnand %p7652_p8, %p7229_p7 }
  0x1c   : > { %p7232_p10 = pneg %p7231_p9 }
  0x1e   : > { %p7237_p12 = pnand %p7235_p11, %p7232_p10 }
  0x20   : > { %7240 = shalt.err (!%p7237_p12)
}
  0x21   : > { %s7241_s26 = scalar_lea.vmem %s7625_s10, 128  ;;  %p7249_p5 = scmp.lt.s32.totalorder %s7625_s10, %s7625_s10 }
  0x22   : > { %p7242_p13 = scmp.ne.s32.totalorder %s7625_s10, %s7241_s26  ;;  %p7250_p4 = scmp.lt.s32.totalorder %s7241_s26, %s7241_s26 }
  0x24   : > { %p7244_p0 = pnand %p7242_p13, %p7652_p8  ;;  %p7251_p7 = por %p7250_p4, %p7249_p5 }
  0x26   : > { %p7245_p2 = pneg %p7244_p0 }
  0x28   : > { %p7252_p9 = pnand %p7251_p7, %p7245_p2 }
  0x2a   : > { %7255 = shalt.err (!%p7252_p9)
}
  0x2b   : > { %s8703_s9 = smov 64   ;;  %s7542_s13 = smov 4  }
  0x2c   : > { %7053 = dma.hbm_to_vmem [thread:$0]  (!%p7636_p6), %s8708_s1, 128, %s7625_s10, [#allocation7], %s8703_s9, %s8703_s9, %s7542_s13  }
  0x2d   : > { %s7256_s21 = scalar_lea.hbm %s8695_s3, 10240 }
  0x2e   : > { %p7257_p4 = scmp.ne.s32.totalorder %s8695_s3, %s7256_s21  ;;  %p7263_p12 = scmp.lt.u32.totalorder %s7256_s21, %s8695_s3 }
  0x30   : > { %p7259_p10 = pnand %p7257_p4, %p7652_p8 }
  0x32   : > { %p7260_p11 = pneg %p7259_p10 }
  0x34   : > { %p7265_p13 = pnand %p7263_p12, %p7260_p11 }
  0x36   : > { %7268 = shalt.err (!%p7265_p13)
}
  0x37   : > { %s7269_s10 = scalar_lea.vmem %s7640_s14, 10240  ;;  %p7277_p7 = scmp.lt.s32.totalorder %s7640_s14, %s7640_s14 }
  0x38   : > { %p7270_p0 = scmp.ne.s32.totalorder %s7640_s14, %s7269_s10  ;;  %p7278_p9 = scmp.lt.s32.totalorder %s7269_s10, %s7269_s10 }
  0x3a   : > { %p7272_p2 = pnand %p7270_p0, %p7652_p8  ;;  %p7279_p4 = por %p7278_p9, %p7277_p7 }
  0x3c   : > { %p7273_p5 = pneg %p7272_p2 }
  0x3e   : > { %p7280_p10 = pnand %p7279_p4, %p7273_p5 }
  0x40   : > { %7283 = shalt.err (!%p7280_p10)
}
  0x41   : > { %7059 = dma.hbm_to_vmem [thread:$0]  (!%p7636_p6), %s8695_s3, 10240, %s7640_s14, [#allocation10], %s8703_s9, %s8703_s9, %s7542_s13  }
  0x42   : > { %s7284_s21 = scalar_lea.hbm %s8697_s5, 512 }
  0x43   : > { %p7285_p11 = scmp.ne.s32.totalorder %s8697_s5, %s7284_s21  ;;  %p7291_p0 = scmp.lt.u32.totalorder %s7284_s21, %s8697_s5 }
  0x45   : > { %p7287_p12 = pnand %p7285_p11, %p7652_p8 }
  0x47   : > { %p7288_p13 = pneg %p7287_p12 }
  0x49   : > { %p7293_p2 = pnand %p7291_p0, %p7288_p13 }
  0x4b   : > { %7296 = shalt.err (!%p7293_p2)
}
  0x4c   : > { %s7297_s14 = scalar_lea.vmem %s7642_s17, 512  ;;  %p7305_p4 = scmp.lt.s32.totalorder %s7642_s17, %s7642_s17 }
  0x4d   : > { %p7298_p5 = scmp.ne.s32.totalorder %s7642_s17, %s7297_s14  ;;  %p7306_p10 = scmp.lt.s32.totalorder %s7297_s14, %s7297_s14 }
  0x4f   : > { %p7300_p7 = pnand %p7298_p5, %p7652_p8  ;;  %p7307_p11 = por %p7306_p10, %p7305_p4 }
  0x51   : > { %p7301_p9 = pneg %p7300_p7 }
  0x53   : > { %p7308_p12 = pnand %p7307_p11, %p7301_p9 }
  0x55   : > { %7311 = shalt.err (!%p7308_p12)
}
  0x56   : > { %7065 = dma.hbm_to_vmem [thread:$0]  (!%p7636_p6), %s8697_s5, 512, %s7642_s17, [#allocation13], %s8703_s9, %s8703_s9, %s7542_s13  }
  0x57   : > { %s7543_s18 = smov [#allocation8]   ;;  %s7544_s20 = smov [#allocation11]  }
  0x58   : > { %s266_s19 = sshll.u32 %s7543_s18, 4  ;;  %s289_s21 = sshll.u32 %s7544_s20, 4  ;;  %s267_s19 = int_to_ptr.vmem [resolvable:$true] %s266_s19  ;;  %s290_s21 = int_to_ptr.vmem [resolvable:$true] %s289_s21 }
  0x59   : > { %s7312_s25 = scalar_lea.hbm %s8694_s2, 16 }
  0x5a   : > { %p7313_p13 = scmp.ne.s32.totalorder %s8694_s2, %s7312_s25  ;;  %p7319_p5 = scmp.lt.u32.totalorder %s7312_s25, %s8694_s2 }
  0x5c   : > { %p7315_p0 = pnand %p7313_p13, %p7652_p8 }
  0x5e   : > { %p7316_p2 = pneg %p7315_p0 }
  0x60   : > { %p7321_p7 = pnand %p7319_p5, %p7316_p2 }
  0x62   : > { %7324 = shalt.err (!%p7321_p7)
}
  0x63   : > { %s7325_s17 = scalar_lea.vmem %s267_s19, 16  ;;  %s7332_s16 = scalar_lea.vmem %s267_s19, 32 }
  0x64   : > { %p7326_p9 = scmp.ne.s32.totalorder %s267_s19, %s7325_s17  ;;  %p7333_p11 = scmp.lt.s32.totalorder %s267_s19, %s267_s19 }
  0x65   : > { %p7334_p12 = scmp.lt.s32.totalorder %s7332_s16, %s7325_s17 }
  0x66   : > { %p7328_p4 = pnand %p7326_p9, %p7652_p8 }
  0x67   : > { %p7335_p1 = por %p7334_p12, %p7333_p11 }
  0x68   : > { %p7329_p10 = pneg %p7328_p4 }
  0x6a   : > { %p7336_p3 = pnand %p7335_p1, %p7329_p10 }
  0x6c   : > { %7339 = shalt.err (!%p7336_p3)
}
  0x6d   : > { %7056 = dma.hbm_to_vmem [thread:$0]  (!%p7636_p6), %s8694_s2, 16, %s267_s19, [#allocation7]  }
  0x6e   : > { %s7340_s24 = scalar_lea.hbm %s8696_s4, 128 }
  0x6f   : > { %p7341_p13 = scmp.ne.s32.totalorder %s8696_s4, %s7340_s24  ;;  %p7347_p3 = scmp.lt.u32.totalorder %s7340_s24, %s8696_s4 }
  0x71   : > { %p7343_p0 = pnand %p7341_p13, %p7652_p8 }
  0x73   : > { %p7344_p1 = pneg %p7343_p0 }
  0x75   : > { %p7349_p2 = pnand %p7347_p3, %p7344_p1 }
  0x77   : > { %7352 = shalt.err (!%p7349_p2)
}
  0x78   : > { %s7353_s17 = scalar_lea.vmem %s290_s21, 128  ;;  %p7361_p4 = scmp.lt.s32.totalorder %s290_s21, %s290_s21 }
  0x79   : > { %p7354_p5 = scmp.ne.s32.totalorder %s290_s21, %s7353_s17  ;;  %p7362_p10 = scmp.lt.s32.totalorder %s7353_s17, %s7353_s17 }
  0x7b   : > { %p7356_p7 = pnand %p7354_p5, %p7652_p8  ;;  %p7363_p11 = por %p7362_p10, %p7361_p4 }
  0x7d   : > { %p7357_p9 = pneg %p7356_p7 }
  0x7f   : > { %p7364_p12 = pnand %p7363_p11, %p7357_p9 }
  0x81   : > { %7367 = shalt.err (!%p7364_p12)
}
  0x82   : > { %s7545_s19 = smov 16   ;;  %s7546_s16 = smov 1  }
  0x83   : > { %7062 = dma.hbm_to_vmem [thread:$0]  (!%p7636_p6), %s8696_s4, 128, %s290_s21, [#allocation10], %s7545_s19, %s7545_s19, %s7546_s16  }
  0x84   : > { %s7547_s1 = smov [#allocation14]   ;;  %s7368_s26 = scalar_lea.hbm %s8698_s6, 32 }
  0x85   : > { %s315_s22 = sshll.u32 %s7547_s1, 4  ;;  %p7369_p13 = scmp.ne.s32.totalorder %s8698_s6, %s7368_s26  ;;  %s316_s22 = int_to_ptr.vmem [resolvable:$true] %s315_s22 }
  0x86   : > { %p7375_p3 = scmp.lt.u32.totalorder %s7368_s26, %s8698_s6 }
  0x87   : > { %p7371_p0 = pnand %p7369_p13, %p7652_p8 }
  0x89   : > { %p7372_p1 = pneg %p7371_p0 }
  0x8b   : > { %p7377_p2 = pnand %p7375_p3, %p7372_p1 }
  0x8d   : > { %7380 = shalt.err (!%p7377_p2)
}
  0x8e   : > { %s7381_s21 = scalar_lea.vmem %s316_s22, 32  ;;  %p7389_p4 = scmp.lt.s32.totalorder %s316_s22, %s316_s22 }
  0x8f   : > { %p7382_p5 = scmp.ne.s32.totalorder %s316_s22, %s7381_s21  ;;  %p7390_p10 = scmp.lt.s32.totalorder %s7381_s21, %s7381_s21 }
  0x91   : > { %p7384_p7 = pnand %p7382_p5, %p7652_p8  ;;  %p7391_p11 = por %p7390_p10, %p7389_p4 }
  0x93   : > { %p7385_p9 = pneg %p7384_p7 }
  0x95   : > { %p7392_p12 = pnand %p7391_p11, %p7385_p9 }
  0x97   : > { %7395 = shalt.err (!%p7392_p12)
}
  0x98   : > { %7068 = dma.hbm_to_vmem [thread:$0]  (!%p7636_p6), %s8698_s6, 32, %s316_s22, [#allocation13], %s7545_s19, %s7545_s19, %s7546_s16  }
  0x99   : > { %s5622_s23 = sadd.s32 4294967294, %s7536_s30   ;;  %s7784_s15 = sadd.s32 1, %s7536_s30  }
  0x9a   : > { %s35_s9 = ssub.s32 %s7536_s30, %s7784_s15  ;;  %s38_s1 = sadd.s32 1, %s7532_s29 }
  0x9b   : > { %p36_p8 = scmp.eq.s32.totalorder %s35_s9, 0  ;;  %p45_p13 = scmp.ne.s32.totalorder %s7532_s29, %s7528_s28 }
  0x9c   : > { %p46_p0 = scmp.eq.s32.totalorder %s7536_s30, 0  ;;  %p51_p1 = scmp.ne.s32.totalorder %s7528_s28, %s7524_s27 }
  0x9d   : > { %s7795_s24 = scalar_select %p36_p8, %s7532_s29, %s38_s1  }
  0x9e   : > { %p7797_p3 = por %p46_p0, %p45_p13  ;;  %p8711_p2 = scmp.eq.s32.totalorder %s7620_s11, 0 }
  0x9f   : > { %p201_p5 = scmp.eq.s32.totalorder %s7620_s11, 1  ;;  %p207_p7 = scmp.eq.s32.totalorder %s5622_s23, 1 }
  0xa0   : > { %p7803_p6 = por %p8711_p2, %p51_p1  ;;  %p7086_p9 = scmp.lt.s32.totalorder %s7536_s30, 2 }
  0xa1   : > { %s329_s16 = sand.u32 1, %s7532_s29   ;;  %p7810_p4 = por %p201_p5, %p45_p13 }
  0xa2   : > { %p7814_p10 = por %p207_p7, %p51_p1  ;;  %s5631_s14 = sshll.u32 %s329_s16, 5 }
  0xa3   : > { %s8713_s22 = scalar_select %p7810_p4, 1, 0 }
  0xa4   : > { %s8714_s26 = scalar_select %p7814_p10, 1, 0 }
  0xa5   : > { %s5924_s10 = sshll.u32 %s7536_s30, 9  ;;  %s333_s20 = scalar_lea.vmem [#allocation3], %s5631_s14 }
  0xa6   : > { %s7822_s18 = scalar_lea.hbm %s8692_s0, %s5924_s10  ;;  %s340_s23 = sshll.u32 %s333_s20, 4  ;;  %s7824_s23 = int_to_ptr.vmem [resolvable:$true] %s340_s23 }
  0xa7   : > { %p7828_p11 = pnand %p7086_p9, %p7797_p3  ;;  %s7832_s1 = scalar_lea.sflag [#allocation4], %s329_s16 }
  0xa8   : > { %s7396_s17 = scalar_lea.hbm %s7822_s18, 512  ;;  %s7401_s25 = scalar_lea.hbm %s8692_s0, 1024 }
  0xa9   : > { %p7397_p12 = scmp.ne.s32.totalorder %s7822_s18, %s7396_s17  ;;  %p7398_p8 = pneg %p7828_p11 }
  0xaa   : > { %p7402_p1 = scmp.lt.u32.totalorder %s7822_s18, %s8692_s0  ;;  %p7403_p3 = scmp.lt.u32.totalorder %s7401_s25, %s7396_s17 }
  0xab   : > { %p7399_p13 = pnand %p7398_p8, %p7397_p12  ;;  %p7405_p5 = scmp.lt.u32.totalorder %s7396_s17, %s7822_s18 }
  0xac   : > { %p7404_p2 = por %p7403_p3, %p7402_p1 }
  0xad   : > { %p7400_p0 = pneg %p7399_p13 }
  0xae   : > { %p7406_p7 = por %p7405_p5, %p7404_p2 }
  0xb0   : > { %p7407_p9 = pnand %p7406_p7, %p7400_p0 }
  0xb2   : > { %7410 = shalt.err (!%p7407_p9)
}
  0xb3   : > { %s7411_s16 = scalar_lea.vmem %s7824_s23, 512  ;;  %s7548_s14 = smov [#allocation3]  }
  0xb4   : > { %p7412_p12 = scmp.ne.s32.totalorder %s7824_s23, %s7411_s16  ;;  %s7416_s10 = sshll.u32 %s7548_s14, 4  ;;  %s7417_s10 = int_to_ptr.vmem [resolvable:$false] %s7416_s10 }
  0xb5   : > { %s7418_s21 = scalar_lea.vmem %s7417_s10, 1024  ;;  %p7419_p4 = scmp.lt.s32.totalorder %s7824_s23, %s7417_s10 }
  0xb6   : > { %p7414_p13 = pnand %p7412_p12, %p7398_p8  ;;  %p7420_p1 = scmp.lt.s32.totalorder %s7418_s21, %s7411_s16 }
  0xb8   : > { %p7415_p10 = pneg %p7414_p13  ;;  %p7421_p3 = por %p7420_p1, %p7419_p4 }
  0xba   : > { %p7422_p2 = pnand %p7421_p3, %p7415_p10 }
  0xbc   : > { %7425 = shalt.err (!%p7422_p2)
}
  0xbd   : > { %s8716_s17 = smov 64   ;;  %p8717_p8 = scmp.ne.s32.totalorder %s8706_s12, 0 }
  0xbe   : > { %7072 = dma.hbm_to_vmem [thread:$0]  (!%p7828_p11), %s7822_s18, 512, %s7824_s23, %s7832_s1, %s8716_s17, %s8716_s17, %s7542_s13  }
  0xbf   : > { %352 = sbr.rel (%p8717_p8) target bundleno = 2964 (0xb94), region = 48  ;;  %s7866_s25 = sand.u32 (!%p8717_p8), 1, %s7528_s28  }
  0xc0   : > { %s5635_s20 = sshll.u32 (!%p8717_p8), %s7866_s25, 5  ;;  %s355_s16 = scalar_lea.sflag (!%p8717_p8), [#allocation4], %s7866_s25 }
  0xc1   : > { %s7870_s14 = scalar_lea.vmem (!%p8717_p8), [#allocation3], %s5635_s20 }
  0xc6   : > { %7499 = dma.done.wait (%p7803_p6), %s355_s16, 512  }
  0xc7   : > { %7501 = vsyncadd (%p7803_p6), %s355_s16, 4294966784  ;;  %p8718_p4 = scmp.eq.s32.totalorder %s7620_s11, 0 }
  0xc9   : > { %7503 = dma.done.wait (%p8718_p4), [#allocation7], 144   ;;  %p8719_p10 = pmov %p8718_p4 }
  0xca   : > { %p8720_p11 = pmov %p8718_p4 }
  0xcb   : > { %7505 = vsyncadd (%p8719_p10), [#allocation7], 4294967152 }
  0xcc   : > { %7507 = dma.done.wait (%p8720_p11), [#allocation10], 10368   ;;  %p8721_p0 = pmov %p8718_p4 }
  0xce   : > { %7509 = vsyncadd (%p8721_p0), [#allocation10], 4294956928  ;;  %p8722_p5 = pmov %p8721_p0 }
  0xcf   : > { %p8723_p7 = pmov %p8721_p0 }
  0xd0   : > { %7511 = dma.done.wait (%p8722_p5), [#allocation13], 544  }
  0xd1   : > { %7513 = vsyncadd (%p8723_p7), [#allocation13], 4294966752  ;;  %vm421_vm0 = vcmask 261120   ;;  %v7549_v0 = vmov 0   ;;  %v7139_v1 = vld [vmem:[#allocation6] sm:$0xff]   ;;  %vm481_vm1 = vcmask 130048  }
  0xd2   : > { %422 = vst.msk [vmem:[#allocation2] sm:$0xff] %vm421_vm0, %v7549_v0  ;;  %423 = vst.msk [vmem:[#allocation2 + $0x8] sm:$0xff] %vm421_vm0, %v7549_v0  ;;  %v7140_v2 = vld [vmem:[%s7870_s14] sm:$0xff]   ;;  %6184 = vmatprep.subr.bf16.mxu0 %v7139_v1  ;;  %6698 = vmatprep.subr.bf16.mxu1 %v7139_v1  ;;  %v7141_v3 = vld [vmem:[%s7870_s14 + $0x10] sm:$0xff]   ;;  %vm800_vm2 = vcmask 1040384   ;;  %vm1408_vm4 = vcmask 1041408  }
  0xd3   : > { %424 = vst.msk [vmem:[#allocation2 + $0x10] sm:$0xff] %vm421_vm0, %v7549_v0  ;;  %425 = vst.msk [vmem:[#allocation2 + $0x18] sm:$0xff] %vm421_vm0, %v7549_v0  ;;  %6185 = vmatpush3.bf16.msra.mxu0 %v7139_v1  ;;  %6699 = vmatpush3.bf16.msra.mxu1 %v7139_v1  ;;  %v7142_v4 = vld [vmem:[%s7870_s14 + $0x8] sm:$0xff]   ;;  %v7143_v5 = vld [vmem:[%s7870_s14 + $0x18] sm:$0xff]   ;;  %vm913_vm3 = vsmask.f32 256 }
  0xd4   : > { %430 = vst.msk [vmem:[#allocation2 + $0x40] sm:$0xff] %vm421_vm0, %v7549_v0  ;;  %431 = vst.msk [vmem:[#allocation2 + $0x48] sm:$0xff] %vm421_vm0, %v7549_v0  ;;  %6186 = vmatprep.mubr.msk.bf16.mxu0 %vm481_vm1, %v7140_v2  ;;  %6190 = vmatprep.mubr.msk.bf16.mxu1 %vm481_vm1, %v7141_v3  ;;  %v7144_v6 = vld [vmem:[#allocation9] sm:$0xff]   ;;  %v7145_v7 = vld [vmem:[#allocation9 + $0x8] sm:$0xff]   ;;  %vm1991_vm5 = vcmask 1043456   ;;  %s5642_s12 = sshll.u32 %s7866_s25, 6 }
  0xd5   : > { %432 = vst.msk [vmem:[#allocation2 + $0x50] sm:$0xff] %vm421_vm0, %v7549_v0  ;;  %433 = vst.msk [vmem:[#allocation2 + $0x58] sm:$0xff] %vm421_vm0, %v7549_v0  ;;  %6194 = vmatprep.subr.bf16.mxu1 %v7144_v6  ;;  %v7146_v9 = vld [vmem:[#allocation9 + $0x10] sm:$0xff]   ;;  %v7147_v12 = vld [vmem:[#allocation9 + $0x18] sm:$0xff]   ;;  %s8395_s13 = scalar_lea.vmem [#allocation15], %s5642_s12  ;;  %s5925_s18 = sshll.u32 %s7620_s11, 10 }
  0xd6   : > { %434 = vst.msk [vmem:[#allocation2 + $0x60] sm:$0xff] %vm421_vm0, %v7549_v0  ;;  %435 = vst.msk [vmem:[#allocation2 + $0x68] sm:$0xff] %vm421_vm0, %v7549_v0  ;;  %6187 = vmatmul.mubr.msk.bf16.vlgmr.msra.gmra.mrb[0].mxu0 %vm481_vm1, %v7142_v4  ;;  %6191 = vmatmul.mubr.msk.bf16.vlgmr.msra.gmra.mrb[0].mxu1 %vm481_vm1, %v7143_v5  ;;  %v7148_v16 = vld [vmem:[#allocation9 + $0x20] sm:$0xff]   ;;  %v7149_v18 = vld [vmem:[#allocation9 + $0x28] sm:$0xff]   ;;  %s5444_s19 = sshll.u32 %s8395_s13, 4  ;;  %s8607_s1 = scalar_lea.hbm %s8699_s7, %s5925_s18  ;;  %s8599_s19 = int_to_ptr.vmem [resolvable:$true] %s5444_s19 }
  0xd7   : > { %436 = vst.msk [vmem:[#allocation2 + $0x70] sm:$0xff] %vm421_vm0, %v7549_v0  ;;  %437 = vst.msk [vmem:[#allocation2 + $0x78] sm:$0xff] %vm421_vm0, %v7549_v0  ;;  %6195 = vmatpush3.bf16.msra.mxu1 %v7144_v6  ;;  %v7150_v20 = vld [vmem:[#allocation9 + $0x30] sm:$0xff]   ;;  %v7155_v22 = vld [vmem:[#allocation9 + $0x58] sm:$0xff]   ;;  %s5426_s10 = scalar_lea.sflag [#allocation5], %s7866_s25  ;;  %s7426_s21 = scalar_lea.vmem %s8599_s19, 1024 }
  0xd8   : > { %6196 = vmatprep.subr.bf16.mxu1 %v7145_v7  ;;  %v7154_v21 = vld [vmem:[#allocation9 + $0x50] sm:$0xff]   ;;  %v7156_v23 = vld [vmem:[#allocation9 + $0x60] sm:$0xff]   ;;  %v7157_v24 = vld [vmem:[#allocation9 + $0x68] sm:$0xff]   ;;  %p7427_p6 = scmp.ne.s32.totalorder %s8599_s19, %s7426_s21  ;;  %p8724_p9 = scmp.ne.s32.totalorder %s8713_s22, 0 }
  0xd9   : > { %v568_v8 = vld [vmem:[#allocation2] sm:$0xff]  ;;  %v569_v10 = vld [vmem:[#allocation2 + $0x8] sm:$0xff]  ;;  %6254 = vmatprep.subr.bf16.mxu0 %v7154_v21  ;;  %s7550_s17 = smov [#allocation15]  }
  0xda   : > { %6198 = vmatprep.mubr.msk.bf16.mxu1 %vm421_vm0, %v568_v8  ;;  %v570_v11 = vld [vmem:[#allocation2 + $0x10] sm:$0xff]  ;;  %v571_v13 = vld [vmem:[#allocation2 + $0x18] sm:$0xff]  ;;  %6255 = vmatpush3.bf16.msra.mxu0 %v7154_v21  ;;  %v5644_v26 = vld [vmem:[#allocation8] ss:$0 sm:$0xff]  ;;  %p7428_p12 = pnand %p7427_p6, %p8724_p9  ;;  %s7430_s20 = sshll.u32 %s7550_s17, 4  ;;  %s7431_s20 = int_to_ptr.vmem [resolvable:$false] %s7430_s20 }
  0xdb   : > { %6197 = vmatpush3.bf16.msra.mxu1 %v7145_v7  ;;  %v679_v14 = vld [vmem:[#allocation2 + $0x40] sm:$0xff]  ;;  %v680_v15 = vld [vmem:[#allocation2 + $0x48] sm:$0xff]  ;;  %6256 = vmatprep.subr.bf16.mxu0 %v7155_v22  ;;  %s7432_s16 = scalar_lea.vmem %s7431_s20, 2048  ;;  %p7433_p1 = scmp.lt.s32.totalorder %s8599_s19, %s7431_s20 }
  0xdc   : > { %6206 = vmatprep.subr.bf16.mxu1 %v7146_v9  ;;  %6258 = vmatprep.mubr.msk.bf16.mxu0 %vm421_vm0, %v679_v14  ;;  %v681_v17 = vld [vmem:[#allocation2 + $0x50] sm:$0xff]  ;;  %v682_v19 = vld [vmem:[#allocation2 + $0x58] sm:$0xff]  ;;  %v7151_v57 = vld [vmem:[#allocation9 + $0x38] sm:$0xff]   ;;  %p7429_p13 = pneg %p7428_p12  ;;  %p7434_p3 = scmp.lt.s32.totalorder %s7432_s16, %s7426_s21 }
  0xdd   : > { %v7152_v63 = vld [vmem:[#allocation9 + $0x40] sm:$0xff]  }
  0xde   : > { %6199 = vmatmul.mubr.msk.bf16.vlgmr.msra.gmra.mrb[4].mxu1 %vm421_vm0, %v569_v10  ;;  %6257 = vmatpush3.bf16.msra.mxu0 %v7155_v22  ;;  %v785_v46 = vld [vmem:[#allocation2 + $0x78] sm:$0x80]  ;;  %v1287_v22 = vld [vmem:[#allocation2 + $0x60] sm:$0xff]  ;;  %p7435_p2 = por %p7434_p3, %p7433_p1 }
  0xdf   : > { %6207 = vmatpush3.bf16.msra.mxu1 %v7146_v9  ;;  %6202 = vmatprep.mubr.msk.bf16.mxu1 %vm421_vm0, %v570_v11  ;;  %v801_v47 = vrot.slane %v785_v46, 7  ;;  %v915_v60 = vshrl.u32 %v785_v46, 16 }
  0xe0   : > { %6208 = vmatprep.subr.bf16.mxu1 %v7147_v12  ;;  %6266 = vmatprep.subr.bf16.mxu0 %v7156_v23  ;;  %p7436_p8 = pnand %p7435_p2, %p7429_p13 }
  0xe1   : > { %6259 = vmatmul.mubr.msk.bf16.vlgmr.msra.gmra.mrb[4].mxu0 %vm421_vm0, %v680_v15  ;;  %v917_v2 = vrot.slane %v915_v60, 7 }
  0xe2   : > { %6267 = vmatpush3.bf16.msra.mxu0 %v7156_v23  ;;  %6262 = vmatprep.mubr.msk.bf16.mxu0 %vm421_vm0, %v681_v17  ;;  %v1288_v23 = vld [vmem:[#allocation2 + $0x68] sm:$0xff] }
  0xe3   : > { %6209 = vmatpush3.bf16.msra.mxu1 %v7147_v12  ;;  %6268 = vmatprep.subr.bf16.mxu0 %v7157_v24 }
  0xe4   : > { %6218 = vmatprep.subr.bf16.mxu1 %v7148_v16 }
  0xe6   : > { %6203 = vmatmul.mubr.msk.bf16.gmra.mrb[8].mxu1 %vm421_vm0, %v571_v13  ;;  %6269 = vmatpush3.bf16.msra.mxu0 %v7157_v24  ;;  %v7158_v24 = vld [vmem:[#allocation9 + $0x70] sm:$0xff]  }
  0xe7   : > { %6210 = vmatprep.mubr.msk.bf16.mxu1 %vm421_vm0, %v679_v14  ;;  %6278 = vmatprep.subr.bf16.mxu0 %v7158_v24 }
  0xe9   : > { %6263 = vmatmul.mubr.msk.bf16.gmra.mrb[8].mxu0 %vm421_vm0, %v682_v19 }
  0xea   : > { %6270 = vmatprep.mubr.msk.bf16.mxu0 %vm421_vm0, %v1287_v22 }
  0xee   : > { %6211 = vmatmul.mubr.msk.bf16.vlgmr.msra.gmra.mrb[4].mxu1 %vm421_vm0, %v680_v15  ;;  %v7153_v15 = vld [vmem:[#allocation9 + $0x48] sm:$0xff]  }
  0xef   : > { %6214 = vmatprep.mubr.msk.bf16.mxu1 %vm421_vm0, %v681_v17  ;;  %6219 = vmatpush3.bf16.msra.mxu1 %v7148_v16 }
  0xf0   : > { %6220 = vmatprep.subr.bf16.mxu1 %v7149_v18 }
  0xf1   : > { %6271 = vmatmul.mubr.msk.bf16.vlgmr.msra.gmra.mrb[4].mxu0 %vm421_vm0, %v1288_v23 }
  0xf2   : > { %6279 = vmatpush3.bf16.msra.mxu0 %v7158_v24 }
  0xf3   : > { %6221 = vmatpush3.bf16.msra.mxu1 %v7149_v18 }
  0xf4   : > { %6230 = vmatprep.subr.bf16.mxu1 %v7150_v20 }
  0xf6   : > { %6215 = vmatmul.mubr.msk.bf16.gmra.mrb[8].mxu1 %vm421_vm0, %v682_v19 }
 0x1a9   : > { %v6188_v25 = vpop.f32.mrb[0].mxu0  ;;  %v6192_v27 = vpop.f32.mrb[0].mxu1 }
 0x1aa   : > { %v7916_v28 = vadd.f32 %v6192_v27, %v5644_v26  ;;  %v528_v29 = vpop.f32.mrb[1].mxu0  ;;  %v544_v30 = vpop.f32.mrb[1].mxu1  ;;  %v7920_v34 = vadd.f32 %v6188_v25, %v5644_v26  ;;  %v7983_v25 = vld [vmem:[#allocation2 + $0x70] sm:$0xff]  ;;  %v7159_v27 = vld [vmem:[#allocation9 + $0x78] sm:$0xff]  }
 0x1ab   : > { %v7918_v31 = vadd.f32 %v5644_v26, %v544_v30  ;;  %v6189_v32 = vpop.f32.mrb[2].mxu0  ;;  %v6193_v33 = vpop.f32.mrb[2].mxu1  ;;  %v7926_v39 = vadd.f32 %v5644_v26, %v528_v29  ;;  %6274 = vmatprep.mubr.msk.bf16.mxu0 %vm421_vm0, %v7983_v25  ;;  %6280 = vmatprep.subr.bf16.mxu0 %v7159_v27  ;;  %v7991_v29 = vld [vmem:[#allocation9 + $0x80] sm:$0xff]  }
 0x1ac   : > { %v7922_v35 = vadd.f32 %v6189_v32, %v5644_v26  ;;  %v7924_v36 = vadd.f32 %v6193_v33, %v5644_v26  ;;  %v531_v37 = vpop.f32.mrb[3].mxu0  ;;  %v547_v38 = vpop.f32.mrb[3].mxu1  ;;  %6281 = vmatpush3.bf16.msra.mxu0 %v7159_v27  ;;  %v7164_v30 = vld [vmem:[#allocation9 + $0xa0] sm:$0xff]   ;;  %v7165_v32 = vld [vmem:[#allocation9 + $0xa8] sm:$0xff]   ;;  %v7166_v33 = vld [vmem:[#allocation9 + $0xb0] sm:$0xff]  }
 0x1ad   : > { %v7928_v40 = vadd.f32 %v5644_v26, %v531_v37  ;;  %v7930_v41 = vadd.f32 %v5644_v26, %v547_v38  ;;  %v7987_v26 = vld [vmem:[#allocation2 + $0x78] sm:$0xff]  ;;  %6290 = vmatprep.subr.bf16.mxu0 %v7991_v29  ;;  %v5660_v37 = vld [vmem:[#allocation11] ss:$0 sm:$0xff] }
 0x1ae   : > { %v7934_v42 = vpack.c.bf16 %v7922_v35, %v7920_v34  ;;  %v7938_v43 = vpack.c.bf16 %v7924_v36, %v7916_v28  ;;  %6275 = vmatmul.mubr.msk.bf16.gmra.mrb[8].mxu0 %vm421_vm0, %v7987_v26 }
 0x1af   : > { %v7942_v44 = vpack.c.bf16 %v7928_v40, %v7926_v39  ;;  %v7946_v45 = vpack.c.bf16 %v7930_v41, %v7918_v31 }
 0x1b0   : > { %564 = vst.msk [vmem:[#allocation2 + $0x88] sm:$0xff] %vm421_vm0, %v7934_v42  ;;  %566 = vst.msk [vmem:[#allocation2 + $0x98] sm:$0xff] %vm421_vm0, %v7938_v43 }
 0x1b1   : > { %563 = vst.msk [vmem:[#allocation2 + $0x80] sm:$0xff] %vm421_vm0, %v7942_v44  ;;  %565 = vst.msk [vmem:[#allocation2 + $0x90] sm:$0xff] %vm421_vm0, %v7946_v45 }
 0x1b7   : > { %v787_v48 = vld [vmem:[#allocation2 + $0x88] sm:$0xff]  ;;  %v789_v59 = vld [vmem:[#allocation2 + $0x98] sm:$0x7f] }
 0x1b8   : > { %v786_v49 = vld [vmem:[#allocation2 + $0x80] sm:$0xff]  ;;  %v804_v50 = vrot.slane %v787_v48, 7  ;;  %v788_v51 = vld [vmem:[#allocation2 + $0x90] sm:$0xff]  ;;  %v808_v0 = vrot.slane %v789_v59, 7  ;;  %v927_v1 = vshrl.u32 %v787_v48, 16  ;;  %v907_v10 = vld [vmem:[#allocation2 + $0x98] sm:$0xff] }
 0x1b9   : > { %v802_v52 = vrot.slane %v786_v49, 7  ;;  %v806_v53 = vrot.slane %v788_v51, 7  ;;  %v919_v54 = vshrl.u32 %v786_v49, 16  ;;  %v922_v62 = vshll.u32 %v786_v49, 16 }
 0x1ba   : > { %v935_v4 = vshrl.u32 %v788_v51, 16  ;;  %v929_v6 = vrot.slane %v927_v1, 7  ;;  %v938_v9 = vshll.u32 %v788_v51, 16  ;;  %v930_v11 = vshll.u32 %v787_v48, 16 }
 0x1bb   : > { %v803_v55 = vsel %vm800_vm2, %v801_v47, %v802_v52  ;;  %v805_v56 = vsel %vm800_vm2, %v802_v52, %v804_v50  ;;  %v807_v58 = vsel %vm800_vm2, %v804_v50, %v806_v53  ;;  %v921_v61 = vrot.slane %v919_v54, 7 }
 0x1bc   : > { %6222 = vmatprep.mubr.msk.bf16.mxu1 %vm421_vm0, %v803_v55  ;;  %v809_v5 = vsel %vm800_vm2, %v806_v53, %v808_v0  ;;  %v937_v8 = vrot.slane %v935_v4, 7  ;;  %v932_v12 = vor.u32 %v930_v11, %v929_v6  ;;  %v943_v13 = vshrl.u32 %v907_v10, 16 }
 0x1bd   : > { %6223 = vmatmul.mubr.msk.bf16.vlgmr.msra.gmra.mrb[4].mxu1 %vm421_vm0, %v805_v56  ;;  %v924_v3 = vor.u32 %v922_v62, %v921_v61  ;;  %v946_v18 = vshll.u32 %v907_v10, 16 }
 0x1be   : > { %6231 = vmatpush3.bf16.msra.mxu1 %v7150_v20  ;;  %6226 = vmatprep.mubr.msk.bf16.mxu1 %vm421_vm0, %v807_v58  ;;  %v940_v14 = vor.u32 %v938_v9, %v937_v8  ;;  %v933_v16 = vsel %vm913_vm3, %v921_v61, %v932_v12  ;;  %v945_v17 = vrot.slane %v943_v13, 7  ;;  %v7161_v13 = vld [vmem:[#allocation9 + $0x88] sm:$0xff]  }
 0x1bf   : > { %6232 = vmatprep.subr.bf16.mxu1 %v7151_v57  ;;  %v925_v7 = vsel %vm913_vm3, %v917_v2, %v924_v3 }
 0x1c0   : > { %v941_v19 = vsel %vm913_vm3, %v929_v6, %v940_v14  ;;  %v948_v20 = vor.u32 %v946_v18, %v945_v17  ;;  %v1515_v14 = vld [vmem:[#allocation2 + $0x78] sm:$0x80] }
 0x1c2   : > { %6233 = vmatpush3.bf16.msra.mxu1 %v7151_v57  ;;  %v949_v21 = vsel %vm913_vm3, %v937_v8, %v948_v20  ;;  %v1524_v20 = vrot.slane %v1515_v14, 7 }
 0x1c3   : > { %6242 = vmatprep.subr.bf16.mxu1 %v7152_v63 }
 0x1c5   : > { %6227 = vmatmul.mubr.msk.bf16.gmra.mrb[8].mxu1 %vm421_vm0, %v809_v5  ;;  %v1393_v5 = vld [vmem:[#allocation2 + $0x78] sm:$0xc0] }
 0x1c6   : > { %6234 = vmatprep.mubr.msk.bf16.mxu1 %vm421_vm0, %v925_v7  ;;  %v1409_v10 = vrot.slane %v1393_v5, 6 }
 0x1cd   : > { %6235 = vmatmul.mubr.msk.bf16.vlgmr.msra.gmra.mrb[4].mxu1 %vm421_vm0, %v933_v16  ;;  %v7162_v16 = vld [vmem:[#allocation9 + $0x90] sm:$0xff]  }
 0x1ce   : > { %6243 = vmatpush3.bf16.msra.mxu1 %v7152_v63  ;;  %6238 = vmatprep.mubr.msk.bf16.mxu1 %vm421_vm0, %v941_v19 }
 0x1cf   : > { %6244 = vmatprep.subr.bf16.mxu1 %v7153_v15 }
 0x1d2   : > { %6245 = vmatpush3.bf16.msra.mxu1 %v7153_v15 }
 0x1d3   : > { %6314 = vmatprep.subr.bf16.mxu1 %v7164_v30 }
 0x1d5   : > { %6239 = vmatmul.mubr.msk.bf16.gmra.mrb[8].mxu1 %vm421_vm0, %v949_v21 }
 0x1d6   : > { %6246 = vmatprep.mubr.msk.bf16.mxu1 %vm421_vm0, %v7942_v44 }
 0x1dd   : > { %6247 = vmatmul.mubr.msk.bf16.vlgmr.msra.gmra.mrb[4].mxu1 %vm421_vm0, %v7934_v42 }
 0x1de   : > { %6250 = vmatprep.mubr.msk.bf16.mxu1 %vm421_vm0, %v7946_v45  ;;  %6315 = vmatpush3.bf16.msra.mxu1 %v7164_v30  ;;  %v7163_v30 = vld [vmem:[#allocation9 + $0x98] sm:$0xff]  }
 0x1df   : > { %6316 = vmatprep.subr.bf16.mxu1 %v7165_v32 }
 0x1e2   : > { %6317 = vmatpush3.bf16.msra.mxu1 %v7165_v32 }
 0x1e3   : > { %6326 = vmatprep.subr.bf16.mxu1 %v7166_v33 }
 0x1e5   : > { %6251 = vmatmul.mubr.msk.bf16.gmra.mrb[8].mxu1 %vm421_vm0, %v7938_v43 }
 0x1e6   : > { %6318 = vmatprep.mubr.msk.bf16.mxu1 %vm421_vm0, %v1287_v22 }
 0x1ed   : > { %6319 = vmatmul.mubr.msk.bf16.vlgmr.msra.gmra.mrb[12].mxu1 %vm421_vm0, %v1288_v23 }
 0x1ee   : > { %6327 = vmatpush3.bf16.msra.mxu1 %v7166_v33  ;;  %6322 = vmatprep.mubr.msk.bf16.mxu1 %vm421_vm0, %v7983_v25 }
 0x1f5   : > { %6323 = vmatmul.mubr.msk.bf16.gmra.mrb[16].mxu1 %vm421_vm0, %v7987_v26 }
 0x1f6   : > { %6330 = vmatprep.mubr.msk.bf16.mxu1 %vm421_vm0, %v7983_v25 }
 0x2b0   : > { %v6248_v38 = vpop.f32.mrb[4].mxu1 }
 0x2b1   : > { %v6700_v42 = vadd.f32 %v6248_v38, %v5660_v37  ;;  %v1110_v43 = vpop.f32.mrb[5].mxu1 }
 0x2b2   : > { %v6701_v44 = vadd.f32 %v5660_v37, %v1110_v43  ;;  %v6249_v45 = vpop.f32.mrb[6].mxu1  ;;  %v7167_v43 = vld [vmem:[#allocation9 + $0xb8] sm:$0xff]  }
 0x2b3   : > { %v1151_v46 = vmax.f32 %v6700_v42, 0.0  ;;  %v6702_v47 = vadd.f32 %v6249_v45, %v5660_v37  ;;  %v1113_v48 = vpop.f32.mrb[7].mxu1  ;;  %6328 = vmatprep.subr.bf16.mxu1 %v7167_v43  ;;  %v7169_v45 = vld [vmem:[#allocation9 + $0xc8] sm:$0xff]  }
 0x2b4   : > { %v1149_v49 = vmax.f32 %v6701_v44, 0.0  ;;  %v6703_v50 = vadd.f32 %v5660_v37, %v1113_v48  ;;  %6329 = vmatpush3.bf16.msra.mxu1 %v7167_v43  ;;  %v7168_v44 = vld [vmem:[#allocation9 + $0xc0] sm:$0xff]  }
 0x2b5   : > { %v1152_v51 = vmax.f32 %v6702_v47, 0.0  ;;  %v8002_v53 = vadd.f32 %v1151_v46, %v7920_v34  ;;  %6338 = vmatprep.subr.bf16.mxu1 %v7168_v44  ;;  %v8070_v46 = vld [vmem:[#allocation9 + $0xd0] sm:$0xff]   ;;  %v5691_v48 = vld [vmem:[#allocation11 + $0x1] ss:$0 sm:$0xff] }
 0x2b6   : > { %v1150_v52 = vmax.f32 %v6703_v50, 0.0  ;;  %v8008_v55 = vadd.f32 %v1149_v49, %v7926_v39  ;;  %v7174_v47 = vld [vmem:[#allocation9 + $0xf0] sm:$0xff]  }
 0x2b7   : > { %v8005_v54 = vadd.f32 %v1152_v51, %v7922_v35  ;;  %6331 = vmatmul.mubr.msk.bf16.vlgmr.msra.gmra.mrb[12].mxu1 %vm421_vm0, %v7987_v26 }
 0x2b8   : > { %v8011_v56 = vadd.f32 %v1150_v52, %v7928_v40  ;;  %v6252_v57 = vpop.f32.mrb[8].mxu1  ;;  %6339 = vmatpush3.bf16.msra.mxu1 %v7168_v44 }
 0x2b9   : > { %v8015_v58 = vpack.c.bf16 %v8005_v54, %v8002_v53  ;;  %v6704_v59 = vadd.f32 %v6252_v57, %v5660_v37  ;;  %v1126_v60 = vpop.f32.mrb[9].mxu1  ;;  %6340 = vmatprep.subr.bf16.mxu1 %v7169_v45 }
 0x2ba   : > { %v8019_v34 = vpack.c.bf16 %v8011_v56, %v8008_v55  ;;  %v6705_v61 = vadd.f32 %v5660_v37, %v1126_v60  ;;  %v6253_v35 = vpop.f32.mrb[10].mxu1 }
 0x2bb   : > { %1170 = vst.msk [vmem:[#allocation2 + $0x88] sm:$0xff] %vm421_vm0, %v8015_v58  ;;  %v1155_v39 = vmax.f32 %v6704_v59, 0.0  ;;  %v6706_v62 = vadd.f32 %v6253_v35, %v5660_v37  ;;  %v1129_v40 = vpop.f32.mrb[11].mxu1 }
 0x2bc   : > { %1169 = vst.msk [vmem:[#allocation2 + $0x80] sm:$0xff] %vm421_vm0, %v8019_v34  ;;  %v1153_v63 = vmax.f32 %v6705_v61, 0.0  ;;  %v6707_v0 = vadd.f32 %v5660_v37, %v1129_v40  ;;  %6341 = vmatpush3.bf16.msra.mxu1 %v7169_v45  ;;  %v7173_v45 = vld [vmem:[#allocation9 + $0xe8] sm:$0xff]  }
 0x2bd   : > { %v1156_v1 = vmax.f32 %v6706_v62, 0.0  ;;  %v8026_v3 = vadd.f32 %v1155_v39, %v7916_v28  ;;  %6350 = vmatprep.subr.bf16.mxu1 %v8070_v46 }
 0x2be   : > { %v1154_v2 = vmax.f32 %v6707_v0, 0.0  ;;  %v8032_v6 = vadd.f32 %v1153_v63, %v7918_v31 }
 0x2bf   : > { %v8029_v4 = vadd.f32 %v1156_v1, %v7924_v36 }
 0x2c0   : > { %v8035_v7 = vadd.f32 %v1154_v2, %v7930_v41 }
 0x2c1   : > { %v1168_v8 = vpack.c.bf16 %v8029_v4, %v8026_v3 }
 0x2c2   : > { %v1167_v9 = vpack.c.bf16 %v8035_v7, %v8032_v6  ;;  %v1395_v11 = vld [vmem:[#allocation2 + $0x88] sm:$0xff] }
 0x2c3   : > { %1172 = vst.msk [vmem:[#allocation2 + $0x98] sm:$0xff] %vm421_vm0, %v1168_v8  ;;  %v1394_v28 = vld [vmem:[#allocation2 + $0x80] sm:$0xff]  ;;  %v1412_v36 = vrot.slane %v1395_v11, 6  ;;  %v1527_v27 = vrot.slane %v1395_v11, 7 }
 0x2c4   : > { %1171 = vst.msk [vmem:[#allocation2 + $0x90] sm:$0xff] %vm421_vm0, %v1167_v9  ;;  %v1410_v31 = vrot.slane %v1394_v28, 6  ;;  %v1525_v21 = vrot.slane %v1394_v28, 7 }
 0x2c6   : > { %v1411_v12 = vsel %vm1408_vm4, %v1409_v10, %v1410_v31  ;;  %v1413_v41 = vsel %vm1408_vm4, %v1410_v31, %v1412_v36  ;;  %v1526_v24 = vsel %vm800_vm2, %v1524_v20, %v1525_v21  ;;  %v1528_v32 = vsel %vm800_vm2, %v1525_v21, %v1527_v27  ;;  %v7171_v21 = vld [vmem:[#allocation9 + $0xd8] sm:$0xff]  }
 0x2c7   : > { %6282 = vmatprep.mubr.msk.bf16.mxu0 %vm421_vm0, %v1411_v12 }
 0x2c8   : > { %6283 = vmatmul.mubr.msk.bf16.vlgmr.msra.gmra.mrb[4].mxu0 %vm421_vm0, %v1413_v41 }
 0x2c9   : > { %6291 = vmatpush3.bf16.msra.mxu0 %v7991_v29 }
 0x2ca   : > { %6292 = vmatprep.subr.bf16.mxu0 %v7161_v13  ;;  %v1397_v15 = vld [vmem:[#allocation2 + $0x98] sm:$0x3f] }
 0x2cb   : > { %v1396_v17 = vld [vmem:[#allocation2 + $0x90] sm:$0xff]  ;;  %v1416_v18 = vrot.slane %v1397_v15, 6  ;;  %v1516_v37 = vld [vmem:[#allocation2 + $0x98] sm:$0x7f] }
 0x2cc   : > { %v1414_v19 = vrot.slane %v1396_v17, 6  ;;  %v1529_v29 = vrot.slane %v1396_v17, 7  ;;  %v1531_v38 = vrot.slane %v1516_v37, 7 }
 0x2cd   : > { %6293 = vmatpush3.bf16.msra.mxu0 %v7161_v13  ;;  %v1976_v13 = vld [vmem:[#allocation2 + $0x78] sm:$0xf0] }
 0x2ce   : > { %v1415_v22 = vsel %vm1408_vm4, %v1412_v36, %v1414_v19  ;;  %v1417_v23 = vsel %vm1408_vm4, %v1414_v19, %v1416_v18  ;;  %6302 = vmatprep.subr.bf16.mxu0 %v7162_v16  ;;  %v1530_v33 = vsel %vm800_vm2, %v1527_v27, %v1529_v29  ;;  %v1532_v42 = vsel %vm800_vm2, %v1529_v29, %v1531_v38  ;;  %v2098_v29 = vld [vmem:[#allocation2 + $0x78] sm:$0xc0] }
 0x2cf   : > { %6286 = vmatprep.mubr.msk.bf16.mxu0 %vm421_vm0, %v1415_v22  ;;  %v1992_v18 = vrot.slane %v1976_v13, 4 }
 0x2d0   : > { %6287 = vmatmul.mubr.msk.bf16.gmra.mrb[8].mxu0 %vm421_vm0, %v1417_v23 }
 0x2d1   : > { %6294 = vmatprep.mubr.msk.bf16.mxu0 %vm421_vm0, %v1526_v24 }
 0x2d8   : > { %6295 = vmatmul.mubr.msk.bf16.vlgmr.msra.gmra.mrb[4].mxu0 %vm421_vm0, %v1528_v32 }
 0x2d9   : > { %6303 = vmatpush3.bf16.msra.mxu0 %v7162_v16  ;;  %6298 = vmatprep.mubr.msk.bf16.mxu0 %vm421_vm0, %v1530_v33  ;;  %v2107_v33 = vrot.slane %v2098_v29, 6  ;;  %v2649_v29 = vld [vmem:[#allocation2 + $0x78] sm:$0xf0] }
 0x2da   : > { %6304 = vmatprep.subr.bf16.mxu0 %v7163_v30 }
 0x2dd   : > { %6305 = vmatpush3.bf16.msra.mxu0 %v7163_v30  ;;  %v7172_v30 = vld [vmem:[#allocation9 + $0xe0] sm:$0xff]  }
 0x2de   : > { %6374 = vmatprep.subr.bf16.mxu0 %v7174_v47 }
 0x2e0   : > { %6299 = vmatmul.mubr.msk.bf16.gmra.mrb[8].mxu0 %vm421_vm0, %v1532_v42 }
 0x2e1   : > { %6306 = vmatprep.mubr.msk.bf16.mxu0 %vm421_vm0, %v8019_v34 }
 0x2e8   : > { %6307 = vmatmul.mubr.msk.bf16.vlgmr.msra.gmra.mrb[4].mxu0 %vm421_vm0, %v8015_v58 }
 0x2e9   : > { %6310 = vmatprep.mubr.msk.bf16.mxu0 %vm421_vm0, %v1167_v9  ;;  %6375 = vmatpush3.bf16.msra.mxu0 %v7174_v47 }
 0x2f0   : > { %6311 = vmatmul.mubr.msk.bf16.gmra.mrb[8].mxu0 %vm421_vm0, %v1168_v8 }
 0x2f1   : > { %6378 = vmatprep.mubr.msk.bf16.mxu0 %vm421_vm0, %v7983_v25 }
 0x3bb   : > { %v6308_v49 = vpop.f32.mrb[4].mxu0 }
 0x3bc   : > { %v6708_v50 = vadd.f32 %v6308_v49, %v5691_v48  ;;  %v1693_v51 = vpop.f32.mrb[5].mxu0 }
 0x3bd   : > { %v6709_v52 = vadd.f32 %v5691_v48, %v1693_v51  ;;  %v6309_v57 = vpop.f32.mrb[6].mxu0  ;;  %v7175_v51 = vld [vmem:[#allocation9 + $0xf8] sm:$0xff]  }
 0x3be   : > { %v1734_v58 = vmax.f32 %v6708_v50, 0.0  ;;  %v6710_v59 = vadd.f32 %v6309_v57, %v5691_v48  ;;  %v1696_v60 = vpop.f32.mrb[7].mxu0  ;;  %6376 = vmatprep.subr.bf16.mxu0 %v7175_v51  ;;  %v7177_v57 = vld [vmem:[#allocation9 + $0x108] sm:$0xff]  }
 0x3bf   : > { %v1732_v34 = vmax.f32 %v6709_v52, 0.0  ;;  %v6711_v61 = vadd.f32 %v5691_v48, %v1696_v60  ;;  %6377 = vmatpush3.bf16.msra.mxu0 %v7175_v51  ;;  %v7176_v52 = vld [vmem:[#allocation9 + $0x100] sm:$0xff]   ;;  %v7186_v51 = vld [vmem:[#allocation9 + $0x150] sm:$0xff]  }
 0x3c0   : > { %v1735_v35 = vmax.f32 %v6710_v59, 0.0  ;;  %v8074_v62 = vadd.f32 %v1734_v58, %v8002_v53  ;;  %6386 = vmatprep.subr.bf16.mxu0 %v7176_v52  ;;  %v7178_v58 = vld [vmem:[#allocation9 + $0x110] sm:$0xff]   ;;  %v5722_v59 = vld [vmem:[#allocation11 + $0x2] ss:$0 sm:$0xff] }
 0x3c1   : > { %v1733_v39 = vmax.f32 %v6711_v61, 0.0  ;;  %v8080_v63 = vadd.f32 %v1732_v34, %v8008_v55 }
 0x3c2   : > { %v8077_v40 = vadd.f32 %v1735_v35, %v8005_v54  ;;  %6379 = vmatmul.mubr.msk.bf16.vlgmr.msra.gmra.mrb[12].mxu0 %vm421_vm0, %v7987_v26 }
 0x3c3   : > { %v8083_v0 = vadd.f32 %v1733_v39, %v8011_v56  ;;  %v6312_v1 = vpop.f32.mrb[8].mxu0  ;;  %6387 = vmatpush3.bf16.msra.mxu0 %v7176_v52  ;;  %v7194_v52 = vld [vmem:[#allocation12] sm:$0xff]  }
 0x3c4   : > { %v8087_v2 = vpack.c.bf16 %v8077_v40, %v8074_v62  ;;  %v6712_v5 = vadd.f32 %v6312_v1, %v5691_v48  ;;  %v1709_v8 = vpop.f32.mrb[9].mxu0  ;;  %6388 = vmatprep.subr.bf16.mxu0 %v7177_v57 }
 0x3c5   : > { %v8091_v53 = vpack.c.bf16 %v8083_v0, %v8080_v63  ;;  %v6713_v9 = vadd.f32 %v5691_v48, %v1709_v8  ;;  %v6313_v54 = vpop.f32.mrb[10].mxu0 }
 0x3c6   : > { %1753 = vst.msk [vmem:[#allocation2 + $0x88] sm:$0xff] %vm421_vm0, %v8087_v2  ;;  %v1738_v55 = vmax.f32 %v6712_v5, 0.0  ;;  %v6714_v10 = vadd.f32 %v6313_v54, %v5691_v48  ;;  %v1712_v56 = vpop.f32.mrb[11].mxu0 }
 0x3c7   : > { %1752 = vst.msk [vmem:[#allocation2 + $0x80] sm:$0xff] %vm421_vm0, %v8091_v53  ;;  %v1736_v11 = vmax.f32 %v6713_v9, 0.0  ;;  %v6715_v28 = vadd.f32 %v5691_v48, %v1712_v56  ;;  %6389 = vmatpush3.bf16.msra.mxu0 %v7177_v57  ;;  %v5753_v57 = vld [vmem:[#allocation11 + $0x3] ss:$0 sm:$0xff] }
 0x3c8   : > { %v1739_v36 = vmax.f32 %v6714_v10, 0.0  ;;  %v8098_v12 = vadd.f32 %v1738_v55, %v8026_v3  ;;  %6398 = vmatprep.subr.bf16.mxu0 %v7178_v58 }
 0x3c9   : > { %v1737_v31 = vmax.f32 %v6715_v28, 0.0  ;;  %v8104_v14 = vadd.f32 %v1736_v11, %v8032_v6 }
 0x3ca   : > { %v8101_v41 = vadd.f32 %v1739_v36, %v8029_v4 }
 0x3cb   : > { %v8107_v15 = vadd.f32 %v1737_v31, %v8035_v7 }
 0x3cc   : > { %v1751_v16 = vpack.c.bf16 %v8101_v41, %v8098_v12 }
 0x3cd   : > { %v1750_v17 = vpack.c.bf16 %v8107_v15, %v8104_v14  ;;  %v1873_v4 = vld [vmem:[#allocation2 + $0x88] sm:$0xff] }
 0x3ce   : > { %1755 = vst.msk [vmem:[#allocation2 + $0x98] sm:$0xff] %vm421_vm0, %v1751_v16  ;;  %v1872_v3 = vld [vmem:[#allocation2 + $0x80] sm:$0xff]  ;;  %v1995_v19 = vrot.slane %v1873_v4, 4  ;;  %v2110_v43 = vrot.slane %v1873_v4, 6 }
 0x3cf   : > { %1754 = vst.msk [vmem:[#allocation2 + $0x90] sm:$0xff] %vm421_vm0, %v1750_v17  ;;  %6334 = vmatprep.mubr.msk.bf16.mxu1 %vm421_vm0, %v1872_v3  ;;  %v1993_v6 = vrot.slane %v1872_v3, 4  ;;  %v2108_v37 = vrot.slane %v1872_v3, 6 }
 0x3d0   : > { %6335 = vmatmul.mubr.msk.bf16.gmra.mrb[16].mxu1 %vm421_vm0, %v1873_v4 }
 0x3d1   : > { %v1994_v7 = vsel %vm1991_vm5, %v1992_v18, %v1993_v6  ;;  %v1996_v22 = vsel %vm1991_vm5, %v1993_v6, %v1995_v19  ;;  %v2109_v42 = vsel %vm1408_vm4, %v2107_v33, %v2108_v37 }
 0x3d2   : > { %6342 = vmatprep.mubr.msk.bf16.mxu1 %vm421_vm0, %v1994_v7 }
 0x3d5   : > { %v1980_v24 = vld [vmem:[#allocation2 + $0x98] sm:$0xf] }
 0x3d6   : > { %v1979_v20 = vld [vmem:[#allocation2 + $0x90] sm:$0xff]  ;;  %v1999_v32 = vrot.slane %v1980_v24, 4  ;;  %v2099_v48 = vld [vmem:[#allocation2 + $0x98] sm:$0x3f] }
 0x3d7   : > { %v1997_v23 = vrot.slane %v1979_v20, 4  ;;  %v2112_v44 = vrot.slane %v1979_v20, 6  ;;  %v2114_v49 = vrot.slane %v2099_v48, 6 }
 0x3d8   : > { %6343 = vmatmul.mubr.msk.bf16.vlgmr.msra.gmra.mrb[12].mxu1 %vm421_vm0, %v1996_v22 }
 0x3d9   : > { %6351 = vmatpush3.bf16.msra.mxu1 %v8070_v46  ;;  %v1998_v27 = vsel %vm1991_vm5, %v1995_v19, %v1997_v23  ;;  %v2000_v38 = vsel %vm1991_vm5, %v1997_v23, %v1999_v32  ;;  %v2111_v46 = vsel %vm1408_vm4, %v2108_v37, %v2110_v43  ;;  %v2113_v47 = vsel %vm1408_vm4, %v2110_v43, %v2112_v44  ;;  %v7183_v43 = vld [vmem:[#allocation9 + $0x138] sm:$0xff]  }
 0x3da   : > { %6346 = vmatprep.mubr.msk.bf16.mxu1 %vm421_vm0, %v1998_v27  ;;  %6352 = vmatprep.subr.bf16.mxu1 %v7171_v21  ;;  %v2115_v50 = vsel %vm1408_vm4, %v2112_v44, %v2114_v49  ;;  %v7181_v27 = vld [vmem:[#allocation9 + $0x128] sm:$0xff]   ;;  %v2664_v32 = vrot.slane %v2649_v29, 4  ;;  %v7184_v49 = vld [vmem:[#allocation9 + $0x140] sm:$0xff]  }
 0x3dd   : > { %6353 = vmatpush3.bf16.msra.mxu1 %v7171_v21 }
 0x3de   : > { %6362 = vmatprep.subr.bf16.mxu1 %v7172_v30 }
 0x3e0   : > { %6347 = vmatmul.mubr.msk.bf16.gmra.mrb[16].mxu1 %vm421_vm0, %v2000_v38 }
 0x3e1   : > { %6354 = vmatprep.mubr.msk.bf16.mxu1 %vm421_vm0, %v2109_v42 }
 0x3e8   : > { %6355 = vmatmul.mubr.msk.bf16.vlgmr.msra.gmra.mrb[12].mxu1 %vm421_vm0, %v2111_v46 }
 0x3e9   : > { %6363 = vmatpush3.bf16.msra.mxu1 %v7172_v30  ;;  %6358 = vmatprep.mubr.msk.bf16.mxu1 %vm421_vm0, %v2113_v47  ;;  %v7182_v30 = vld [vmem:[#allocation9 + $0x130] sm:$0xff]  }
 0x3ea   : > { %6364 = vmatprep.subr.bf16.mxu1 %v7173_v45 }
 0x3ed   : > { %6365 = vmatpush3.bf16.msra.mxu1 %v7173_v45 }
 0x3ee   : > { %6434 = vmatprep.subr.bf16.mxu1 %v7184_v49 }
 0x3f0   : > { %6359 = vmatmul.mubr.msk.bf16.gmra.mrb[16].mxu1 %vm421_vm0, %v2115_v50  ;;  %v7185_v50 = vld [vmem:[#allocation9 + $0x148] sm:$0xff]  }
 0x3f1   : > { %6366 = vmatprep.mubr.msk.bf16.mxu1 %vm421_vm0, %v8091_v53 }
 0x3f8   : > { %6367 = vmatmul.mubr.msk.bf16.vlgmr.msra.gmra.mrb[12].mxu1 %vm421_vm0, %v8087_v2 }
 0x3f9   : > { %6370 = vmatprep.mubr.msk.bf16.mxu1 %vm421_vm0, %v1750_v17  ;;  %6435 = vmatpush3.bf16.msra.mxu1 %v7184_v49  ;;  %v5784_v49 = vld [vmem:[#allocation11 + $0x4] ss:$0 sm:$0xff] }
 0x3fa   : > { %6436 = vmatprep.subr.bf16.mxu1 %v7185_v50 }
 0x3fd   : > { %6437 = vmatpush3.bf16.msra.mxu1 %v7185_v50 }
 0x3fe   : > { %6446 = vmatprep.subr.bf16.mxu1 %v7186_v51 }
 0x400   : > { %6371 = vmatmul.mubr.msk.bf16.gmra.mrb[16].mxu1 %vm421_vm0, %v1751_v16 }
 0x401   : > { %6438 = vmatprep.mubr.msk.bf16.mxu1 %vm421_vm0, %v7987_v26 }
 0x4cb   : > { %v6368_v60 = vpop.f32.mrb[12].mxu1 }
 0x4cc   : > { %v6716_v34 = vadd.f32 %v6368_v60, %v5722_v59  ;;  %v2276_v61 = vpop.f32.mrb[13].mxu1 }
 0x4cd   : > { %v6717_v35 = vadd.f32 %v5722_v59, %v2276_v61  ;;  %v6369_v39 = vpop.f32.mrb[14].mxu1 }
 0x4ce   : > { %v2317_v1 = vmax.f32 %v6716_v34, 0.0  ;;  %v6718_v2 = vadd.f32 %v6369_v39, %v5722_v59  ;;  %v2279_v5 = vpop.f32.mrb[15].mxu1 }
 0x4cf   : > { %v2315_v8 = vmax.f32 %v6717_v35, 0.0  ;;  %v6719_v53 = vadd.f32 %v5722_v59, %v2279_v5 }
 0x4d0   : > { %v2318_v9 = vmax.f32 %v6718_v2, 0.0  ;;  %v8145_v55 = vadd.f32 %v2317_v1, %v8074_v62 }
 0x4d1   : > { %v2316_v54 = vmax.f32 %v6719_v53, 0.0  ;;  %v8151_v56 = vadd.f32 %v2315_v8, %v8080_v63 }
 0x4d2   : > { %v8148_v10 = vadd.f32 %v2318_v9, %v8077_v40 }
 0x4d3   : > { %v8154_v11 = vadd.f32 %v2316_v54, %v8083_v0  ;;  %v6372_v28 = vpop.f32.mrb[16].mxu1 }
 0x4d4   : > { %v8158_v36 = vpack.c.bf16 %v8148_v10, %v8145_v55  ;;  %v6720_v31 = vadd.f32 %v6372_v28, %v5722_v59  ;;  %v2292_v13 = vpop.f32.mrb[17].mxu1 }
 0x4d5   : > { %v8162_v62 = vpack.c.bf16 %v8154_v11, %v8151_v56  ;;  %v6721_v16 = vadd.f32 %v5722_v59, %v2292_v13  ;;  %v6373_v40 = vpop.f32.mrb[18].mxu1 }
 0x4d6   : > { %2336 = vst.msk [vmem:[#allocation2 + $0x88] sm:$0xff] %vm421_vm0, %v8158_v36  ;;  %v2321_v63 = vmax.f32 %v6720_v31, 0.0  ;;  %v6722_v17 = vadd.f32 %v6373_v40, %v5722_v59  ;;  %v2295_v0 = vpop.f32.mrb[19].mxu1 }
 0x4d7   : > { %2335 = vst.msk [vmem:[#allocation2 + $0x80] sm:$0xff] %vm421_vm0, %v8162_v62  ;;  %v2319_v18 = vmax.f32 %v6721_v16, 0.0  ;;  %v6723_v3 = vadd.f32 %v5722_v59, %v2295_v0 }
 0x4d8   : > { %v2322_v4 = vmax.f32 %v6722_v17, 0.0  ;;  %v8169_v7 = vadd.f32 %v2321_v63, %v8098_v12 }
 0x4d9   : > { %v2320_v6 = vmax.f32 %v6723_v3, 0.0  ;;  %v8175_v20 = vadd.f32 %v2319_v18, %v8104_v14  ;;  %v7180_v14 = vld [vmem:[#allocation9 + $0x120] sm:$0xff]  }
 0x4da   : > { %v8172_v19 = vadd.f32 %v2322_v4, %v8101_v41  ;;  %v7179_v41 = vld [vmem:[#allocation9 + $0x118] sm:$0xff]  }
 0x4db   : > { %v8178_v21 = vadd.f32 %v2320_v6, %v8107_v15 }
 0x4dc   : > { %v2334_v22 = vpack.c.bf16 %v8172_v19, %v8169_v7 }
 0x4dd   : > { %v2333_v23 = vpack.c.bf16 %v8178_v21, %v8175_v20  ;;  %v2344_v12 = vld [vmem:[#allocation2 + $0x88] sm:$0xff] }
 0x4de   : > { %2338 = vst.msk [vmem:[#allocation2 + $0x98] sm:$0xff] %vm421_vm0, %v2334_v22  ;;  %v2343_v24 = vld [vmem:[#allocation2 + $0x80] sm:$0xff]  ;;  %v2667_v38 = vrot.slane %v2344_v12, 4 }
 0x4df   : > { %2337 = vst.msk [vmem:[#allocation2 + $0x90] sm:$0xff] %vm421_vm0, %v2333_v23  ;;  %6382 = vmatprep.mubr.msk.bf16.mxu0 %vm421_vm0, %v2343_v24  ;;  %v2665_v33 = vrot.slane %v2343_v24, 4 }
 0x4e0   : > { %6383 = vmatmul.mubr.msk.bf16.gmra.mrb[16].mxu0 %vm421_vm0, %v2344_v12 }
 0x4e1   : > { %6390 = vmatprep.mubr.msk.bf16.mxu0 %vm421_vm0, %v7987_v26  ;;  %v2666_v37 = vsel %vm1991_vm5, %v2664_v32, %v2665_v33  ;;  %v2668_v44 = vsel %vm1991_vm5, %v2665_v33, %v2667_v38  ;;  %v7189_v33 = vld [vmem:[#allocation9 + $0x168] sm:$0xff]  }
 0x4e5   : > { %v2653_v46 = vld [vmem:[#allocation2 + $0x98] sm:$0xf] }
 0x4e6   : > { %v2456_v15 = vld [vmem:[#allocation2 + $0x90] sm:$0xff]  ;;  %v2671_v47 = vrot.slane %v2653_v46, 4  ;;  %v7191_v46 = vld [vmem:[#allocation9 + $0x178] sm:$0xff]  }
 0x4e7   : > { %v2669_v42 = vrot.slane %v2456_v15, 4 }
 0x4e8   : > { %6391 = vmatmul.mubr.msk.bf16.vlgmr.msra.gmra.mrb[12].mxu0 %vm421_vm0, %v2343_v24 }
 0x4e9   : > { %6399 = vmatpush3.bf16.msra.mxu0 %v7178_v58  ;;  %6394 = vmatprep.mubr.msk.bf16.mxu0 %vm421_vm0, %v2344_v12  ;;  %v2670_v45 = vsel %vm1991_vm5, %v2667_v38, %v2669_v42  ;;  %v2672_v48 = vsel %vm1991_vm5, %v2669_v42, %v2671_v47  ;;  %v7192_v47 = vld [vmem:[#allocation9 + $0x180] sm:$0xff]  }
 0x4ea   : > { %6400 = vmatprep.subr.bf16.mxu0 %v7179_v41 }
 0x4ed   : > { %6401 = vmatpush3.bf16.msra.mxu0 %v7179_v41  ;;  %v7187_v41 = vld [vmem:[#allocation9 + $0x158] sm:$0xff]  }
 0x4ee   : > { %6410 = vmatprep.subr.bf16.mxu0 %v7180_v14 }
 0x4f0   : > { %6395 = vmatmul.mubr.msk.bf16.gmra.mrb[16].mxu0 %vm421_vm0, %v2456_v15 }
 0x4f1   : > { %6402 = vmatprep.mubr.msk.bf16.mxu0 %vm421_vm0, %v7987_v26 }
 0x4f8   : > { %6403 = vmatmul.mubr.msk.bf16.vlgmr.msra.gmra.mrb[12].mxu0 %vm421_vm0, %v2343_v24 }
 0x4f9   : > { %6411 = vmatpush3.bf16.msra.mxu0 %v7180_v14  ;;  %6406 = vmatprep.mubr.msk.bf16.mxu0 %vm421_vm0, %v2344_v12 }
 0x4fa   : > { %6412 = vmatprep.subr.bf16.mxu0 %v7181_v27 }
 0x4fd   : > { %6413 = vmatpush3.bf16.msra.mxu0 %v7181_v27 }
 0x4fe   : > { %6422 = vmatprep.subr.bf16.mxu0 %v7182_v30 }
 0x500   : > { %6407 = vmatmul.mubr.msk.bf16.gmra.mrb[16].mxu0 %vm421_vm0, %v2456_v15 }
 0x501   : > { %6414 = vmatprep.mubr.msk.bf16.mxu0 %vm421_vm0, %v2666_v37 }
 0x508   : > { %6415 = vmatmul.mubr.msk.bf16.vlgmr.msra.gmra.mrb[12].mxu0 %vm421_vm0, %v2668_v44 }
 0x509   : > { %6423 = vmatpush3.bf16.msra.mxu0 %v7182_v30  ;;  %6418 = vmatprep.mubr.msk.bf16.mxu0 %vm421_vm0, %v2670_v45 }
 0x50a   : > { %6424 = vmatprep.subr.bf16.mxu0 %v7183_v43 }
 0x50d   : > { %6425 = vmatpush3.bf16.msra.mxu0 %v7183_v43  ;;  %v7190_v43 = vld [vmem:[#allocation9 + $0x170] sm:$0xff]  }
 0x50e   : > { %6494 = vmatprep.subr.bf16.mxu0 %v7194_v52 }
 0x510   : > { %6419 = vmatmul.mubr.msk.bf16.gmra.mrb[16].mxu0 %vm421_vm0, %v2672_v48  ;;  %v7193_v48 = vld [vmem:[#allocation9 + $0x188] sm:$0xff]  }
 0x511   : > { %6426 = vmatprep.mubr.msk.bf16.mxu0 %vm421_vm0, %v8162_v62 }
 0x518   : > { %6427 = vmatmul.mubr.msk.bf16.vlgmr.msra.gmra.mrb[12].mxu0 %vm421_vm0, %v8158_v36 }
 0x519   : > { %6430 = vmatprep.mubr.msk.bf16.mxu0 %vm421_vm0, %v2333_v23  ;;  %6495 = vmatpush3.bf16.msra.mxu0 %v7194_v52 }
 0x520   : > { %6431 = vmatmul.mubr.msk.bf16.gmra.mrb[16].mxu0 %vm421_vm0, %v2334_v22 }
 0x5eb   : > { %v6428_v58 = vpop.f32.mrb[12].mxu0 }
 0x5ec   : > { %v6724_v59 = vadd.f32 %v6428_v58, %v5753_v57  ;;  %v2833_v60 = vpop.f32.mrb[13].mxu0 }
 0x5ed   : > { %v6725_v34 = vadd.f32 %v5753_v57, %v2833_v60  ;;  %v6429_v61 = vpop.f32.mrb[14].mxu0 }
 0x5ee   : > { %v2874_v35 = vmax.f32 %v6724_v59, 0.0  ;;  %v6726_v39 = vadd.f32 %v6429_v61, %v5753_v57  ;;  %v2836_v1 = vpop.f32.mrb[15].mxu0 }
 0x5ef   : > { %v2872_v2 = vmax.f32 %v6725_v34, 0.0  ;;  %v6727_v5 = vadd.f32 %v5753_v57, %v2836_v1 }
 0x5f0   : > { %v2875_v8 = vmax.f32 %v6726_v39, 0.0  ;;  %v8213_v9 = vadd.f32 %v2874_v35, %v8145_v55 }
 0x5f1   : > { %v2873_v53 = vmax.f32 %v6727_v5, 0.0  ;;  %v8219_v28 = vadd.f32 %v2872_v2, %v8151_v56 }
 0x5f2   : > { %v8216_v54 = vadd.f32 %v2875_v8, %v8148_v10 }
 0x5f3   : > { %v8222_v36 = vadd.f32 %v2873_v53, %v8154_v11  ;;  %v6432_v31 = vpop.f32.mrb[16].mxu0 }
 0x5f4   : > { %v8226_v13 = vpack.c.bf16 %v8216_v54, %v8213_v9  ;;  %v6728_v62 = vadd.f32 %v6432_v31, %v5753_v57  ;;  %v2849_v16 = vpop.f32.mrb[17].mxu0 }
 0x5f5   : > { %v8230_v55 = vpack.c.bf16 %v8222_v36, %v8219_v28  ;;  %v6729_v40 = vadd.f32 %v5753_v57, %v2849_v16  ;;  %v6433_v10 = vpop.f32.mrb[18].mxu0 }
 0x5f6   : > { %2893 = vst.msk [vmem:[#allocation2 + $0x88] sm:$0xff] %vm421_vm0, %v8226_v13  ;;  %v2878_v56 = vmax.f32 %v6728_v62, 0.0  ;;  %v6730_v63 = vadd.f32 %v6433_v10, %v5753_v57  ;;  %v2852_v11 = vpop.f32.mrb[19].mxu0  ;;  %v7197_v10 = vld [vmem:[#allocation9 + $0x198] sm:$0xff]  }
 0x5f7   : > { %2892 = vst.msk [vmem:[#allocation2 + $0x80] sm:$0xff] %vm421_vm0, %v8230_v55  ;;  %v2876_v17 = vmax.f32 %v6729_v40, 0.0  ;;  %v6731_v0 = vadd.f32 %v5753_v57, %v2852_v11 }
 0x5f8   : > { %v2879_v18 = vmax.f32 %v6730_v63, 0.0  ;;  %v8237_v4 = vadd.f32 %v2878_v56, %v8169_v7 }
 0x5f9   : > { %v2877_v3 = vmax.f32 %v6731_v0, 0.0  ;;  %v8243_v22 = vadd.f32 %v2876_v17, %v8175_v20  ;;  %v3010_v20 = vld [vmem:[#allocation2 + $0x78] sm:$0xf0] }
 0x5fa   : > { %v8240_v6 = vadd.f32 %v2879_v18, %v8172_v19  ;;  %v3025_v14 = vrot.slane %v3010_v20, 4 }
 0x5fb   : > { %v8246_v23 = vadd.f32 %v2877_v3, %v8178_v21  ;;  %v7188_v21 = vld [vmem:[#allocation9 + $0x160] sm:$0xff]   ;;  %v3563_v3 = vld [vmem:[#allocation2 + $0x78] sm:$0xf0] }
 0x5fc   : > { %v2891_v24 = vpack.c.bf16 %v8240_v6, %v8237_v4 }
 0x5fd   : > { %v2890_v12 = vpack.c.bf16 %v8246_v23, %v8243_v22  ;;  %v2900_v19 = vld [vmem:[#allocation2 + $0x88] sm:$0xff] }
 0x5fe   : > { %2895 = vst.msk [vmem:[#allocation2 + $0x98] sm:$0xff] %vm421_vm0, %v2891_v24  ;;  %v2899_v7 = vld [vmem:[#allocation2 + $0x80] sm:$0xff]  ;;  %v3028_v30 = vrot.slane %v2900_v19, 4 }
 0x5ff   : > { %2894 = vst.msk [vmem:[#allocation2 + $0x90] sm:$0xff] %vm421_vm0, %v2890_v12  ;;  %6439 = vmatmul.mubr.msk.bf16.vlgmr.msra.gmra.mrb[20].mxu1 %vm421_vm0, %v2899_v7  ;;  %v3026_v15 = vrot.slane %v2899_v7, 4 }
 0x600   : > { %6447 = vmatpush3.bf16.msra.mxu1 %v7186_v51  ;;  %6442 = vmatprep.mubr.msk.bf16.mxu1 %vm421_vm0, %v2900_v19 }
 0x601   : > { %6448 = vmatprep.subr.bf16.mxu1 %v7187_v41  ;;  %v3027_v29 = vsel %vm1991_vm5, %v3025_v14, %v3026_v15  ;;  %v3029_v37 = vsel %vm1991_vm5, %v3026_v15, %v3028_v30  ;;  %v7199_v15 = vld [vmem:[#allocation9 + $0x1a8] sm:$0xff]  }
 0x604   : > { %6449 = vmatpush3.bf16.msra.mxu1 %v7187_v41 }
 0x605   : > { %6458 = vmatprep.subr.bf16.mxu1 %v7188_v21  ;;  %v3014_v42 = vld [vmem:[#allocation2 + $0x98] sm:$0xf] }
 0x606   : > { %v2901_v27 = vld [vmem:[#allocation2 + $0x90] sm:$0xff]  ;;  %v3032_v44 = vrot.slane %v3014_v42, 4 }
 0x607   : > { %6443 = vmatmul.mubr.msk.bf16.gmra.mrb[24].mxu1 %vm421_vm0, %v2901_v27  ;;  %v3030_v32 = vrot.slane %v2901_v27, 4 }
 0x608   : > { %6450 = vmatprep.mubr.msk.bf16.mxu1 %vm421_vm0, %v3027_v29 }
 0x609   : > { %v3031_v38 = vsel %vm1991_vm5, %v3028_v30, %v3030_v32  ;;  %v3033_v45 = vsel %vm1991_vm5, %v3030_v32, %v3032_v44 }
 0x60f   : > { %6451 = vmatmul.mubr.msk.bf16.vlgmr.msra.gmra.mrb[20].mxu1 %vm421_vm0, %v3029_v37  ;;  %v7200_v37 = vld [vmem:[#allocation9 + $0x1b0] sm:$0xff]  }
 0x610   : > { %6459 = vmatpush3.bf16.msra.mxu1 %v7188_v21  ;;  %6454 = vmatprep.mubr.msk.bf16.mxu1 %vm421_vm0, %v3031_v38 }
 0x611   : > { %6460 = vmatprep.subr.bf16.mxu1 %v7189_v33 }
 0x614   : > { %6461 = vmatpush3.bf16.msra.mxu1 %v7189_v33  ;;  %v3690_v33 = vld [vmem:[#allocation2 + $0x78] sm:$0xc0] }
 0x615   : > { %6470 = vmatprep.subr.bf16.mxu1 %v7190_v43  ;;  %v3699_v42 = vrot.slane %v3690_v33, 6 }
 0x617   : > { %6455 = vmatmul.mubr.msk.bf16.gmra.mrb[24].mxu1 %vm421_vm0, %v3033_v45 }
 0x618   : > { %6462 = vmatprep.mubr.msk.bf16.mxu1 %vm421_vm0, %v7983_v25  ;;  %v7195_v25 = vld [vmem:[#allocation12 + $0x8] sm:$0xff]  }
 0x619   : > { %6496 = vmatprep.subr.bf16.mxu0 %v7195_v25 }
 0x61a   : > { %6497 = vmatpush3.bf16.msra.mxu0 %v7195_v25 }
 0x61f   : > { %6463 = vmatmul.mubr.msk.bf16.vlgmr.msra.gmra.mrb[20].mxu1 %vm421_vm0, %v7987_v26 }
 0x620   : > { %6471 = vmatpush3.bf16.msra.mxu1 %v7190_v43  ;;  %6466 = vmatprep.mubr.msk.bf16.mxu1 %vm421_vm0, %v2899_v7 }
 0x621   : > { %6472 = vmatprep.subr.bf16.mxu1 %v7191_v46 }
 0x624   : > { %6473 = vmatpush3.bf16.msra.mxu1 %v7191_v46 }
 0x625   : > { %6482 = vmatprep.subr.bf16.mxu1 %v7192_v47 }
 0x627   : > { %6467 = vmatmul.mubr.msk.bf16.gmra.mrb[24].mxu1 %vm421_vm0, %v2900_v19 }
 0x628   : > { %6474 = vmatprep.mubr.msk.bf16.mxu1 %vm421_vm0, %v7987_v26  ;;  %v7196_v26 = vld [vmem:[#allocation9 + $0x190] sm:$0xff]  }
 0x629   : > { %6506 = vmatprep.subr.bf16.mxu0 %v7196_v26 }
 0x62f   : > { %6475 = vmatmul.mubr.msk.bf16.vlgmr.msra.gmra.mrb[20].mxu1 %vm421_vm0, %v2899_v7 }
 0x630   : > { %6483 = vmatpush3.bf16.msra.mxu1 %v7192_v47  ;;  %6478 = vmatprep.mubr.msk.bf16.mxu1 %vm421_vm0, %v2900_v19 }
 0x631   : > { %6484 = vmatprep.subr.bf16.mxu1 %v7193_v48 }
 0x634   : > { %6485 = vmatpush3.bf16.msra.mxu1 %v7193_v48  ;;  %v7201_v48 = vld [vmem:[#allocation9 + $0x1b8] sm:$0xff]  }
 0x637   : > { %6479 = vmatmul.mubr.msk.bf16.gmra.mrb[24].mxu1 %vm421_vm0, %v2901_v27 }
 0x638   : > { %6486 = vmatprep.mubr.msk.bf16.mxu1 %vm421_vm0, %v8230_v55 }
 0x63f   : > { %6487 = vmatmul.mubr.msk.bf16.vlgmr.msra.gmra.mrb[20].mxu1 %vm421_vm0, %v8226_v13 }
 0x640   : > { %6490 = vmatprep.mubr.msk.bf16.mxu1 %vm421_vm0, %v2890_v12 }
 0x647   : > { %6491 = vmatmul.mubr.msk.bf16.gmra.mrb[24].mxu1 %vm421_vm0, %v2891_v24  ;;  %v7198_v24 = vld [vmem:[#allocation9 + $0x1a0] sm:$0xff]  }
 0x712   : > { %v6488_v50 = vpop.f32.mrb[20].mxu1 }
 0x713   : > { %v6732_v51 = vadd.f32 %v6488_v50, %v5784_v49  ;;  %v3390_v52 = vpop.f32.mrb[21].mxu1  ;;  %v7202_v50 = vld [vmem:[#allocation9 + $0x1c0] sm:$0xff]  }
 0x714   : > { %v6733_v57 = vadd.f32 %v5784_v49, %v3390_v52  ;;  %v6489_v58 = vpop.f32.mrb[22].mxu1  ;;  %v8356_v52 = vld [vmem:[#allocation2 + $0x60] sm:$0xff] }
 0x715   : > { %v3431_v59 = vmax.f32 %v6732_v51, 0.0  ;;  %v6734_v60 = vadd.f32 %v6489_v58, %v5784_v49  ;;  %v3393_v34 = vpop.f32.mrb[23].mxu1  ;;  %v8362_v58 = vld [vmem:[#allocation2 + $0x68] sm:$0xff] }
 0x716   : > { %v3429_v61 = vmax.f32 %v6733_v57, 0.0  ;;  %v6735_v35 = vadd.f32 %v5784_v49, %v3393_v34  ;;  %v7204_v34 = vld [vmem:[#allocation9 + $0x1d0] sm:$0xff]  }
 0x717   : > { %v3432_v39 = vmax.f32 %v6734_v60, 0.0  ;;  %v8283_v2 = vadd.f32 %v3431_v59, %v8213_v9  ;;  %v8364_v59 = vld [vmem:[#allocation2 + $0x70] sm:$0xff] }
 0x718   : > { %v3430_v1 = vmax.f32 %v6735_v35, 0.0  ;;  %v8289_v8 = vadd.f32 %v3429_v61, %v8219_v28  ;;  %v7203_v60 = vld [vmem:[#allocation9 + $0x1c8] sm:$0xff]   ;;  %v7205_v35 = vld [vmem:[#allocation9 + $0x1d8] sm:$0xff]  }
 0x719   : > { %v8286_v5 = vadd.f32 %v3432_v39, %v8216_v54  ;;  %v8370_v61 = vld [vmem:[#allocation2 + $0x78] sm:$0xff]  ;;  %v7206_v39 = vld [vmem:[#allocation9 + $0x1e0] sm:$0xff]  }
 0x71a   : > { %v8292_v53 = vadd.f32 %v3430_v1, %v8222_v36  ;;  %v6492_v31 = vpop.f32.mrb[24].mxu1  ;;  %6566 = vmatprep.subr.bf16.mxu1 %v7206_v39  ;;  %v7207_v1 = vld [vmem:[#allocation9 + $0x1e8] sm:$0xff]  }
 0x71b   : > { %v8296_v13 = vpack.c.bf16 %v8286_v5, %v8283_v2  ;;  %v6736_v62 = vadd.f32 %v6492_v31, %v5784_v49  ;;  %v3406_v16 = vpop.f32.mrb[25].mxu1  ;;  %6567 = vmatpush3.bf16.msra.mxu1 %v7206_v39  ;;  %v8389_v31 = vld [vmem:[#allocation9 + $0x1f0] sm:$0xff]  }
 0x71c   : > { %v8300_v9 = vpack.c.bf16 %v8292_v53, %v8289_v8  ;;  %v6737_v55 = vadd.f32 %v5784_v49, %v3406_v16  ;;  %v6493_v54 = vpop.f32.mrb[26].mxu1  ;;  %6568 = vmatprep.subr.bf16.mxu1 %v7207_v1 }
 0x71d   : > { %3558 = vst.msk [vmem:[#allocation2 + $0x88] sm:$0xff] %vm421_vm0, %v8296_v13  ;;  %v3435_v28 = vmax.f32 %v6736_v62, 0.0  ;;  %v6738_v40 = vadd.f32 %v6493_v54, %v5784_v49  ;;  %v3409_v36 = vpop.f32.mrb[27].mxu1  ;;  %v5809_v62 = vld [vmem:[#allocation14] ss:$0 sm:$0xff] }
 0x71e   : > { %3557 = vst.msk [vmem:[#allocation2 + $0x80] sm:$0xff] %vm421_vm0, %v8300_v9  ;;  %v3433_v56 = vmax.f32 %v6737_v55, 0.0  ;;  %v6739_v63 = vadd.f32 %v5784_v49, %v3409_v36  ;;  %6498 = vmatprep.mubr.msk.bf16.mxu0 %vm421_vm0, %v8300_v9 }
 0x71f   : > { %v3436_v11 = vmax.f32 %v6738_v40, 0.0  ;;  %6499 = vmatmul.mubr.msk.bf16.vlgmr.msra.gmra.mrb[20].mxu0 %vm421_vm0, %v8296_v13  ;;  %v8311_v0 = vadd.f32 %v3435_v28, %v8237_v4  ;;  %6569 = vmatpush3.bf16.msra.mxu1 %v7207_v1 }
 0x720   : > { %v3434_v17 = vmax.f32 %v6739_v63, 0.0  ;;  %6507 = vmatpush3.bf16.msra.mxu0 %v7196_v26  ;;  %v8317_v12 = vadd.f32 %v3433_v56, %v8243_v22  ;;  %6578 = vmatprep.subr.bf16.mxu1 %v8389_v31 }
 0x721   : > { %v8314_v18 = vadd.f32 %v3436_v11, %v8240_v6  ;;  %6508 = vmatprep.subr.bf16.mxu0 %v7197_v10  ;;  %v3578_v6 = vrot.slane %v3563_v3, 4 }
 0x722   : > { %v8320_v41 = vadd.f32 %v3434_v17, %v8246_v23 }
 0x723   : > { %v8324_v7 = vpack.c.bf16 %v8314_v18, %v8311_v0 }
 0x724   : > { %v8328_v4 = vpack.c.bf16 %v8320_v41, %v8317_v12  ;;  %6509 = vmatpush3.bf16.msra.mxu0 %v7197_v10  ;;  %v3565_v23 = vld [vmem:[#allocation2 + $0x88] sm:$0xff] }
 0x725   : > { %3560 = vst.msk [vmem:[#allocation2 + $0x98] sm:$0xff] %vm421_vm0, %v8324_v7  ;;  %v8332_v19 = vld [vmem:[#allocation2 + $0x80] sm:$0xff]  ;;  %6518 = vmatprep.subr.bf16.mxu0 %v7198_v24  ;;  %v3581_v21 = vrot.slane %v3565_v23, 4  ;;  %v3702_v46 = vrot.slane %v3565_v23, 6 }
 0x726   : > { %3559 = vst.msk [vmem:[#allocation2 + $0x90] sm:$0xff] %vm421_vm0, %v8328_v4  ;;  %6502 = vmatprep.mubr.msk.bf16.mxu0 %vm421_vm0, %v8328_v4  ;;  %v3579_v22 = vrot.slane %v8332_v19, 4  ;;  %v3700_v43 = vrot.slane %v8332_v19, 6 }
 0x727   : > { %6503 = vmatmul.mubr.msk.bf16.gmra.mrb[24].mxu0 %vm421_vm0, %v8324_v7 }
 0x728   : > { %v3580_v20 = vsel %vm1991_vm5, %v3578_v6, %v3579_v22  ;;  %v3582_v27 = vsel %vm1991_vm5, %v3579_v22, %v3581_v21  ;;  %v3701_v45 = vsel %vm1408_vm4, %v3699_v42, %v3700_v43  ;;  %v3703_v25 = vsel %vm1408_vm4, %v3700_v43, %v3702_v46 }
 0x729   : > { %6510 = vmatprep.mubr.msk.bf16.mxu0 %vm421_vm0, %v3580_v20 }
 0x72c   : > { %v3567_v30 = vld [vmem:[#allocation2 + $0x98] sm:$0xf] }
 0x72d   : > { %v3566_v14 = vld [vmem:[#allocation2 + $0x90] sm:$0xff]  ;;  %v3585_v38 = vrot.slane %v3567_v30, 4  ;;  %v3691_v49 = vld [vmem:[#allocation2 + $0x98] sm:$0x3f] }
 0x72e   : > { %v3583_v29 = vrot.slane %v3566_v14, 4  ;;  %v3704_v47 = vrot.slane %v3566_v14, 6  ;;  %v3706_v51 = vrot.slane %v3691_v49, 6 }
 0x72f   : > { %6511 = vmatmul.mubr.msk.bf16.vlgmr.msra.gmra.mrb[28].mxu0 %vm421_vm0, %v3582_v27 }
 0x730   : > { %6519 = vmatpush3.bf16.msra.mxu0 %v7198_v24  ;;  %v3584_v32 = vsel %vm1991_vm5, %v3581_v21, %v3583_v29  ;;  %v3586_v44 = vsel %vm1991_vm5, %v3583_v29, %v3585_v38  ;;  %v3705_v26 = vsel %vm1408_vm4, %v3702_v46, %v3704_v47  ;;  %v3707_v57 = vsel %vm1408_vm4, %v3704_v47, %v3706_v51 }
 0x731   : > { %6514 = vmatprep.mubr.msk.bf16.mxu0 %vm421_vm0, %v3584_v32  ;;  %6520 = vmatprep.subr.bf16.mxu0 %v7199_v15 }
 0x734   : > { %6521 = vmatpush3.bf16.msra.mxu0 %v7199_v15 }
 0x735   : > { %6530 = vmatprep.subr.bf16.mxu0 %v7200_v37 }
 0x737   : > { %6515 = vmatmul.mubr.msk.bf16.gmra.mrb[32].mxu0 %vm421_vm0, %v3586_v44 }
 0x738   : > { %6522 = vmatprep.mubr.msk.bf16.mxu0 %vm421_vm0, %v3701_v45 }
 0x73f   : > { %6523 = vmatmul.mubr.msk.bf16.vlgmr.msra.gmra.mrb[28].mxu0 %vm421_vm0, %v3703_v25 }
 0x740   : > { %6531 = vmatpush3.bf16.msra.mxu0 %v7200_v37  ;;  %6526 = vmatprep.mubr.msk.bf16.mxu0 %vm421_vm0, %v3705_v26 }
 0x741   : > { %6532 = vmatprep.subr.bf16.mxu0 %v7201_v48 }
 0x744   : > { %6533 = vmatpush3.bf16.msra.mxu0 %v7201_v48 }
 0x745   : > { %6542 = vmatprep.subr.bf16.mxu0 %v7202_v50 }
 0x747   : > { %6527 = vmatmul.mubr.msk.bf16.gmra.mrb[32].mxu0 %vm421_vm0, %v3707_v57 }
 0x748   : > { %6534 = vmatprep.mubr.msk.bf16.mxu0 %vm421_vm0, %v8356_v52 }
 0x74f   : > { %6535 = vmatmul.mubr.msk.bf16.vlgmr.msra.gmra.mrb[28].mxu0 %vm421_vm0, %v8362_v58 }
 0x750   : > { %6543 = vmatpush3.bf16.msra.mxu0 %v7202_v50  ;;  %6538 = vmatprep.mubr.msk.bf16.mxu0 %vm421_vm0, %v8364_v59 }
 0x751   : > { %6544 = vmatprep.subr.bf16.mxu0 %v7203_v60 }
 0x754   : > { %6545 = vmatpush3.bf16.msra.mxu0 %v7203_v60  ;;  %v4133_v60 = vld [vmem:[#allocation2 + $0x78] sm:$0xc0] }
 0x755   : > { %6554 = vmatprep.subr.bf16.mxu0 %v7204_v34 }
 0x757   : > { %6539 = vmatmul.mubr.msk.bf16.gmra.mrb[32].mxu0 %vm421_vm0, %v8370_v61 }
 0x758   : > { %6546 = vmatprep.mubr.msk.bf16.mxu0 %vm421_vm0, %v8364_v59 }
 0x75f   : > { %6547 = vmatmul.mubr.msk.bf16.vlgmr.msra.gmra.mrb[28].mxu0 %vm421_vm0, %v8370_v61 }
 0x760   : > { %6555 = vmatpush3.bf16.msra.mxu0 %v7204_v34  ;;  %6550 = vmatprep.mubr.msk.bf16.mxu0 %vm421_vm0, %v8332_v19 }
 0x761   : > { %6556 = vmatprep.subr.bf16.mxu0 %v7205_v35 }
 0x764   : > { %6557 = vmatpush3.bf16.msra.mxu0 %v7205_v35 }
 0x767   : > { %6551 = vmatmul.mubr.msk.bf16.gmra.mrb[32].mxu0 %vm421_vm0, %v3565_v23 }
 0x768   : > { %6558 = vmatprep.mubr.msk.bf16.mxu0 %vm421_vm0, %v8300_v9 }
 0x76f   : > { %6559 = vmatmul.mubr.msk.bf16.vlgmr.msra.gmra.mrb[28].mxu0 %vm421_vm0, %v8296_v13 }
 0x770   : > { %6562 = vmatprep.mubr.msk.bf16.mxu0 %vm421_vm0, %v8328_v4  ;;  %v5822_v4 = vld [vmem:[#allocation11 + $0x5] ss:$0 sm:$0xff] }
 0x777   : > { %6563 = vmatmul.mubr.msk.bf16.gmra.mrb[32].mxu0 %vm421_vm0, %v8324_v7 }
 0x7f2   : > { %v6500_v13 = vpop.f32.mrb[20].mxu0 }
 0x7f3   : > { %v3527_v16 = vadd.f32 %v6500_v13, %v5809_v62  ;;  %v3518_v9 = vpop.f32.mrb[21].mxu0 }
 0x7f4   : > { %v3519_v55 = vadd.f32 %v5809_v62, %v3518_v9  ;;  %v6501_v54 = vpop.f32.mrb[22].mxu0  ;;  %v7209_v9 = vld [vmem:[#allocation9 + $0x1f8] sm:$0xff]  }
 0x7f5   : > { %3551 = vst [vmem:[%s8395_s13 + $0x10] sm:$0xff] %v3527_v16  ;;  %v3530_v28 = vadd.f32 %v6501_v54, %v5809_v62  ;;  %v3521_v40 = vpop.f32.mrb[23].mxu0 }
 0x7f6   : > { %3549 = vst [vmem:[%s8395_s13] sm:$0xff] %v3519_v55  ;;  %v3522_v36 = vadd.f32 %v5809_v62, %v3521_v40  ;;  %v4260_v55 = vld [vmem:[#allocation2 + $0x78] sm:$0x80] }
 0x7f7   : > { %3552 = vst [vmem:[%s8395_s13 + $0x18] sm:$0xff] %v3530_v28  ;;  %v7210_v28 = vld [vmem:[#allocation9 + $0x200] sm:$0xff]  }
 0x7f8   : > { %3550 = vst [vmem:[%s8395_s13 + $0x8] sm:$0xff] %v3522_v36 }
 0x7fa   : > { %v6504_v10 = vpop.f32.mrb[24].mxu0 }
 0x7fb   : > { %v3543_v56 = vadd.f32 %v6504_v10, %v5809_v62  ;;  %v3534_v63 = vpop.f32.mrb[25].mxu0 }
 0x7fc   : > { %v3535_v11 = vadd.f32 %v5809_v62, %v3534_v63  ;;  %v6505_v17 = vpop.f32.mrb[26].mxu0 }
 0x7fd   : > { %3555 = vst [vmem:[%s8395_s13 + $0x30] sm:$0xff] %v3543_v56  ;;  %v3546_v3 = vadd.f32 %v6505_v17, %v5809_v62  ;;  %v3537_v24 = vpop.f32.mrb[27].mxu0  ;;  %v4269_v56 = vrot.slane %v4260_v55, 7 }
 0x7fe   : > { %3553 = vst [vmem:[%s8395_s13 + $0x20] sm:$0xff] %v3535_v11  ;;  %v3538_v7 = vadd.f32 %v5809_v62, %v3537_v24 }
 0x7ff   : > { %3556 = vst [vmem:[%s8395_s13 + $0x38] sm:$0xff] %v3546_v3 }
 0x800   : > { %3554 = vst [vmem:[%s8395_s13 + $0x28] sm:$0xff] %v3538_v7  ;;  %v7211_v7 = vld [vmem:[#allocation9 + $0x208] sm:$0xff]  }
 0x842   : > { %v6560_v6 = vpop.f32.mrb[28].mxu0 }
 0x843   : > { %v6740_v19 = vadd.f32 %v6560_v6, %v5822_v4  ;;  %v4068_v22 = vpop.f32.mrb[29].mxu0 }
 0x844   : > { %v6741_v23 = vadd.f32 %v5822_v4, %v4068_v22  ;;  %v6561_v20 = vpop.f32.mrb[30].mxu0  ;;  %v7212_v22 = vld [vmem:[#allocation9 + $0x210] sm:$0xff]  }
 0x845   : > { %v4109_v21 = vmax.f32 %v6740_v19, 0.0  ;;  %v6742_v14 = vadd.f32 %v6561_v20, %v5822_v4  ;;  %v4071_v15 = vpop.f32.mrb[31].mxu0  ;;  %v8468_v20 = vld [vmem:[#allocation2 + $0x40] sm:$0xff] }
 0x846   : > { %v4107_v27 = vmax.f32 %v6741_v23, 0.0  ;;  %v6743_v29 = vadd.f32 %v5822_v4, %v4071_v15  ;;  %v8476_v15 = vld [vmem:[#allocation2 + $0x50] sm:$0xff] }
 0x847   : > { %v4110_v30 = vmax.f32 %v6742_v14, 0.0  ;;  %v8406_v33 = vadd.f32 %v4109_v21, %v8283_v2  ;;  %v8474_v14 = vld [vmem:[#allocation2 + $0x48] sm:$0xff] }
 0x848   : > { %v4108_v32 = vmax.f32 %v6743_v29, 0.0  ;;  %v8412_v38 = vadd.f32 %v4107_v27, %v8289_v8  ;;  %v7213_v27 = vld [vmem:[#allocation9 + $0x218] sm:$0xff]   ;;  %v7214_v29 = vld [vmem:[#allocation9 + $0x220] sm:$0xff]  }
 0x849   : > { %v8409_v37 = vadd.f32 %v4110_v30, %v8286_v5  ;;  %v8482_v30 = vld [vmem:[#allocation2 + $0x58] sm:$0xff] }
 0x84a   : > { %v8415_v42 = vadd.f32 %v4108_v32, %v8292_v53  ;;  %v6564_v43 = vpop.f32.mrb[32].mxu0  ;;  %v7215_v32 = vld [vmem:[#allocation9 + $0x228] sm:$0xff]  }
 0x84b   : > { %v8419_v44 = vpack.c.bf16 %v8409_v37, %v8406_v33  ;;  %v6744_v45 = vadd.f32 %v6564_v43, %v5822_v4  ;;  %v4084_v46 = vpop.f32.mrb[33].mxu0  ;;  %v5853_v43 = vld [vmem:[#allocation11 + $0x6] ss:$0 sm:$0xff] }
 0x84c   : > { %v8423_v2 = vpack.c.bf16 %v8415_v42, %v8412_v38  ;;  %v6745_v47 = vadd.f32 %v5822_v4, %v4084_v46  ;;  %v6565_v5 = vpop.f32.mrb[34].mxu0 }
 0x84d   : > { %4128 = vst.msk [vmem:[#allocation2 + $0x88] sm:$0xff] %vm421_vm0, %v8419_v44  ;;  %v4113_v8 = vmax.f32 %v6744_v45, 0.0  ;;  %v6746_v48 = vadd.f32 %v6565_v5, %v5822_v4  ;;  %v4087_v53 = vpop.f32.mrb[35].mxu0 }
 0x84e   : > { %4127 = vst.msk [vmem:[#allocation2 + $0x80] sm:$0xff] %vm421_vm0, %v8423_v2  ;;  %v4111_v25 = vmax.f32 %v6745_v47, 0.0  ;;  %v6747_v26 = vadd.f32 %v5822_v4, %v4087_v53 }
 0x84f   : > { %v4114_v49 = vmax.f32 %v6746_v48, 0.0  ;;  %v8430_v51 = vadd.f32 %v4113_v8, %v8311_v0  ;;  %v4148_v0 = vrot.slane %v4133_v60, 6 }
 0x850   : > { %v4112_v50 = vmax.f32 %v6747_v26, 0.0  ;;  %v8436_v34 = vadd.f32 %v4111_v25, %v8317_v12 }
 0x851   : > { %v8433_v57 = vadd.f32 %v4114_v49, %v8314_v18 }
 0x852   : > { %v8439_v35 = vadd.f32 %v4112_v50, %v8320_v41 }
 0x853   : > { %v8443_v39 = vpack.c.bf16 %v8433_v57, %v8430_v51 }
 0x854   : > { %v8447_v1 = vpack.c.bf16 %v8439_v35, %v8436_v34  ;;  %v4135_v62 = vld [vmem:[#allocation2 + $0x88] sm:$0xff] }
 0x855   : > { %4130 = vst.msk [vmem:[#allocation2 + $0x98] sm:$0xff] %vm421_vm0, %v8443_v39  ;;  %v4134_v18 = vld [vmem:[#allocation2 + $0x80] sm:$0xff]  ;;  %v4151_v13 = vrot.slane %v4135_v62, 6  ;;  %v4272_v3 = vrot.slane %v4135_v62, 7 }
 0x856   : > { %4129 = vst.msk [vmem:[#allocation2 + $0x90] sm:$0xff] %vm421_vm0, %v8447_v1  ;;  %v4149_v12 = vrot.slane %v4134_v18, 6  ;;  %v4270_v63 = vrot.slane %v4134_v18, 7 }
 0x858   : > { %v4150_v41 = vsel %vm1408_vm4, %v4148_v0, %v4149_v12  ;;  %v4152_v16 = vsel %vm1408_vm4, %v4149_v12, %v4151_v13  ;;  %v4273_v4 = vsel %vm800_vm2, %v4270_v63, %v4272_v3 }
 0x859   : > { %6570 = vmatprep.mubr.msk.bf16.mxu1 %vm421_vm0, %v4150_v41 }
 0x85a   : > { %6571 = vmatmul.mubr.msk.bf16.vlgmr.msra.gmra.mrb[28].mxu1 %vm421_vm0, %v4152_v16 }
 0x85b   : > { %6579 = vmatpush3.bf16.msra.mxu1 %v8389_v31  ;;  %v4271_v31 = vsel %vm800_vm2, %v4269_v56, %v4270_v63 }
 0x85c   : > { %6580 = vmatprep.subr.bf16.mxu1 %v7209_v9  ;;  %v4137_v54 = vld [vmem:[#allocation2 + $0x98] sm:$0x3f] }
 0x85d   : > { %v4136_v40 = vld [vmem:[#allocation2 + $0x90] sm:$0xff]  ;;  %v4155_v36 = vrot.slane %v4137_v54, 6  ;;  %v4261_v19 = vld [vmem:[#allocation2 + $0x98] sm:$0x7f] }
 0x85e   : > { %v4153_v10 = vrot.slane %v4136_v40, 6  ;;  %v4274_v24 = vrot.slane %v4136_v40, 7  ;;  %v4276_v23 = vrot.slane %v4261_v19, 7 }
 0x85f   : > { %6581 = vmatpush3.bf16.msra.mxu1 %v7209_v9 }
 0x860   : > { %v4154_v11 = vsel %vm1408_vm4, %v4151_v13, %v4153_v10  ;;  %v4156_v17 = vsel %vm1408_vm4, %v4153_v10, %v4155_v36  ;;  %6590 = vmatprep.subr.bf16.mxu1 %v7210_v28  ;;  %v4275_v6 = vsel %vm800_vm2, %v4272_v3, %v4274_v24  ;;  %v4277_v21 = vsel %vm800_vm2, %v4274_v24, %v4276_v23  ;;  %v4715_v36 = vld [vmem:[#allocation2 + $0x78] sm:$0x80] }
 0x861   : > { %6574 = vmatprep.mubr.msk.bf16.mxu1 %vm421_vm0, %v4154_v11  ;;  %v7220_v23 = vld [vmem:[#allocation9 + $0x250] sm:$0xff]  }
 0x862   : > { %6575 = vmatmul.mubr.msk.bf16.gmra.mrb[32].mxu1 %vm421_vm0, %v4156_v17 }
 0x863   : > { %6582 = vmatprep.mubr.msk.bf16.mxu1 %vm421_vm0, %v4271_v31 }
 0x86a   : > { %6583 = vmatmul.mubr.msk.bf16.vlgmr.msra.gmra.mrb[28].mxu1 %vm421_vm0, %v4273_v4  ;;  %v4849_v4 = vshrl.u32 %v4715_v36, 16 }
 0x86b   : > { %6591 = vmatpush3.bf16.msra.mxu1 %v7210_v28  ;;  %6586 = vmatprep.mubr.msk.bf16.mxu1 %vm421_vm0, %v4275_v6 }
 0x86c   : > { %6592 = vmatprep.subr.bf16.mxu1 %v7211_v7 }
 0x86f   : > { %6593 = vmatpush3.bf16.msra.mxu1 %v7211_v7  ;;  %v7219_v7 = vld [vmem:[#allocation9 + $0x248] sm:$0xff]  }
 0x870   : > { %6602 = vmatprep.subr.bf16.mxu1 %v7212_v22 }
 0x872   : > { %6587 = vmatmul.mubr.msk.bf16.gmra.mrb[32].mxu1 %vm421_vm0, %v4277_v21 }
 0x873   : > { %6594 = vmatprep.mubr.msk.bf16.mxu1 %vm421_vm0, %v8468_v20 }
 0x87a   : > { %6595 = vmatmul.mubr.msk.bf16.vlgmr.msra.gmra.mrb[28].mxu1 %vm421_vm0, %v8474_v14 }
 0x87b   : > { %6603 = vmatpush3.bf16.msra.mxu1 %v7212_v22  ;;  %6598 = vmatprep.mubr.msk.bf16.mxu1 %vm421_vm0, %v8476_v15 }
 0x87c   : > { %6604 = vmatprep.subr.bf16.mxu1 %v7213_v27 }
 0x87f   : > { %6605 = vmatpush3.bf16.msra.mxu1 %v7213_v27 }
 0x880   : > { %6614 = vmatprep.subr.bf16.mxu1 %v7214_v29 }
 0x882   : > { %6599 = vmatmul.mubr.msk.bf16.gmra.mrb[32].mxu1 %vm421_vm0, %v8482_v30 }
 0x883   : > { %6606 = vmatprep.mubr.msk.bf16.mxu1 %vm421_vm0, %v8356_v52  ;;  %v7216_v52 = vld [vmem:[#allocation9 + $0x230] sm:$0xff]  }
 0x884   : > { %6626 = vmatprep.subr.bf16.mxu0 %v7216_v52 }
 0x885   : > { %6627 = vmatpush3.bf16.msra.mxu0 %v7216_v52  ;;  %v4851_v52 = vrot.slane %v4849_v4, 7 }
 0x88a   : > { %6607 = vmatmul.mubr.msk.bf16.vlgmr.msra.gmra.mrb[28].mxu1 %vm421_vm0, %v8362_v58  ;;  %v7217_v58 = vld [vmem:[#allocation9 + $0x238] sm:$0xff]  }
 0x88b   : > { %6615 = vmatpush3.bf16.msra.mxu1 %v7214_v29  ;;  %6610 = vmatprep.mubr.msk.bf16.mxu1 %vm421_vm0, %v8364_v59  ;;  %v7218_v59 = vld [vmem:[#allocation9 + $0x240] sm:$0xff]  }
 0x88c   : > { %6616 = vmatprep.subr.bf16.mxu1 %v7215_v32  ;;  %6628 = vmatprep.subr.bf16.mxu0 %v7217_v58 }
 0x88d   : > { %6629 = vmatpush3.bf16.msra.mxu0 %v7217_v58 }
 0x88e   : > { %6638 = vmatprep.subr.bf16.mxu0 %v7218_v59 }
 0x88f   : > { %6617 = vmatpush3.bf16.msra.mxu1 %v7215_v32 }
 0x892   : > { %6611 = vmatmul.mubr.msk.bf16.gmra.mrb[32].mxu1 %vm421_vm0, %v8370_v61  ;;  %v7226_v61 = vld [vmem:[#allocation12 + $0x10] sm:$0xff]  }
 0x893   : > { %6618 = vmatprep.mubr.msk.bf16.mxu1 %vm421_vm0, %v8423_v2  ;;  %6686 = vmatprep.subr.bf16.mxu1 %v7226_v61 }
 0x89a   : > { %6619 = vmatmul.mubr.msk.bf16.vlgmr.msra.gmra.mrb[28].mxu1 %vm421_vm0, %v8419_v44 }
 0x89b   : > { %6622 = vmatprep.mubr.msk.bf16.mxu1 %vm421_vm0, %v8447_v1  ;;  %6687 = vmatpush3.bf16.msra.mxu1 %v7226_v61 }
 0x8a2   : > { %6623 = vmatmul.mubr.msk.bf16.gmra.mrb[32].mxu1 %vm421_vm0, %v8443_v39 }
 0x96d   : > { %v6620_v45 = vpop.f32.mrb[28].mxu1 }
 0x96e   : > { %v6748_v44 = vadd.f32 %v6620_v45, %v5853_v43  ;;  %v4650_v46 = vpop.f32.mrb[29].mxu1 }
 0x96f   : > { %v6749_v2 = vadd.f32 %v5853_v43, %v4650_v46  ;;  %v6621_v47 = vpop.f32.mrb[30].mxu1 }
 0x970   : > { %v4691_v5 = vmax.f32 %v6748_v44, 0.0  ;;  %v6750_v8 = vadd.f32 %v6621_v47, %v5853_v43  ;;  %v4653_v48 = vpop.f32.mrb[31].mxu1 }
 0x971   : > { %v4689_v53 = vmax.f32 %v6749_v2, 0.0  ;;  %v6751_v25 = vadd.f32 %v5853_v43, %v4653_v48 }
 0x972   : > { %v4692_v26 = vmax.f32 %v6750_v8, 0.0  ;;  %v8503_v50 = vadd.f32 %v4691_v5, %v8406_v33 }
 0x973   : > { %v4690_v49 = vmax.f32 %v6751_v25, 0.0  ;;  %v8509_v39 = vadd.f32 %v4689_v53, %v8412_v38  ;;  %v7221_v25 = vld [vmem:[#allocation9 + $0x258] sm:$0xff]  }
 0x974   : > { %v8506_v60 = vadd.f32 %v4692_v26, %v8409_v37 }
 0x975   : > { %v8512_v1 = vadd.f32 %v4690_v49, %v8415_v42  ;;  %v6624_v0 = vpop.f32.mrb[32].mxu1 }
 0x976   : > { %v8516_v62 = vpack.c.bf16 %v8506_v60, %v8503_v50  ;;  %v6752_v18 = vadd.f32 %v6624_v0, %v5853_v43  ;;  %v4666_v13 = vpop.f32.mrb[33].mxu1 }
 0x977   : > { %v8520_v33 = vpack.c.bf16 %v8512_v1, %v8509_v39  ;;  %v6753_v12 = vadd.f32 %v5853_v43, %v4666_v13  ;;  %v6625_v37 = vpop.f32.mrb[34].mxu1  ;;  %v7222_v13 = vld [vmem:[#allocation9 + $0x260] sm:$0xff]  }
 0x978   : > { %4710 = vst.msk [vmem:[#allocation2 + $0x88] sm:$0xff] %vm421_vm0, %v8516_v62  ;;  %v4695_v38 = vmax.f32 %v6752_v18, 0.0  ;;  %v6754_v41 = vadd.f32 %v6625_v37, %v5853_v43  ;;  %v4669_v42 = vpop.f32.mrb[35].mxu1  ;;  %v4981_v37 = vld [vmem:[#allocation2] sm:$0xff] }
 0x979   : > { %4709 = vst.msk [vmem:[#allocation2 + $0x80] sm:$0xff] %vm421_vm0, %v8520_v33  ;;  %v4693_v16 = vmax.f32 %v6753_v12, 0.0  ;;  %v6755_v9 = vadd.f32 %v5853_v43, %v4669_v42  ;;  %v4983_v42 = vld [vmem:[#allocation2 + $0x10] sm:$0xff] }
 0x97a   : > { %v4696_v55 = vmax.f32 %v6754_v41, 0.0  ;;  %v8527_v28 = vadd.f32 %v4695_v38, %v8430_v51  ;;  %v4730_v51 = vrot.slane %v4715_v36, 7  ;;  %v4982_v41 = vld [vmem:[#allocation2 + $0x8] sm:$0xff] }
 0x97b   : > { %v4694_v54 = vmax.f32 %v6755_v9, 0.0  ;;  %v8533_v10 = vadd.f32 %v4693_v16, %v8436_v34  ;;  %v7223_v16 = vld [vmem:[#allocation9 + $0x268] sm:$0xff]   ;;  %v7224_v9 = vld [vmem:[#allocation9 + $0x270] sm:$0xff]  }
 0x97c   : > { %v8530_v40 = vadd.f32 %v4696_v55, %v8433_v57  ;;  %v4984_v55 = vld [vmem:[#allocation2 + $0x18] sm:$0xff] }
 0x97d   : > { %v8536_v56 = vadd.f32 %v4694_v54, %v8439_v35  ;;  %v7225_v54 = vld [vmem:[#allocation9 + $0x278] sm:$0xff]  }
 0x97e   : > { %v8540_v63 = vpack.c.bf16 %v8530_v40, %v8527_v28 }
 0x97f   : > { %v8544_v11 = vpack.c.bf16 %v8536_v56, %v8533_v10  ;;  %v4717_v17 = vld [vmem:[#allocation2 + $0x88] sm:$0xff] }
 0x980   : > { %4712 = vst.msk [vmem:[#allocation2 + $0x98] sm:$0xff] %vm421_vm0, %v8540_v63  ;;  %v4716_v57 = vld [vmem:[#allocation2 + $0x80] sm:$0xff]  ;;  %v4733_v31 = vrot.slane %v4717_v17, 7  ;;  %v4861_v29 = vshrl.u32 %v4717_v17, 16  ;;  %v4864_v47 = vshll.u32 %v4717_v17, 16 }
 0x981   : > { %4711 = vst.msk [vmem:[#allocation2 + $0x90] sm:$0xff] %vm421_vm0, %v8544_v11  ;;  %v4731_v34 = vrot.slane %v4716_v57, 7  ;;  %v4853_v35 = vshrl.u32 %v4716_v57, 16  ;;  %v4856_v22 = vshll.u32 %v4716_v57, 16 }
 0x983   : > { %v4732_v3 = vsel %vm800_vm2, %v4730_v51, %v4731_v34  ;;  %v4734_v24 = vsel %vm800_vm2, %v4731_v34, %v4733_v31  ;;  %v4855_v6 = vrot.slane %v4853_v35, 7 }
 0x984   : > { %6630 = vmatprep.mubr.msk.bf16.mxu0 %vm421_vm0, %v4732_v3 }
 0x985   : > { %6631 = vmatmul.mubr.msk.bf16.vlgmr.msra.gmra.mrb[36].mxu0 %vm421_vm0, %v4734_v24  ;;  %v4858_v58 = vor.u32 %v4856_v22, %v4855_v6 }
 0x986   : > { %6639 = vmatpush3.bf16.msra.mxu0 %v7218_v59  ;;  %v4863_v59 = vrot.slane %v4861_v29, 7 }
 0x987   : > { %6640 = vmatprep.subr.bf16.mxu0 %v7219_v7  ;;  %v4719_v19 = vld [vmem:[#allocation2 + $0x98] sm:$0x7f]  ;;  %v4859_v44 = vsel %vm913_vm3, %v4851_v52, %v4858_v58 }
 0x988   : > { %v4718_v21 = vld [vmem:[#allocation2 + $0x90] sm:$0xff]  ;;  %v4737_v27 = vrot.slane %v4719_v19, 7  ;;  %v4842_v2 = vld [vmem:[#allocation2 + $0x98] sm:$0xff]  ;;  %v4866_v8 = vor.u32 %v4864_v47, %v4863_v59 }
 0x989   : > { %v4735_v32 = vrot.slane %v4718_v21, 7  ;;  %v4869_v61 = vshrl.u32 %v4718_v21, 16  ;;  %v4872_v5 = vshll.u32 %v4718_v21, 16  ;;  %v4877_v48 = vshrl.u32 %v4842_v2, 16 }
 0x98a   : > { %6641 = vmatpush3.bf16.msra.mxu0 %v7219_v7  ;;  %v4867_v26 = vsel %vm913_vm3, %v4855_v6, %v4866_v8  ;;  %v4880_v18 = vshll.u32 %v4842_v2, 16 }
 0x98b   : > { %v4736_v43 = vsel %vm800_vm2, %v4733_v31, %v4735_v32  ;;  %v4738_v45 = vsel %vm800_vm2, %v4735_v32, %v4737_v27  ;;  %6650 = vmatprep.subr.bf16.mxu0 %v7220_v23  ;;  %v4871_v46 = vrot.slane %v4869_v61, 7  ;;  %v4879_v49 = vrot.slane %v4877_v48, 7 }
 0x98c   : > { %6634 = vmatprep.mubr.msk.bf16.mxu0 %vm421_vm0, %v4736_v43 }
 0x98d   : > { %6635 = vmatmul.mubr.msk.bf16.gmra.mrb[40].mxu0 %vm421_vm0, %v4738_v45  ;;  %v4874_v53 = vor.u32 %v4872_v5, %v4871_v46  ;;  %v4882_v12 = vor.u32 %v4880_v18, %v4879_v49 }
 0x98e   : > { %6642 = vmatprep.mubr.msk.bf16.mxu0 %vm421_vm0, %v4859_v44 }
 0x98f   : > { %v4875_v0 = vsel %vm913_vm3, %v4863_v59, %v4874_v53  ;;  %v4883_v38 = vsel %vm913_vm3, %v4871_v46, %v4882_v12 }
 0x995   : > { %6643 = vmatmul.mubr.msk.bf16.vlgmr.msra.gmra.mrb[36].mxu0 %vm421_vm0, %v4867_v26 }
 0x996   : > { %6651 = vmatpush3.bf16.msra.mxu0 %v7220_v23  ;;  %6646 = vmatprep.mubr.msk.bf16.mxu0 %vm421_vm0, %v4875_v0 }
 0x997   : > { %6652 = vmatprep.subr.bf16.mxu0 %v7221_v25 }
 0x99a   : > { %6653 = vmatpush3.bf16.msra.mxu0 %v7221_v25 }
 0x99b   : > { %6662 = vmatprep.subr.bf16.mxu0 %v7222_v13 }
 0x99d   : > { %6647 = vmatmul.mubr.msk.bf16.gmra.mrb[40].mxu0 %vm421_vm0, %v4883_v38 }
 0x99e   : > { %6654 = vmatprep.mubr.msk.bf16.mxu0 %vm421_vm0, %v4981_v37 }
 0x9a5   : > { %6655 = vmatmul.mubr.msk.bf16.vlgmr.msra.gmra.mrb[36].mxu0 %vm421_vm0, %v4982_v41 }
 0x9a6   : > { %6663 = vmatpush3.bf16.msra.mxu0 %v7222_v13  ;;  %6658 = vmatprep.mubr.msk.bf16.mxu0 %vm421_vm0, %v4983_v42 }
 0x9a7   : > { %6664 = vmatprep.subr.bf16.mxu0 %v7223_v16 }
 0x9aa   : > { %6665 = vmatpush3.bf16.msra.mxu0 %v7223_v16 }
 0x9ab   : > { %6674 = vmatprep.subr.bf16.mxu0 %v7224_v9 }
 0x9ad   : > { %6659 = vmatmul.mubr.msk.bf16.gmra.mrb[40].mxu0 %vm421_vm0, %v4984_v55 }
 0x9ae   : > { %6666 = vmatprep.mubr.msk.bf16.mxu0 %vm421_vm0, %v8468_v20  ;;  %v7227_v20 = vld [vmem:[#allocation12 + $0x18] sm:$0xff]  }
 0x9af   : > { %6688 = vmatprep.subr.bf16.mxu1 %v7227_v20 }
 0x9b0   : > { %6689 = vmatpush3.bf16.msra.mxu1 %v7227_v20 }
 0x9b5   : > { %6667 = vmatmul.mubr.msk.bf16.vlgmr.msra.gmra.mrb[36].mxu0 %vm421_vm0, %v8474_v14  ;;  %v5884_v14 = vld [vmem:[#allocation11 + $0x7] ss:$0 sm:$0xff] }
 0x9b6   : > { %6675 = vmatpush3.bf16.msra.mxu0 %v7224_v9  ;;  %6670 = vmatprep.mubr.msk.bf16.mxu0 %vm421_vm0, %v8476_v15 }
 0x9b7   : > { %6676 = vmatprep.subr.bf16.mxu0 %v7225_v54 }
 0x9ba   : > { %6677 = vmatpush3.bf16.msra.mxu0 %v7225_v54 }
 0x9bd   : > { %6671 = vmatmul.mubr.msk.bf16.gmra.mrb[40].mxu0 %vm421_vm0, %v8482_v30 }
 0x9be   : > { %6678 = vmatprep.mubr.msk.bf16.mxu0 %vm421_vm0, %v8520_v33 }
 0x9c5   : > { %6679 = vmatmul.mubr.msk.bf16.vlgmr.msra.gmra.mrb[36].mxu0 %vm421_vm0, %v8516_v62 }
 0x9c6   : > { %6682 = vmatprep.mubr.msk.bf16.mxu0 %vm421_vm0, %v8544_v11 }
 0x9cd   : > { %6683 = vmatmul.mubr.msk.bf16.gmra.mrb[40].mxu0 %vm421_vm0, %v8540_v63 }
 0xa98   : > { %v6680_v15 = vpop.f32.mrb[36].mxu0 }
 0xa99   : > { %v6756_v36 = vadd.f32 %v6680_v15, %v5884_v14  ;;  %v5256_v51 = vpop.f32.mrb[37].mxu0 }
 0xa9a   : > { %v6757_v30 = vadd.f32 %v5884_v14, %v5256_v51  ;;  %v6681_v17 = vpop.f32.mrb[38].mxu0 }
 0xa9b   : > { %v5297_v57 = vmax.f32 %v6756_v36, 0.0  ;;  %v6758_v33 = vadd.f32 %v6681_v17, %v5884_v14  ;;  %v5259_v31 = vpop.f32.mrb[39].mxu0 }
 0xa9c   : > { %v5295_v34 = vmax.f32 %v6757_v30, 0.0  ;;  %v6759_v62 = vadd.f32 %v5884_v14, %v5259_v31 }
 0xa9d   : > { %v5298_v35 = vmax.f32 %v6758_v33, 0.0  ;;  %v5305_v11 = vadd.f32 %v5297_v57, %v8503_v50 }
 0xa9e   : > { %v5296_v3 = vmax.f32 %v6759_v62, 0.0  ;;  %v5303_v24 = vadd.f32 %v5295_v34, %v8509_v39 }
 0xa9f   : > { %v5306_v63 = vadd.f32 %v5298_v35, %v8506_v60 }
 0xaa0   : > { %v5304_v7 = vadd.f32 %v5296_v3, %v8512_v1  ;;  %v6684_v4 = vpop.f32.mrb[40].mxu0 }
 0xaa1   : > { %v5312_v6 = vpack.c.bf16 %v5306_v63, %v5305_v11  ;;  %v6760_v19 = vadd.f32 %v6684_v4, %v5884_v14  ;;  %v5272_v22 = vpop.f32.mrb[41].mxu0 }
 0xaa2   : > { %v5311_v23 = vpack.c.bf16 %v5304_v7, %v5303_v24  ;;  %v6761_v21 = vadd.f32 %v5884_v14, %v5272_v22  ;;  %v6685_v27 = vpop.f32.mrb[42].mxu0 }
 0xaa3   : > { %v5301_v29 = vmax.f32 %v6760_v19, 0.0  ;;  %v6762_v32 = vadd.f32 %v6685_v27, %v5884_v14  ;;  %v5275_v52 = vpop.f32.mrb[43].mxu0 }
 0xaa4   : > { %v5299_v58 = vmax.f32 %v6761_v21, 0.0  ;;  %v6763_v50 = vadd.f32 %v5884_v14, %v5275_v52  ;;  %6690 = vmatprep.mubr.msk.bf16.mxu1 %vm421_vm0, %v5311_v23 }
 0xaa5   : > { %v5302_v60 = vmax.f32 %v6762_v32, 0.0  ;;  %6691 = vmatmul.mubr.msk.bf16.vlgmr.msra.gmra.mrb[36].mxu1 %vm421_vm0, %v5312_v6  ;;  %v5309_v1 = vadd.f32 %v5301_v29, %v8527_v28 }
 0xaa6   : > { %v5300_v39 = vmax.f32 %v6763_v50, 0.0  ;;  %v5307_v43 = vadd.f32 %v5299_v58, %v8533_v10 }
 0xaa7   : > { %v5310_v61 = vadd.f32 %v5302_v60, %v8530_v40 }
 0xaa8   : > { %v5308_v45 = vadd.f32 %v5300_v39, %v8536_v56 }
 0xaa9   : > { %v5314_v59 = vpack.c.bf16 %v5310_v61, %v5309_v1 }
 0xaaa   : > { %v5313_v44 = vpack.c.bf16 %v5308_v45, %v5307_v43 }
 0xaac   : > { %6694 = vmatprep.mubr.msk.bf16.mxu1 %vm421_vm0, %v5313_v44 }
 0xaad   : > { %6695 = vmatmul.mubr.msk.bf16.gmra.mrb[40].mxu1 %vm421_vm0, %v5314_v59 }
 0xaae   : > { %7439 = shalt.err (!%p7436_p8)
}
 0xaaf   : > { %s7440_s14 = scalar_lea.hbm %s8607_s1, 1024  ;;  %s7444_s9 = scalar_lea.hbm %s8699_s7, 2048 }
 0xab0   : > { %p7441_p4 = scmp.ne.s32.totalorder %s8607_s1, %s7440_s14  ;;  %p7445_p0 = scmp.lt.u32.totalorder %s8607_s1, %s8699_s7 }
 0xab1   : > { %p7446_p5 = scmp.lt.u32.totalorder %s7444_s9, %s7440_s14  ;;  %p7448_p6 = scmp.lt.u32.totalorder %s7440_s14, %s8607_s1 }
 0xab2   : > { %p7442_p10 = pnand %p7441_p4, %p8724_p9 }
 0xab3   : > { %p7447_p7 = por %p7446_p5, %p7445_p0 }
 0xab4   : > { %p7443_p11 = pneg %p7442_p10 }
 0xab5   : > { %p7449_p12 = por %p7448_p6, %p7447_p7 }
 0xab7   : > { %p7450_p13 = pnand %p7449_p12, %p7443_p11 }
 0xab9   : > { %7453 = shalt.err (!%p7450_p13)
}
 0xaba   : > { %s7551_s21 = smov 128   ;;  %s7552_s16 = smov 8   ;;  %v5909_v28 = vld [vmem:[#allocation14 + $0x1] ss:$0 sm:$0xff] }
 0xabb   : > { %7046 = dma.vmem_to_hbm [thread:$0]  (%p8724_p9), %s8599_s19, 1024, %s8607_s1, %s5426_s10, %s7551_s21, %s7551_s21, %s7552_s16  }
 0xabc   : > { %s419_s14 = scalar_lea.vmem [#allocation16], %s5642_s12  ;;  %s8645_s1 = scalar_lea.hbm %s8700_s8, %s5925_s18 }
 0xabd   : > { %s5460_s13 = sshll.u32 %s419_s14, 4  ;;  %s5431_s10 = scalar_lea.sflag [#allocation17], %s7866_s25  ;;  %s8638_s13 = int_to_ptr.vmem [resolvable:$true] %s5460_s13 }
 0xabe   : > { %s7454_s23 = scalar_lea.vmem %s8638_s13, 1024  ;;  %s7553_s9 = smov [#allocation16]  }
 0xabf   : > { %p7455_p1 = scmp.ne.s32.totalorder %s8638_s13, %s7454_s23  ;;  %s7458_s17 = sshll.u32 %s7553_s9, 4  ;;  %s7459_s17 = int_to_ptr.vmem [resolvable:$false] %s7458_s17 }
 0xac0   : > { %s7460_s20 = scalar_lea.vmem %s7459_s17, 2048  ;;  %p7461_p8 = scmp.lt.s32.totalorder %s8638_s13, %s7459_s17 }
 0xac1   : > { %p7456_p3 = pnand %p7455_p1, %p8724_p9  ;;  %p7462_p4 = scmp.lt.s32.totalorder %s7460_s20, %s7454_s23 }
 0xac3   : > { %p7457_p2 = pneg %p7456_p3  ;;  %p7463_p10 = por %p7462_p4, %p7461_p8 }
 0xac5   : > { %p7464_p11 = pnand %p7463_p10, %p7457_p2 }
 0xb78   : > { %v6692_v40 = vpop.f32.mrb[36].mxu1 }
 0xb79   : > { %v5395_v10 = vadd.f32 %v6692_v40, %v5909_v28  ;;  %v5386_v56 = vpop.f32.mrb[37].mxu1 }
 0xb7a   : > { %v5387_v46 = vadd.f32 %v5909_v28, %v5386_v56  ;;  %v6693_v2 = vpop.f32.mrb[38].mxu1 }
 0xb7b   : > { %5419 = vst [vmem:[%s419_s14 + $0x10] sm:$0xff] %v5395_v10  ;;  %v5398_v47 = vadd.f32 %v6693_v2, %v5909_v28  ;;  %v5389_v5 = vpop.f32.mrb[39].mxu1 }
 0xb7c   : > { %5417 = vst [vmem:[%s419_s14] sm:$0xff] %v5387_v46  ;;  %v5390_v8 = vadd.f32 %v5909_v28, %v5389_v5 }
 0xb7d   : > { %5420 = vst [vmem:[%s419_s14 + $0x18] sm:$0xff] %v5398_v47 }
 0xb7e   : > { %5418 = vst [vmem:[%s419_s14 + $0x8] sm:$0xff] %v5390_v8 }
 0xb80   : > { %v6696_v48 = vpop.f32.mrb[40].mxu1 }
 0xb81   : > { %v5411_v53 = vadd.f32 %v6696_v48, %v5909_v28  ;;  %v5402_v25 = vpop.f32.mrb[41].mxu1 }
 0xb82   : > { %v5403_v26 = vadd.f32 %v5909_v28, %v5402_v25  ;;  %v6697_v49 = vpop.f32.mrb[42].mxu1 }
 0xb83   : > { %5423 = vst [vmem:[%s419_s14 + $0x30] sm:$0xff] %v5411_v53  ;;  %v5414_v0 = vadd.f32 %v6697_v49, %v5909_v28  ;;  %v5405_v18 = vpop.f32.mrb[43].mxu1 }
 0xb84   : > { %5421 = vst [vmem:[%s419_s14 + $0x20] sm:$0xff] %v5403_v26  ;;  %v5406_v13 = vadd.f32 %v5909_v28, %v5405_v18 }
 0xb85   : > { %5424 = vst [vmem:[%s419_s14 + $0x38] sm:$0xff] %v5414_v0 }
 0xb86   : > { %5422 = vst [vmem:[%s419_s14 + $0x28] sm:$0xff] %v5406_v13 }
 0xb87   : > { %7467 = shalt.err (!%p7464_p11)
}
 0xb88   : > { %s7468_s11 = scalar_lea.hbm %s8645_s1, 1024  ;;  %s7472_s12 = scalar_lea.hbm %s8700_s8, 2048 }
 0xb89   : > { %p7469_p0 = scmp.ne.s32.totalorder %s8645_s1, %s7468_s11  ;;  %p7473_p6 = scmp.lt.u32.totalorder %s8645_s1, %s8700_s8 }
 0xb8a   : > { %p7474_p12 = scmp.lt.u32.totalorder %s7472_s12, %s7468_s11  ;;  %p7476_p1 = scmp.lt.u32.totalorder %s7468_s11, %s8645_s1 }
 0xb8b   : > { %p7470_p5 = pnand %p7469_p0, %p8724_p9 }
 0xb8c   : > { %p7475_p13 = por %p7474_p12, %p7473_p6 }
 0xb8d   : > { %p7471_p7 = pneg %p7470_p5 }
 0xb8e   : > { %p7477_p3 = por %p7476_p1, %p7475_p13 }
 0xb90   : > { %p7478_p2 = pnand %p7477_p3, %p7471_p7 }
 0xb92   : > { %7481 = shalt.err (!%p7478_p2)
}
 0xb93   : > { %7047 = dma.vmem_to_hbm [thread:$0]  (%p8724_p9), %s8638_s13, 1024, %s8645_s1, %s5431_s10, %s7551_s21, %s7551_s21, %s7552_s16  }
 0xb94 PF: > { %s5475_s23 = sand.u32 1, %s7524_s27   ;;  %p8725_p8 = scmp.ne.s32.totalorder %s8714_s26, 0 }
 0xb95   : > { %p8726_p4 = scmp.ge.s32.totalorder %s7536_s30, 2  ;;  %s5476_s17 = scalar_lea.sflag [#allocation5], %s5475_s23 }
 0xb97   : > { %p7074_p10 = pnand %p8726_p4, %p8725_p8 }
 0xb99   : > { %7515 = dma.done.wait (!%p7074_p10), %s5476_s17, 1024  }
 0xb9a   : > { %7517 = vsyncadd (!%p7074_p10), %s5476_s17, 4294966272  ;;  %s5485_s22 = scalar_lea.sflag [#allocation17], %s5475_s23 }
 0xb9b   : > { %7519 = dma.done.wait (!%p7074_p10), %s5485_s22, 1024  }
 0xb9c   : > { %7521 = vsyncadd (!%p7074_p10), %s5485_s22, 4294966272  ;;  %p28_p9 = scmp.ge.s32.totalorder %s7784_s15, 4   ;;  %s8727_s27 = smov %s7528_s28 }
 0xb9d   : > { %s8728_s28 = smov %s7532_s29  ;;  %s8729_s29 = smov %s7795_s24 }
 0xb9e   : > { %s8730_s30 = smov %s7784_s15  ;;  %30 = sbr.rel (!%p28_p9) target bundleno = 12 (0xc), region = 182 }
 0xba5   :  { %5490 = vsyncpa [#allocation4], 1 }
 0xba6   :  { %5492 = vsyncpa [#allocation4 + $0x1], 1 }
 0xba7   :  { %5493 = vsyncpa [#allocation7], 1 }
 0xba8   :  { %5494 = vsyncpa [#allocation10], 1 }
 0xba9   :  { %5495 = vsyncpa [#allocation13], 1 }
 0xbaa   :  { %5496 = vsyncpa [#allocation5], 1 }
 0xbab   :  { %5498 = vsyncpa [#allocation5 + $0x1], 1 }
 0xbac   :  { %5499 = vsyncpa [#allocation17], 1 }
 0xbad   :  { %5501 = vsyncpa [#allocation17 + $0x1], 1 }

</bundles_post_ra>
